<compile_context>
chip_gen: v7x
topology: tpu7x:2x2x1
jax: 0.10.0
libtpu: 0.0.40
codegen_flags: <defaults>
</compile_context>

<pallas_src>
import numpy as np
import jax
import jax.numpy as jnp
from jax import lax
from jax.experimental import pallas as pl
from jax.experimental.pallas import tpu as pltpu


# ---------------------------------------------------------------------------
# Pallas kernels
# ---------------------------------------------------------------------------
def _mm_bias_relu_kernel(a_ref, w_ref, b_ref, o_ref):
    # conv (+ folded BN scale) -> +bias -> ReLU            (used for conv0/norm0/relu0)
    acc = jnp.dot(a_ref[...], w_ref[...], preferred_element_type=jnp.float32)
    o_ref[...] = jnp.maximum(acc + b_ref[...], 0.0).astype(o_ref.dtype)


def _bnrelu_mm_bias_relu_kernel(x_ref, ps_ref, pb_ref, w_ref, b_ref, o_ref):
    # norm1+relu1 (prologue, f32) -> conv1 (bf16 MXU, norm2 scale folded into w)
    # -> +norm2 bias -> relu2 (epilogue)                   (dense-layer bottleneck)
    ya = jnp.maximum(x_ref[...] * ps_ref[...] + pb_ref[...], 0.0)
    acc = jnp.dot(ya.astype(jnp.bfloat16), w_ref[...],
                  preferred_element_type=jnp.float32)
    o_ref[...] = jnp.maximum(acc + b_ref[...], 0.0).astype(o_ref.dtype)


def _mm_kernel(a_ref, w_ref, o_ref):
    # plain conv on im2col patches (3x3 growth conv)
    o_ref[...] = jnp.dot(a_ref[...], w_ref[...],
                         preferred_element_type=jnp.float32).astype(o_ref.dtype)


def _transition_kernel(x_ref, ps_ref, pb_ref, pool_ref, w_ref, o_ref):
    # BN+ReLU (f32) -> 2x2 avg pool as a matmul -> 1x1 conv (pool first: linearity)
    ya = jnp.maximum(x_ref[...] * ps_ref[...] + pb_ref[...], 0.0)
    pooled = jnp.dot(pool_ref[...], ya.astype(jnp.bfloat16),
                     preferred_element_type=jnp.float32)
    o_ref[...] = jnp.dot(pooled.astype(jnp.bfloat16), w_ref[...],
                         preferred_element_type=jnp.float32).astype(o_ref.dtype)


def _head_kernel(x_ref, ps_ref, pb_ref, wt_ref, o_ref):
    # norm5 + relu -> seg 1x1 conv -> relu -> tanh, emitted lane-dense as (8, M)
    ya = jnp.maximum(x_ref[...] * ps_ref[...] + pb_ref[...], 0.0)
    z = lax.dot_general(wt_ref[...], ya,
                        dimension_numbers=(((1,), (1,)), ((), ())),
                        preferred_element_type=jnp.float32)
    o_ref[...] = jnp.tanh(jnp.maximum(z, 0.0)).astype(o_ref.dtype)


# ---------------------------------------------------------------------------
# pallas_call wrappers
# ---------------------------------------------------------------------------
def _choose_tm(m):
    # Largest row tile that divides M and still yields >= 2 grid steps (v7x has 2 TCs).
    for tm in (128, 64, 32, 16):
        if m % tm == 0 and m // tm >= 2:
            return tm
    return m


def _row_tiled_call(kernel, a, others, out_cols, out_dtype=jnp.float32):
    m, ka = a.shape
    tm = _choose_tm(m)
    in_specs = [pl.BlockSpec((tm, ka), lambda i: (i, 0))]
    # Weights / BN vectors: full-array blocks with a constant block index (stay resident).
    in_specs += [pl.BlockSpec(o.shape, lambda i: (0, 0)) for o in others]
    return pl.pallas_call(
        kernel,
        out_shape=jax.ShapeDtypeStruct((m, out_cols), out_dtype),
        grid_spec=pltpu.PrefetchScalarGridSpec(
            num_scalar_prefetch=0,
            grid=(m // tm,),
            in_specs=in_specs,
            out_specs=pl.BlockSpec((tm, out_cols), lambda i: (i, 0))),
        compiler_params=pltpu.CompilerParams(
            dimension_semantics=("parallel",)),
    )(a, *others)


def _matmul_bias_relu(patches, w, b):
    return _row_tiled_call(_mm_bias_relu_kernel, patches, (w, b), w.shape[1])


def _bnrelu_matmul_bias_relu(x, ps, pb, w, b):
    # bf16 output: it is only consumed by the following 3x3 conv's im2col.
    return _row_tiled_call(_bnrelu_mm_bias_relu_kernel, x, (ps, pb, w, b),
                           w.shape[1], out_dtype=jnp.bfloat16)


def _matmul(patches, w):
    return _row_tiled_call(_mm_kernel, patches, (w,), w.shape[1])


def _transition(x, ps, pb, pool, w):
    return pl.pallas_call(
        _transition_kernel,
        out_shape=jax.ShapeDtypeStruct((pool.shape[0], w.shape[1]), jnp.float32),
    )(x, ps, pb, pool, w)


def _head(x, ps, pb, wt):
    return pl.pallas_call(
        _head_kernel,
        out_shape=jax.ShapeDtypeStruct((wt.shape[0], x.shape[0]), jnp.float32),
    )(x, ps, pb, wt)


# ---------------------------------------------------------------------------
# JAX glue: im2col + pooling matrix (pure data movement / trace-time constants)
# ---------------------------------------------------------------------------
def _im2col(x_nhwc, kh, kw, stride, pad):
    x = x_nhwc.astype(jnp.bfloat16)
    n, h, w, c = x.shape
    xp = jnp.pad(x, ((0, 0), (pad, pad), (pad, pad), (0, 0)))
    ho = (h + 2 * pad - kh) // stride + 1
    wo = (w + 2 * pad - kw) // stride + 1
    cols = []
    for dy in range(kh):
        for dx in range(kw):
            cols.append(xp[:, dy:dy + stride * ho:stride, dx:dx + stride * wo:stride, :])
    p = jnp.stack(cols, axis=3).reshape(n * ho * wo, kh * kw * c)
    return p, (n, ho, wo)


def _pool_matrix(n, h, w):
    # Trace-time constant: 2x2 average pooling over (n,h,w) row-major rows expressed as a
    # (M_out, M_in) matrix so it fuses into the transition kernel as a matmul.
    assert h % 2 == 0 and w % 2 == 0
    ho, wo = h // 2, w // 2
    p = np.zeros((n * ho * wo, n * h * w), np.float32)
    for b in range(n):
        for r in range(ho):
            for c in range(wo):
                o = (b * ho + r) * wo + c
                for dy in range(2):
                    for dx in range(2):
                        p[o, (b * h + 2 * r + dy) * w + 2 * c + dx] = 0.25
    return jnp.asarray(p, jnp.bfloat16)


# ---------------------------------------------------------------------------
# Parameter construction (mirrors the PyTorch __init__, eval-mode BN folded in)
# ---------------------------------------------------------------------------
def _conv_weight(key, cin, cout, kh, kw):
    # kaiming_normal_ (fan_in, gain=sqrt(2)); stored as (kh*kw*cin, cout) to match the
    # (dy, dx, cin) im2col patch ordering above.
    fan_in = cin * kh * kw
    std = (2.0 / fan_in) ** 0.5
    w = jax.random.normal(key, (kh, kw, cin, cout), jnp.float32) * std
    return w.reshape(kh * kw * cin, cout)


def _folded_bn(c, eps=1e-5):
    # Eval-mode BN with the module's deterministic init: gamma=1, beta=0, mean=0, var=1.
    gamma = jnp.ones((c,), jnp.float32)
    beta = jnp.zeros((c,), jnp.float32)
    mean = jnp.zeros((c,), jnp.float32)
    var = jnp.ones((c,), jnp.float32)
    scale = gamma / jnp.sqrt(var + eps)
    bias = beta - mean * scale
    return scale, bias


def build_densenet_seg_params(key, *, growth_rate, block_config,
                              num_init_features, bn_size, channels):
    keys = iter(jax.random.split(key, 64))
    params = {}

    # features.conv0 + norm0 (+relu0): fold the BN scale into the conv weight columns.
    w0 = _conv_weight(next(keys), channels, num_init_features, 7, 7)
    s0, b0 = _folded_bn(num_init_features)
    params['conv0_w'] = (w0 * s0[None, :]).astype(jnp.bfloat16)
    params['conv0_b'] = b0.reshape(1, -1)

    nf = num_init_features
    inter = bn_size * growth_rate
    blocks = []
    for bi, nl in enumerate(block_config):
        layers = []
        for li in range(nl):
            cin = nf + li * growth_rate
            s1, b1 = _folded_bn(cin)                       # norm1 -> conv1 prologue
            w1 = _conv_weight(next(keys), cin, inter, 1, 1)
            s2, b2 = _folded_bn(inter)                     # norm2 -> folded into w1 / bias
            w2 = _conv_weight(next(keys), inter, growth_rate, 3, 3)
            layers.append(dict(
                ps1=s1.reshape(1, -1), pb1=b1.reshape(1, -1),
                w1=(w1 * s2[None, :]).astype(jnp.bfloat16),
                eb1=b2.reshape(1, -1),
                w2=w2.astype(jnp.bfloat16)))
        blk = {'layers': layers}
        nf = nf + nl * growth_rate
        if bi != len(block_config) - 1:
            st, bt = _folded_bn(nf)
            wtr = _conv_weight(next(keys), nf, nf // 2, 1, 1)
            blk['transition'] = dict(ps=st.reshape(1, -1), pb=bt.reshape(1, -1),
                                     w=wtr.astype(jnp.bfloat16))
            nf = nf // 2
        blocks.append(blk)
    params['blocks'] = blocks

    # norm5 + seg_classifier (1x1, Cout=1): store the filter as row 0 of an (8, nf) slab so
    # the head kernel emits a lane-dense (8, M) output instead of a (M, 1) one.
    s5, b5 = _folded_bn(nf)
    wseg = _conv_weight(next(keys), nf, 1, 1, 1)           # (nf, 1)
    wt = jnp.zeros((8, nf), jnp.float32).at[0, :].set(wseg[:, 0])
    params['head'] = dict(ps=s5.reshape(1, -1), pb=b5.reshape(1, -1), wt=wt)
    return params


# ---------------------------------------------------------------------------
# Forward pass (matches densenet_seg.forward, eval-mode BN, drop_rate=0)
# ---------------------------------------------------------------------------
def densenet_seg_forward(params, x_nchw):
    x_nhwc = jnp.transpose(x_nchw, (0, 2, 3, 1)).astype(jnp.float32)   # NCHW -> NHWC

    # conv0 (7x7 / stride 2) fused with norm0 + relu0.
    patches, (n, h, w) = _im2col(x_nhwc, 7, 7, stride=2, pad=3)
    x = _matmul_bias_relu(patches, params['conv0_w'], params['conv0_b'])   # (M, C0) f32

    for blk in params['blocks']:
        for layer in blk['layers']:
            # norm1+relu1+conv1 with norm2+relu2 fused into the epilogue.
            h1 = _bnrelu_matmul_bias_relu(x, layer['ps1'], layer['pb1'],
                                          layer['w1'], layer['eb1'])       # (M, 4g) bf16
            p2, _ = _im2col(h1.reshape(n, h, w, h1.shape[1]), 3, 3, stride=1, pad=1)
            hout = _matmul(p2, layer['w2'])                                # (M, g) f32
            # drop_rate = 0 -> dropout is a no-op
            x = jnp.concatenate([x, hout], axis=-1)
        if 'transition' in blk:
            t = blk['transition']
            pool = _pool_matrix(n, h, w)
            x = _transition(x, t['ps'], t['pb'], pool, t['w'])             # (M/4, nf/2)
            h, w = h // 2, w // 2

    # norm5 -> F.relu -> seg_classifier -> relu -> tanh, all fused, lane-dense output.
    hd = params['head']
    out = _head(x, hd['ps'], hd['pb'], hd['wt'])                           # (8, M)
    out = out[0].reshape(n, h, w)                                          # row 0 is real
    return out[:, None, :, :]                                              # NCHW (N,1,H,W)


if __name__ == "__main__":
    key = jax.random.PRNGKey(0)
    k_in, k_par = jax.random.split(key)

    # Small config consistent with the module structure.
    params = build_densenet_seg_params(
        k_par, growth_rate=8, block_config=(2, 2),
        num_init_features=16, bn_size=4, channels=3)

    x = jax.random.normal(k_in, (2, 3, 32, 32), jnp.float32)               # NCHW input

    fwd = jax.jit(densenet_seg_forward)
    out = jax.block_until_ready(fwd(params, x))

    assert out.shape == (2, 1, 8, 8), out.shape
    assert bool(jnp.all(jnp.isfinite(out)))
    print("KERNEL_OK")
</pallas_src>

<mosaic_0001>
module attributes {stable_mosaic.version = 11 : i64} {
  func.func @_mm_bias_relu_kernel(%arg0: i32, %arg1: memref<128x147xbf16, #tpu.memory_space<vmem>>, %arg2: memref<147x16xbf16, #tpu.memory_space<vmem>>, %arg3: memref<1x16xf32, #tpu.memory_space<vmem>>, %arg4: memref<128x16xf32, #tpu.memory_space<vmem>>) attributes {dimension_semantics = [#tpu.dimension_semantics<parallel>], iteration_bounds = array<i64: 4>, scalar_prefetch = 0 : i64, scratch_operands = 0 : i64, tpu.core_type = #tpu.core_type<tc>, window_params = [{transform_indices = @transform_0, window_bounds = array<i64: 128, 147>}, {pipeline_mode = #tpu.pipeline_mode<synchronous>, transform_indices = @transform_1, window_bounds = array<i64: 147, 16>}, {pipeline_mode = #tpu.pipeline_mode<synchronous>, transform_indices = @transform_2, window_bounds = array<i64: 1, 16>}, {transform_indices = @transform_3, window_bounds = array<i64: 128, 16>}]} {
    %c0 = arith.constant 0 : index
    %c0_0 = arith.constant 0 : index
    %0 = vector.load %arg1[%c0, %c0_0] : memref<128x147xbf16, #tpu.memory_space<vmem>>, vector<128x147xbf16>
    %c0_1 = arith.constant 0 : index
    %c0_2 = arith.constant 0 : index
    %1 = vector.load %arg2[%c0_1, %c0_2] : memref<147x16xbf16, #tpu.memory_space<vmem>>, vector<147x16xbf16>
    %cst = arith.constant dense<0.000000e+00> : vector<128x16xf32>
    %2 = tpu.matmul %0, %1, %cst {dimension_numbers = #tpu.dot_dimension_numbers<[1], [0], [0], [1], [0, 0, 1, 1], [], []>} : vector<128x147xbf16>, vector<147x16xbf16>, vector<128x16xf32> -> vector<128x16xf32>
    %c0_3 = arith.constant 0 : index
    %c0_4 = arith.constant 0 : index
    %3 = vector.load %arg3[%c0_3, %c0_4] : memref<1x16xf32, #tpu.memory_space<vmem>>, vector<1x16xf32>
    %4 = vector.broadcast %3 : vector<1x16xf32> to vector<128x16xf32>
    %5 = arith.addf %2, %4 : vector<128x16xf32>
    %cst_5 = arith.constant 0.000000e+00 : f32
    %6 = vector.broadcast %cst_5 : f32 to vector<128x16xf32>
    %7 = arith.maximumf %5, %6 : vector<128x16xf32>
    %c0_6 = arith.constant 0 : index
    %c0_7 = arith.constant 0 : index
    %8 = vector.load %arg4[%c0_6, %c0_7] : memref<128x16xf32, #tpu.memory_space<vmem>>, vector<128x16xf32>
    tpu.vector_store %arg4[%c0_6, %c0_7], %7 {strides = array<i32>} : memref<128x16xf32, #tpu.memory_space<vmem>>, vector<128x16xf32>,
    return
  }
  func.func @transform_0(%arg0: i32) -> (i32, i32) {
    %c0_i32 = arith.constant 0 : i32
    %c0_i32_0 = arith.constant 0 : i32
    return %arg0, %c0_i32 : i32, i32
  }
  func.func @transform_1(%arg0: i32) -> (i32, i32) {
    %c0_i32 = arith.constant 0 : i32
    %c0_i32_0 = arith.constant 0 : i32
    %c0_i32_1 = arith.constant 0 : i32
    return %c0_i32, %c0_i32_0 : i32, i32
  }
  func.func @transform_2(%arg0: i32) -> (i32, i32) {
    %c0_i32 = arith.constant 0 : i32
    %c0_i32_0 = arith.constant 0 : i32
    %c0_i32_1 = arith.constant 0 : i32
    return %c0_i32, %c0_i32_0 : i32, i32
  }
  func.func @transform_3(%arg0: i32) -> (i32, i32) {
    %c0_i32 = arith.constant 0 : i32
    %c0_i32_0 = arith.constant 0 : i32
    return %arg0, %c0_i32 : i32, i32
  }
}

module attributes {stable_mosaic.version = 11 : i64} {
  func.func @_bnrelu_mm_bias_relu_kernel(%arg0: i32, %arg1: memref<128x16xf32, #tpu.memory_space<vmem>>, %arg2: memref<1x16xf32, #tpu.memory_space<vmem>>, %arg3: memref<1x16xf32, #tpu.memory_space<vmem>>, %arg4: memref<16x32xbf16, #tpu.memory_space<vmem>>, %arg5: memref<1x32xf32, #tpu.memory_space<vmem>>, %arg6: memref<128x32xbf16, #tpu.memory_space<vmem>>) attributes {dimension_semantics = [#tpu.dimension_semantics<parallel>], iteration_bounds = array<i64: 4>, scalar_prefetch = 0 : i64, scratch_operands = 0 : i64, tpu.core_type = #tpu.core_type<tc>, window_params = [{transform_indices = @transform_0, window_bounds = array<i64: 128, 16>}, {pipeline_mode = #tpu.pipeline_mode<synchronous>, transform_indices = @transform_1, window_bounds = array<i64: 1, 16>}, {pipeline_mode = #tpu.pipeline_mode<synchronous>, transform_indices = @transform_2, window_bounds = array<i64: 1, 16>}, {pipeline_mode = #tpu.pipeline_mode<synchronous>, transform_indices = @transform_3, window_bounds = array<i64: 16, 32>}, {pipeline_mode = #tpu.pipeline_mode<synchronous>, transform_indices = @transform_4, window_bounds = array<i64: 1, 32>}, {transform_indices = @transform_5, window_bounds = array<i64: 128, 32>}]} {
    %c0 = arith.constant 0 : index
    %c0_0 = arith.constant 0 : index
    %0 = vector.load %arg1[%c0, %c0_0] : memref<128x16xf32, #tpu.memory_space<vmem>>, vector<128x16xf32>
    %c0_1 = arith.constant 0 : index
    %c0_2 = arith.constant 0 : index
    %1 = vector.load %arg2[%c0_1, %c0_2] : memref<1x16xf32, #tpu.memory_space<vmem>>, vector<1x16xf32>
    %2 = vector.broadcast %1 : vector<1x16xf32> to vector<128x16xf32>
    %3 = arith.mulf %0, %2 : vector<128x16xf32>
    %c0_3 = arith.constant 0 : index
    %c0_4 = arith.constant 0 : index
    %4 = vector.load %arg3[%c0_3, %c0_4] : memref<1x16xf32, #tpu.memory_space<vmem>>, vector<1x16xf32>
    %5 = vector.broadcast %4 : vector<1x16xf32> to vector<128x16xf32>
    %6 = arith.addf %3, %5 : vector<128x16xf32>
    %cst = arith.constant 0.000000e+00 : f32
    %7 = vector.broadcast %cst : f32 to vector<128x16xf32>
    %8 = arith.maximumf %6, %7 : vector<128x16xf32>
    %9 = arith.truncf %8 : vector<128x16xf32> to vector<128x16xbf16>
    %c0_5 = arith.constant 0 : index
    %c0_6 = arith.constant 0 : index
    %10 = vector.load %arg4[%c0_5, %c0_6] : memref<16x32xbf16, #tpu.memory_space<vmem>>, vector<16x32xbf16>
    %cst_7 = arith.constant dense<0.000000e+00> : vector<128x32xf32>
    %11 = tpu.matmul %9, %10, %cst_7 {dimension_numbers = #tpu.dot_dimension_numbers<[1], [0], [0], [1], [0, 0, 1, 1], [], []>} : vector<128x16xbf16>, vector<16x32xbf16>, vector<128x32xf32> -> vector<128x32xf32>
    %c0_8 = arith.constant 0 : index
    %c0_9 = arith.constant 0 : index
    %12 = vector.load %arg5[%c0_8, %c0_9] : memref<1x32xf32, #tpu.memory_space<vmem>>, vector<1x32xf32>
    %13 = vector.broadcast %12 : vector<1x32xf32> to vector<128x32xf32>
    %14 = arith.addf %11, %13 : vector<128x32xf32>
    %cst_10 = arith.constant 0.000000e+00 : f32
    %15 = vector.broadcast %cst_10 : f32 to vector<128x32xf32>
    %16 = arith.maximumf %14, %15 : vector<128x32xf32>
    %17 = arith.truncf %16 : vector<128x32xf32> to vector<128x32xbf16>
    %c0_11 = arith.constant 0 : index
    %c0_12 = arith.constant 0 : index
    %18 = vector.load %arg6[%c0_11, %c0_12] : memref<128x32xbf16, #tpu.memory_space<vmem>>, vector<128x32xbf16>
    tpu.vector_store %arg6[%c0_11, %c0_12], %17 {strides = array<i32>} : memref<128x32xbf16, #tpu.memory_space<vmem>>, vector<128x32xbf16>,
    return
  }
  func.func @transform_0(%arg0: i32) -> (i32, i32) {
    %c0_i32 = arith.constant 0 : i32
    %c0_i32_0 = arith.constant 0 : i32
    return %arg0, %c0_i32 : i32, i32
  }
  func.func @transform_1(%arg0: i32) -> (i32, i32) {
    %c0_i32 = arith.constant 0 : i32
    %c0_i32_0 = arith.constant 0 : i32
    %c0_i32_1 = arith.constant 0 : i32
    return %c0_i32, %c0_i32_0 : i32, i32
  }
  func.func @transform_2(%arg0: i32) -> (i32, i32) {
    %c0_i32 = arith.constant 0 : i32
    %c0_i32_0 = arith.constant 0 : i32
    %c0_i32_1 = arith.constant 0 : i32
    return %c0_i32, %c0_i32_0 : i32, i32
  }
  func.func @transform_3(%arg0: i32) -> (i32, i32) {
    %c0_i32 = arith.constant 0 : i32
    %c0_i32_0 = arith.constant 0 : i32
    %c0_i32_1 = arith.constant 0 : i32
    return %c0_i32, %c0_i32_0 : i32, i32
  }
  func.func @transform_4(%arg0: i32) -> (i32, i32) {
    %c0_i32 = arith.constant 0 : i32
    %c0_i32_0 = arith.constant 0 : i32
    %c0_i32_1 = arith.constant 0 : i32
    return %c0_i32, %c0_i32_0 : i32, i32
  }
  func.func @transform_5(%arg0: i32) -> (i32, i32) {
    %c0_i32 = arith.constant 0 : i32
    %c0_i32_0 = arith.constant 0 : i32
    return %arg0, %c0_i32 : i32, i32
  }
}

module attributes {stable_mosaic.version = 11 : i64} {
  func.func @_mm_kernel(%arg0: i32, %arg1: memref<128x288xbf16, #tpu.memory_space<vmem>>, %arg2: memref<288x8xbf16, #tpu.memory_space<vmem>>, %arg3: memref<128x8xf32, #tpu.memory_space<vmem>>) attributes {dimension_semantics = [#tpu.dimension_semantics<parallel>], iteration_bounds = array<i64: 4>, scalar_prefetch = 0 : i64, scratch_operands = 0 : i64, tpu.core_type = #tpu.core_type<tc>, window_params = [{transform_indices = @transform_0, window_bounds = array<i64: 128, 288>}, {pipeline_mode = #tpu.pipeline_mode<synchronous>, transform_indices = @transform_1, window_bounds = array<i64: 288, 8>}, {transform_indices = @transform_2, window_bounds = array<i64: 128, 8>}]} {
    %c0 = arith.constant 0 : index
    %c0_0 = arith.constant 0 : index
    %0 = vector.load %arg1[%c0, %c0_0] : memref<128x288xbf16, #tpu.memory_space<vmem>>, vector<128x288xbf16>
    %c0_1 = arith.constant 0 : index
    %c0_2 = arith.constant 0 : index
    %1 = vector.load %arg2[%c0_1, %c0_2] : memref<288x8xbf16, #tpu.memory_space<vmem>>, vector<288x8xbf16>
    %cst = arith.constant dense<0.000000e+00> : vector<128x8xf32>
    %2 = tpu.matmul %0, %1, %cst {dimension_numbers = #tpu.dot_dimension_numbers<[1], [0], [0], [1], [0, 0, 1, 1], [], []>} : vector<128x288xbf16>, vector<288x8xbf16>, vector<128x8xf32> -> vector<128x8xf32>
    %c0_3 = arith.constant 0 : index
    %c0_4 = arith.constant 0 : index
    %3 = vector.load %arg3[%c0_3, %c0_4] : memref<128x8xf32, #tpu.memory_space<vmem>>, vector<128x8xf32>
    tpu.vector_store %arg3[%c0_3, %c0_4], %2 {strides = array<i32>} : memref<128x8xf32, #tpu.memory_space<vmem>>, vector<128x8xf32>,
    return
  }
  func.func @transform_0(%arg0: i32) -> (i32, i32) {
    %c0_i32 = arith.constant 0 : i32
    %c0_i32_0 = arith.constant 0 : i32
    return %arg0, %c0_i32 : i32, i32
  }
  func.func @transform_1(%arg0: i32) -> (i32, i32) {
    %c0_i32 = arith.constant 0 : i32
    %c0_i32_0 = arith.constant 0 : i32
    %c0_i32_1 = arith.constant 0 : i32
    return %c0_i32, %c0_i32_0 : i32, i32
  }
  func.func @transform_2(%arg0: i32) -> (i32, i32) {
    %c0_i32 = arith.constant 0 : i32
    %c0_i32_0 = arith.constant 0 : i32
    return %arg0, %c0_i32 : i32, i32
  }
}

module attributes {stable_mosaic.version = 11 : i64} {
  func.func @_bnrelu_mm_bias_relu_kernel(%arg0: i32, %arg1: memref<128x24xf32, #tpu.memory_space<vmem>>, %arg2: memref<1x24xf32, #tpu.memory_space<vmem>>, %arg3: memref<1x24xf32, #tpu.memory_space<vmem>>, %arg4: memref<24x32xbf16, #tpu.memory_space<vmem>>, %arg5: memref<1x32xf32, #tpu.memory_space<vmem>>, %arg6: memref<128x32xbf16, #tpu.memory_space<vmem>>) attributes {dimension_semantics = [#tpu.dimension_semantics<parallel>], iteration_bounds = array<i64: 4>, scalar_prefetch = 0 : i64, scratch_operands = 0 : i64, tpu.core_type = #tpu.core_type<tc>, window_params = [{transform_indices = @transform_0, window_bounds = array<i64: 128, 24>}, {pipeline_mode = #tpu.pipeline_mode<synchronous>, transform_indices = @transform_1, window_bounds = array<i64: 1, 24>}, {pipeline_mode = #tpu.pipeline_mode<synchronous>, transform_indices = @transform_2, window_bounds = array<i64: 1, 24>}, {pipeline_mode = #tpu.pipeline_mode<synchronous>, transform_indices = @transform_3, window_bounds = array<i64: 24, 32>}, {pipeline_mode = #tpu.pipeline_mode<synchronous>, transform_indices = @transform_4, window_bounds = array<i64: 1, 32>}, {transform_indices = @transform_5, window_bounds = array<i64: 128, 32>}]} {
    %c0 = arith.constant 0 : index
    %c0_0 = arith.constant 0 : index
    %0 = vector.load %arg1[%c0, %c0_0] : memref<128x24xf32, #tpu.memory_space<vmem>>, vector<128x24xf32>
    %c0_1 = arith.constant 0 : index
    %c0_2 = arith.constant 0 : index
    %1 = vector.load %arg2[%c0_1, %c0_2] : memref<1x24xf32, #tpu.memory_space<vmem>>, vector<1x24xf32>
    %2 = vector.broadcast %1 : vector<1x24xf32> to vector<128x24xf32>
    %3 = arith.mulf %0, %2 : vector<128x24xf32>
    %c0_3 = arith.constant 0 : index
    %c0_4 = arith.constant 0 : index
    %4 = vector.load %arg3[%c0_3, %c0_4] : memref<1x24xf32, #tpu.memory_space<vmem>>, vector<1x24xf32>
    %5 = vector.broadcast %4 : vector<1x24xf32> to vector<128x24xf32>
    %6 = arith.addf %3, %5 : vector<128x24xf32>
    %cst = arith.constant 0.000000e+00 : f32
    %7 = vector.broadcast %cst : f32 to vector<128x24xf32>
    %8 = arith.maximumf %6, %7 : vector<128x24xf32>
    %9 = arith.truncf %8 : vector<128x24xf32> to vector<128x24xbf16>
    %c0_5 = arith.constant 0 : index
    %c0_6 = arith.constant 0 : index
    %10 = vector.load %arg4[%c0_5, %c0_6] : memref<24x32xbf16, #tpu.memory_space<vmem>>, vector<24x32xbf16>
    %cst_7 = arith.constant dense<0.000000e+00> : vector<128x32xf32>
    %11 = tpu.matmul %9, %10, %cst_7 {dimension_numbers = #tpu.dot_dimension_numbers<[1], [0], [0], [1], [0, 0, 1, 1], [], []>} : vector<128x24xbf16>, vector<24x32xbf16>, vector<128x32xf32> -> vector<128x32xf32>
    %c0_8 = arith.constant 0 : index
    %c0_9 = arith.constant 0 : index
    %12 = vector.load %arg5[%c0_8, %c0_9] : memref<1x32xf32, #tpu.memory_space<vmem>>, vector<1x32xf32>
    %13 = vector.broadcast %12 : vector<1x32xf32> to vector<128x32xf32>
    %14 = arith.addf %11, %13 : vector<128x32xf32>
    %cst_10 = arith.constant 0.000000e+00 : f32
    %15 = vector.broadcast %cst_10 : f32 to vector<128x32xf32>
    %16 = arith.maximumf %14, %15 : vector<128x32xf32>
    %17 = arith.truncf %16 : vector<128x32xf32> to vector<128x32xbf16>
    %c0_11 = arith.constant 0 : index
    %c0_12 = arith.constant 0 : index
    %18 = vector.load %arg6[%c0_11, %c0_12] : memref<128x32xbf16, #tpu.memory_space<vmem>>, vector<128x32xbf16>
    tpu.vector_store %arg6[%c0_11, %c0_12], %17 {strides = array<i32>} : memref<128x32xbf16, #tpu.memory_space<vmem>>, vector<128x32xbf16>,
    return
  }
  func.func @transform_0(%arg0: i32) -> (i32, i32) {
    %c0_i32 = arith.constant 0 : i32
    %c0_i32_0 = arith.constant 0 : i32
    return %arg0, %c0_i32 : i32, i32
  }
  func.func @transform_1(%arg0: i32) -> (i32, i32) {
    %c0_i32 = arith.constant 0 : i32
    %c0_i32_0 = arith.constant 0 : i32
    %c0_i32_1 = arith.constant 0 : i32
    return %c0_i32, %c0_i32_0 : i32, i32
  }
  func.func @transform_2(%arg0: i32) -> (i32, i32) {
    %c0_i32 = arith.constant 0 : i32
    %c0_i32_0 = arith.constant 0 : i32
    %c0_i32_1 = arith.constant 0 : i32
    return %c0_i32, %c0_i32_0 : i32, i32
  }
  func.func @transform_3(%arg0: i32) -> (i32, i32) {
    %c0_i32 = arith.constant 0 : i32
    %c0_i32_0 = arith.constant 0 : i32
    %c0_i32_1 = arith.constant 0 : i32
    return %c0_i32, %c0_i32_0 : i32, i32
  }
  func.func @transform_4(%arg0: i32) -> (i32, i32) {
    %c0_i32 = arith.constant 0 : i32
    %c0_i32_0 = arith.constant 0 : i32
    %c0_i32_1 = arith.constant 0 : i32
    return %c0_i32, %c0_i32_0 : i32, i32
  }
  func.func @transform_5(%arg0: i32) -> (i32, i32) {
    %c0_i32 = arith.constant 0 : i32
    %c0_i32_0 = arith.constant 0 : i32
    return %arg0, %c0_i32 : i32, i32
  }
}

module attributes {stable_mosaic.version = 11 : i64} {
  func.func @_transition_kernel(%arg0: memref<512x32xf32, #tpu.memory_space<vmem>>, %arg1: memref<1x32xf32, #tpu.memory_space<vmem>>, %arg2: memref<1x32xf32, #tpu.memory_space<vmem>>, %arg3: memref<128x512xbf16, #tpu.memory_space<vmem>>, %arg4: memref<32x16xbf16, #tpu.memory_space<vmem>>, %arg5: memref<128x16xf32, #tpu.memory_space<vmem>>) attributes {dimension_semantics = [], scalar_prefetch = 0 : i64, scratch_operands = 0 : i64, tpu.core_type = #tpu.core_type<tc>} {
    %c0 = arith.constant 0 : index
    %c0_0 = arith.constant 0 : index
    %0 = vector.load %arg0[%c0, %c0_0] : memref<512x32xf32, #tpu.memory_space<vmem>>, vector<512x32xf32>
    %c0_1 = arith.constant 0 : index
    %c0_2 = arith.constant 0 : index
    %1 = vector.load %arg1[%c0_1, %c0_2] : memref<1x32xf32, #tpu.memory_space<vmem>>, vector<1x32xf32>
    %2 = vector.broadcast %1 : vector<1x32xf32> to vector<512x32xf32>
    %3 = arith.mulf %0, %2 : vector<512x32xf32>
    %c0_3 = arith.constant 0 : index
    %c0_4 = arith.constant 0 : index
    %4 = vector.load %arg2[%c0_3, %c0_4] : memref<1x32xf32, #tpu.memory_space<vmem>>, vector<1x32xf32>
    %5 = vector.broadcast %4 : vector<1x32xf32> to vector<512x32xf32>
    %6 = arith.addf %3, %5 : vector<512x32xf32>
    %cst = arith.constant 0.000000e+00 : f32
    %7 = vector.broadcast %cst : f32 to vector<512x32xf32>
    %8 = arith.maximumf %6, %7 : vector<512x32xf32>
    %c0_5 = arith.constant 0 : index
    %c0_6 = arith.constant 0 : index
    %9 = vector.load %arg3[%c0_5, %c0_6] : memref<128x512xbf16, #tpu.memory_space<vmem>>, vector<128x512xbf16>
    %10 = arith.truncf %8 : vector<512x32xf32> to vector<512x32xbf16>
    %cst_7 = arith.constant dense<0.000000e+00> : vector<128x32xf32>
    %11 = tpu.matmul %9, %10, %cst_7 {dimension_numbers = #tpu.dot_dimension_numbers<[1], [0], [0], [1], [0, 0, 1, 1], [], []>} : vector<128x512xbf16>, vector<512x32xbf16>, vector<128x32xf32> -> vector<128x32xf32>
    %12 = arith.truncf %11 : vector<128x32xf32> to vector<128x32xbf16>
    %c0_8 = arith.constant 0 : index
    %c0_9 = arith.constant 0 : index
    %13 = vector.load %arg4[%c0_8, %c0_9] : memref<32x16xbf16, #tpu.memory_space<vmem>>, vector<32x16xbf16>
    %cst_10 = arith.constant dense<0.000000e+00> : vector<128x16xf32>
    %14 = tpu.matmul %12, %13, %cst_10 {dimension_numbers = #tpu.dot_dimension_numbers<[1], [0], [0], [1], [0, 0, 1, 1], [], []>} : vector<128x32xbf16>, vector<32x16xbf16>, vector<128x16xf32> -> vector<128x16xf32>
    %c0_11 = arith.constant 0 : index
    %c0_12 = arith.constant 0 : index
    %15 = vector.load %arg5[%c0_11, %c0_12] : memref<128x16xf32, #tpu.memory_space<vmem>>, vector<128x16xf32>
    tpu.vector_store %arg5[%c0_11, %c0_12], %14 {strides = array<i32>} : memref<128x16xf32, #tpu.memory_space<vmem>>, vector<128x16xf32>,
    return
  }
}

module attributes {stable_mosaic.version = 11 : i64} {
  func.func @_bnrelu_mm_bias_relu_kernel(%arg0: i32, %arg1: memref<64x16xf32, #tpu.memory_space<vmem>>, %arg2: memref<1x16xf32, #tpu.memory_space<vmem>>, %arg3: memref<1x16xf32, #tpu.memory_space<vmem>>, %arg4: memref<16x32xbf16, #tpu.memory_space<vmem>>, %arg5: memref<1x32xf32, #tpu.memory_space<vmem>>, %arg6: memref<64x32xbf16, #tpu.memory_space<vmem>>) attributes {dimension_semantics = [#tpu.dimension_semantics<parallel>], iteration_bounds = array<i64: 2>, scalar_prefetch = 0 : i64, scratch_operands = 0 : i64, tpu.core_type = #tpu.core_type<tc>, window_params = [{transform_indices = @transform_0, window_bounds = array<i64: 64, 16>}, {pipeline_mode = #tpu.pipeline_mode<synchronous>, transform_indices = @transform_1, window_bounds = array<i64: 1, 16>}, {pipeline_mode = #tpu.pipeline_mode<synchronous>, transform_indices = @transform_2, window_bounds = array<i64: 1, 16>}, {pipeline_mode = #tpu.pipeline_mode<synchronous>, transform_indices = @transform_3, window_bounds = array<i64: 16, 32>}, {pipeline_mode = #tpu.pipeline_mode<synchronous>, transform_indices = @transform_4, window_bounds = array<i64: 1, 32>}, {transform_indices = @transform_5, window_bounds = array<i64: 64, 32>}]} {
    %c0 = arith.constant 0 : index
    %c0_0 = arith.constant 0 : index
    %0 = vector.load %arg1[%c0, %c0_0] : memref<64x16xf32, #tpu.memory_space<vmem>>, vector<64x16xf32>
    %c0_1 = arith.constant 0 : index
    %c0_2 = arith.constant 0 : index
    %1 = vector.load %arg2[%c0_1, %c0_2] : memref<1x16xf32, #tpu.memory_space<vmem>>, vector<1x16xf32>
    %2 = vector.broadcast %1 : vector<1x16xf32> to vector<64x16xf32>
    %3 = arith.mulf %0, %2 : vector<64x16xf32>
    %c0_3 = arith.constant 0 : index
    %c0_4 = arith.constant 0 : index
    %4 = vector.load %arg3[%c0_3, %c0_4] : memref<1x16xf32, #tpu.memory_space<vmem>>, vector<1x16xf32>
    %5 = vector.broadcast %4 : vector<1x16xf32> to vector<64x16xf32>
    %6 = arith.addf %3, %5 : vector<64x16xf32>
    %cst = arith.constant 0.000000e+00 : f32
    %7 = vector.broadcast %cst : f32 to vector<64x16xf32>
    %8 = arith.maximumf %6, %7 : vector<64x16xf32>
    %9 = arith.truncf %8 : vector<64x16xf32> to vector<64x16xbf16>
    %c0_5 = arith.constant 0 : index
    %c0_6 = arith.constant 0 : index
    %10 = vector.load %arg4[%c0_5, %c0_6] : memref<16x32xbf16, #tpu.memory_space<vmem>>, vector<16x32xbf16>
    %cst_7 = arith.constant dense<0.000000e+00> : vector<64x32xf32>
    %11 = tpu.matmul %9, %10, %cst_7 {dimension_numbers = #tpu.dot_dimension_numbers<[1], [0], [0], [1], [0, 0, 1, 1], [], []>} : vector<64x16xbf16>, vector<16x32xbf16>, vector<64x32xf32> -> vector<64x32xf32>
    %c0_8 = arith.constant 0 : index
    %c0_9 = arith.constant 0 : index
    %12 = vector.load %arg5[%c0_8, %c0_9] : memref<1x32xf32, #tpu.memory_space<vmem>>, vector<1x32xf32>
    %13 = vector.broadcast %12 : vector<1x32xf32> to vector<64x32xf32>
    %14 = arith.addf %11, %13 : vector<64x32xf32>
    %cst_10 = arith.constant 0.000000e+00 : f32
    %15 = vector.broadcast %cst_10 : f32 to vector<64x32xf32>
    %16 = arith.maximumf %14, %15 : vector<64x32xf32>
    %17 = arith.truncf %16 : vector<64x32xf32> to vector<64x32xbf16>
    %c0_11 = arith.constant 0 : index
    %c0_12 = arith.constant 0 : index
    %18 = vector.load %arg6[%c0_11, %c0_12] : memref<64x32xbf16, #tpu.memory_space<vmem>>, vector<64x32xbf16>
    tpu.vector_store %arg6[%c0_11, %c0_12], %17 {strides = array<i32>} : memref<64x32xbf16, #tpu.memory_space<vmem>>, vector<64x32xbf16>,
    return
  }
  func.func @transform_0(%arg0: i32) -> (i32, i32) {
    %c0_i32 = arith.constant 0 : i32
    %c0_i32_0 = arith.constant 0 : i32
    return %arg0, %c0_i32 : i32, i32
  }
  func.func @transform_1(%arg0: i32) -> (i32, i32) {
    %c0_i32 = arith.constant 0 : i32
    %c0_i32_0 = arith.constant 0 : i32
    %c0_i32_1 = arith.constant 0 : i32
    return %c0_i32, %c0_i32_0 : i32, i32
  }
  func.func @transform_2(%arg0: i32) -> (i32, i32) {
    %c0_i32 = arith.constant 0 : i32
    %c0_i32_0 = arith.constant 0 : i32
    %c0_i32_1 = arith.constant 0 : i32
    return %c0_i32, %c0_i32_0 : i32, i32
  }
  func.func @transform_3(%arg0: i32) -> (i32, i32) {
    %c0_i32 = arith.constant 0 : i32
    %c0_i32_0 = arith.constant 0 : i32
    %c0_i32_1 = arith.constant 0 : i32
    return %c0_i32, %c0_i32_0 : i32, i32
  }
  func.func @transform_4(%arg0: i32) -> (i32, i32) {
    %c0_i32 = arith.constant 0 : i32
    %c0_i32_0 = arith.constant 0 : i32
    %c0_i32_1 = arith.constant 0 : i32
    return %c0_i32, %c0_i32_0 : i32, i32
  }
  func.func @transform_5(%arg0: i32) -> (i32, i32) {
    %c0_i32 = arith.constant 0 : i32
    %c0_i32_0 = arith.constant 0 : i32
    return %arg0, %c0_i32 : i32, i32
  }
}

module attributes {stable_mosaic.version = 11 : i64} {
  func.func @_mm_kernel(%arg0: i32, %arg1: memref<64x288xbf16, #tpu.memory_space<vmem>>, %arg2: memref<288x8xbf16, #tpu.memory_space<vmem>>, %arg3: memref<64x8xf32, #tpu.memory_space<vmem>>) attributes {dimension_semantics = [#tpu.dimension_semantics<parallel>], iteration_bounds = array<i64: 2>, scalar_prefetch = 0 : i64, scratch_operands = 0 : i64, tpu.core_type = #tpu.core_type<tc>, window_params = [{transform_indices = @transform_0, window_bounds = array<i64: 64, 288>}, {pipeline_mode = #tpu.pipeline_mode<synchronous>, transform_indices = @transform_1, window_bounds = array<i64: 288, 8>}, {transform_indices = @transform_2, window_bounds = array<i64: 64, 8>}]} {
    %c0 = arith.constant 0 : index
    %c0_0 = arith.constant 0 : index
    %0 = vector.load %arg1[%c0, %c0_0] : memref<64x288xbf16, #tpu.memory_space<vmem>>, vector<64x288xbf16>
    %c0_1 = arith.constant 0 : index
    %c0_2 = arith.constant 0 : index
    %1 = vector.load %arg2[%c0_1, %c0_2] : memref<288x8xbf16, #tpu.memory_space<vmem>>, vector<288x8xbf16>
    %cst = arith.constant dense<0.000000e+00> : vector<64x8xf32>
    %2 = tpu.matmul %0, %1, %cst {dimension_numbers = #tpu.dot_dimension_numbers<[1], [0], [0], [1], [0, 0, 1, 1], [], []>} : vector<64x288xbf16>, vector<288x8xbf16>, vector<64x8xf32> -> vector<64x8xf32>
    %c0_3 = arith.constant 0 : index
    %c0_4 = arith.constant 0 : index
    %3 = vector.load %arg3[%c0_3, %c0_4] : memref<64x8xf32, #tpu.memory_space<vmem>>, vector<64x8xf32>
    tpu.vector_store %arg3[%c0_3, %c0_4], %2 {strides = array<i32>} : memref<64x8xf32, #tpu.memory_space<vmem>>, vector<64x8xf32>,
    return
  }
  func.func @transform_0(%arg0: i32) -> (i32, i32) {
    %c0_i32 = arith.constant 0 : i32
    %c0_i32_0 = arith.constant 0 : i32
    return %arg0, %c0_i32 : i32, i32
  }
  func.func @transform_1(%arg0: i32) -> (i32, i32) {
    %c0_i32 = arith.constant 0 : i32
    %c0_i32_0 = arith.constant 0 : i32
    %c0_i32_1 = arith.constant 0 : i32
    return %c0_i32, %c0_i32_0 : i32, i32
  }
  func.func @transform_2(%arg0: i32) -> (i32, i32) {
    %c0_i32 = arith.constant 0 : i32
    %c0_i32_0 = arith.constant 0 : i32
    return %arg0, %c0_i32 : i32, i32
  }
}

module attributes {stable_mosaic.version = 11 : i64} {
  func.func @_bnrelu_mm_bias_relu_kernel(%arg0: i32, %arg1: memref<64x24xf32, #tpu.memory_space<vmem>>, %arg2: memref<1x24xf32, #tpu.memory_space<vmem>>, %arg3: memref<1x24xf32, #tpu.memory_space<vmem>>, %arg4: memref<24x32xbf16, #tpu.memory_space<vmem>>, %arg5: memref<1x32xf32, #tpu.memory_space<vmem>>, %arg6: memref<64x32xbf16, #tpu.memory_space<vmem>>) attributes {dimension_semantics = [#tpu.dimension_semantics<parallel>], iteration_bounds = array<i64: 2>, scalar_prefetch = 0 : i64, scratch_operands = 0 : i64, tpu.core_type = #tpu.core_type<tc>, window_params = [{transform_indices = @transform_0, window_bounds = array<i64: 64, 24>}, {pipeline_mode = #tpu.pipeline_mode<synchronous>, transform_indices = @transform_1, window_bounds = array<i64: 1, 24>}, {pipeline_mode = #tpu.pipeline_mode<synchronous>, transform_indices = @transform_2, window_bounds = array<i64: 1, 24>}, {pipeline_mode = #tpu.pipeline_mode<synchronous>, transform_indices = @transform_3, window_bounds = array<i64: 24, 32>}, {pipeline_mode = #tpu.pipeline_mode<synchronous>, transform_indices = @transform_4, window_bounds = array<i64: 1, 32>}, {transform_indices = @transform_5, window_bounds = array<i64: 64, 32>}]} {
    %c0 = arith.constant 0 : index
    %c0_0 = arith.constant 0 : index
    %0 = vector.load %arg1[%c0, %c0_0] : memref<64x24xf32, #tpu.memory_space<vmem>>, vector<64x24xf32>
    %c0_1 = arith.constant 0 : index
    %c0_2 = arith.constant 0 : index
    %1 = vector.load %arg2[%c0_1, %c0_2] : memref<1x24xf32, #tpu.memory_space<vmem>>, vector<1x24xf32>
    %2 = vector.broadcast %1 : vector<1x24xf32> to vector<64x24xf32>
    %3 = arith.mulf %0, %2 : vector<64x24xf32>
    %c0_3 = arith.constant 0 : index
    %c0_4 = arith.constant 0 : index
    %4 = vector.load %arg3[%c0_3, %c0_4] : memref<1x24xf32, #tpu.memory_space<vmem>>, vector<1x24xf32>
    %5 = vector.broadcast %4 : vector<1x24xf32> to vector<64x24xf32>
    %6 = arith.addf %3, %5 : vector<64x24xf32>
    %cst = arith.constant 0.000000e+00 : f32
    %7 = vector.broadcast %cst : f32 to vector<64x24xf32>
    %8 = arith.maximumf %6, %7 : vector<64x24xf32>
    %9 = arith.truncf %8 : vector<64x24xf32> to vector<64x24xbf16>
    %c0_5 = arith.constant 0 : index
    %c0_6 = arith.constant 0 : index
    %10 = vector.load %arg4[%c0_5, %c0_6] : memref<24x32xbf16, #tpu.memory_space<vmem>>, vector<24x32xbf16>
    %cst_7 = arith.constant dense<0.000000e+00> : vector<64x32xf32>
    %11 = tpu.matmul %9, %10, %cst_7 {dimension_numbers = #tpu.dot_dimension_numbers<[1], [0], [0], [1], [0, 0, 1, 1], [], []>} : vector<64x24xbf16>, vector<24x32xbf16>, vector<64x32xf32> -> vector<64x32xf32>
    %c0_8 = arith.constant 0 : index
    %c0_9 = arith.constant 0 : index
    %12 = vector.load %arg5[%c0_8, %c0_9] : memref<1x32xf32, #tpu.memory_space<vmem>>, vector<1x32xf32>
    %13 = vector.broadcast %12 : vector<1x32xf32> to vector<64x32xf32>
    %14 = arith.addf %11, %13 : vector<64x32xf32>
    %cst_10 = arith.constant 0.000000e+00 : f32
    %15 = vector.broadcast %cst_10 : f32 to vector<64x32xf32>
    %16 = arith.maximumf %14, %15 : vector<64x32xf32>
    %17 = arith.truncf %16 : vector<64x32xf32> to vector<64x32xbf16>
    %c0_11 = arith.constant 0 : index
    %c0_12 = arith.constant 0 : index
    %18 = vector.load %arg6[%c0_11, %c0_12] : memref<64x32xbf16, #tpu.memory_space<vmem>>, vector<64x32xbf16>
    tpu.vector_store %arg6[%c0_11, %c0_12], %17 {strides = array<i32>} : memref<64x32xbf16, #tpu.memory_space<vmem>>, vector<64x32xbf16>,
    return
  }
  func.func @transform_0(%arg0: i32) -> (i32, i32) {
    %c0_i32 = arith.constant 0 : i32
    %c0_i32_0 = arith.constant 0 : i32
    return %arg0, %c0_i32 : i32, i32
  }
  func.func @transform_1(%arg0: i32) -> (i32, i32) {
    %c0_i32 = arith.constant 0 : i32
    %c0_i32_0 = arith.constant 0 : i32
    %c0_i32_1 = arith.constant 0 : i32
    return %c0_i32, %c0_i32_0 : i32, i32
  }
  func.func @transform_2(%arg0: i32) -> (i32, i32) {
    %c0_i32 = arith.constant 0 : i32
    %c0_i32_0 = arith.constant 0 : i32
    %c0_i32_1 = arith.constant 0 : i32
    return %c0_i32, %c0_i32_0 : i32, i32
  }
  func.func @transform_3(%arg0: i32) -> (i32, i32) {
    %c0_i32 = arith.constant 0 : i32
    %c0_i32_0 = arith.constant 0 : i32
    %c0_i32_1 = arith.constant 0 : i32
    return %c0_i32, %c0_i32_0 : i32, i32
  }
  func.func @transform_4(%arg0: i32) -> (i32, i32) {
    %c0_i32 = arith.constant 0 : i32
    %c0_i32_0 = arith.constant 0 : i32
    %c0_i32_1 = arith.constant 0 : i32
    return %c0_i32, %c0_i32_0 : i32, i32
  }
  func.func @transform_5(%arg0: i32) -> (i32, i32) {
    %c0_i32 = arith.constant 0 : i32
    %c0_i32_0 = arith.constant 0 : i32
    return %arg0, %c0_i32 : i32, i32
  }
}

module attributes {stable_mosaic.version = 11 : i64} {
  func.func @_head_kernel(%arg0: memref<128x32xf32, #tpu.memory_space<vmem>>, %arg1: memref<1x32xf32, #tpu.memory_space<vmem>>, %arg2: memref<1x32xf32, #tpu.memory_space<vmem>>, %arg3: memref<8x32xf32, #tpu.memory_space<vmem>>, %arg4: memref<8x128xf32, #tpu.memory_space<vmem>>) attributes {dimension_semantics = [], scalar_prefetch = 0 : i64, scratch_operands = 0 : i64, tpu.core_type = #tpu.core_type<tc>} {
    %c0 = arith.constant 0 : index
    %c0_0 = arith.constant 0 : index
    %0 = vector.load %arg0[%c0, %c0_0] : memref<128x32xf32, #tpu.memory_space<vmem>>, vector<128x32xf32>
    %c0_1 = arith.constant 0 : index
    %c0_2 = arith.constant 0 : index
    %1 = vector.load %arg1[%c0_1, %c0_2] : memref<1x32xf32, #tpu.memory_space<vmem>>, vector<1x32xf32>
    %2 = vector.broadcast %1 : vector<1x32xf32> to vector<128x32xf32>
    %3 = arith.mulf %0, %2 : vector<128x32xf32>
    %c0_3 = arith.constant 0 : index
    %c0_4 = arith.constant 0 : index
    %4 = vector.load %arg2[%c0_3, %c0_4] : memref<1x32xf32, #tpu.memory_space<vmem>>, vector<1x32xf32>
    %5 = vector.broadcast %4 : vector<1x32xf32> to vector<128x32xf32>
    %6 = arith.addf %3, %5 : vector<128x32xf32>
    %cst = arith.constant 0.000000e+00 : f32
    %7 = vector.broadcast %cst : f32 to vector<128x32xf32>
    %8 = arith.maximumf %6, %7 : vector<128x32xf32>
    %c0_5 = arith.constant 0 : index
    %c0_6 = arith.constant 0 : index
    %9 = vector.load %arg3[%c0_5, %c0_6] : memref<8x32xf32, #tpu.memory_space<vmem>>, vector<8x32xf32>
    %cst_7 = arith.constant dense<0.000000e+00> : vector<8x128xf32>
    %10 = tpu.matmul %9, %8, %cst_7 {dimension_numbers = #tpu.dot_dimension_numbers<[1], [1], [0], [0], [0, 0, 1, 0], [], []>} : vector<8x32xf32>, vector<128x32xf32>, vector<8x128xf32> -> vector<8x128xf32>
    %cst_8 = arith.constant 0.000000e+00 : f32
    %11 = vector.broadcast %cst_8 : f32 to vector<8x128xf32>
    %12 = arith.maximumf %10, %11 : vector<8x128xf32>
    %13 = math.tanh %12 : vector<8x128xf32>
    %c0_9 = arith.constant 0 : index
    %c0_10 = arith.constant 0 : index
    %14 = vector.load %arg4[%c0_9, %c0_10] : memref<8x128xf32, #tpu.memory_space<vmem>>, vector<8x128xf32>
    tpu.vector_store %arg4[%c0_9, %c0_10], %13 {strides = array<i32>} : memref<8x128xf32, #tpu.memory_space<vmem>>, vector<8x128xf32>,
    return
  }
}

</mosaic_0001>

<bundles_post_ra>
// kernel: densenet_seg_forward.12
= control target key start
LH: loop header
LB: loop body
LE: loop exit
PB: predicated region body
PF: predicated region fallthrough
CT: control target
= control target key end

     0   :  { %s736_s18 = smov 0   ;;  %s883_s0 = inlined_call_operand.vmem [shape: f32[512,16], index: 0, kind: input, shape index: {}]   ;;  %s884_s1 = inlined_call_operand.vmem [shape: f32[1,16], index: 1, kind: input, shape index: {}]   ;;  %s885_s2 = inlined_call_operand.vmem [shape: f32[1,16], index: 2, kind: input, shape index: {}]   ;;  %s886_s3 = inlined_call_operand.vmem [shape: bf16[16,32], index: 3, kind: input, shape index: {}]   ;;  %s887_s4 = inlined_call_operand.vmem [shape: f32[1,32], index: 4, kind: input, shape index: {}]   ;;  %s888_s5 = inlined_call_operand.vmem [shape: bf16[512,32], index: 5, kind: output, shape index: {}]  }
   0x1 LB: > { %s605_s19 = sadd.s32 4294967295, %s704_s18   ;;  %p609_p0 = scmp.ge.s32.totalorder %s704_s18, 1  ;;  %s704_s18 = sphi %s736_s18, %s15_s18  }
   0x2   : > { %p188_p1 = scmp.lt.s32.totalorder %s704_s18, 5 }
   0x4   : > { %p189_p2 = pnand %p609_p0, %p188_p1 }
   0x5   : > { %v697_v0 = vld [vmem:[%s886_s3] sm:$0xff] (!%p189_p2)   ;;  %s610_s22 = sshll.u32 (!%p189_p2), %s605_s19, 4  ;;  %vm330_vm0 = vcmask (!%p189_p2), 130048   ;;  %vm532_vm1 = vcmask (!%p189_p2), 257024  }
   0x6   : > { %192 = sbr.rel (%p189_p2) target bundleno = 258 (0x102), region = 40  ;;  %p217_p3 = scmp.lt.s32.totalorder (!%p189_p2), %s610_s22, 63  ;;  %669 = vmatprep.subr.bf16.mxu0 (!%p189_p2), %v697_v0  ;;  %687 = vmatprep.subr.bf16.mxu1 (!%p189_p2), %v697_v0  ;;  %v753_v1 = vld [vmem:[%s884_s1] ss:$0 sm:$0xff] (!%p189_p2) }
   0x7   : > { %670 = vmatpush3.bf16.msra.mxu0 (!%p189_p2), %v697_v0  ;;  %688 = vmatpush3.bf16.msra.mxu1 (!%p189_p2), %v697_v0  ;;  %v763_v2 = vld [vmem:[%s885_s2] ss:$0 sm:$0xff] (!%p189_p2) }
   0xd   : > { %s890_s22 = smov (!%p217_p3, %s610_s22), 63 }
   0xe   : > { %s611_s23 = sshll.u32 %s890_s22, 3  ;;  %s613_s8 = sshll.u32 %s890_s22, 2 }
   0xf   : > { %s758_s28 = scalar_lea.vmem %s883_s0, %s611_s23  ;;  %s834_s11 = scalar_lea.vmem %s888_s5, %s613_s8 }
  0x10   : > { %v229_v3 = vld [vmem:[%s758_s28] sm:$0xff]  ;;  %v230_v4 = vld [vmem:[%s758_s28 + $0x8] sm:$0xff]  ;;  %v231_v10 = vld [vmem:[%s758_s28 + $0x10] sm:$0xff] }
  0x11   : > { %v237_v5 = vld [vmem:[%s758_s28 + $0x40] sm:$0xff]  ;;  %v252_v6 = vmul.f32 %v753_v1, %v229_v3  ;;  %v253_v7 = vmul.f32 %v753_v1, %v230_v4  ;;  %v238_v8 = vld [vmem:[%s758_s28 + $0x48] sm:$0xff]  ;;  %v232_v11 = vld [vmem:[%s758_s28 + $0x18] sm:$0xff]  ;;  %v254_v13 = vmul.f32 %v753_v1, %v231_v10 }
  0x12   : > { %v260_v9 = vmul.f32 %v753_v1, %v237_v5  ;;  %v261_v12 = vmul.f32 %v753_v1, %v238_v8  ;;  %v255_v14 = vmul.f32 %v753_v1, %v232_v11  ;;  %v239_v15 = vld [vmem:[%s758_s28 + $0x50] sm:$0xff]  ;;  %v240_v16 = vld [vmem:[%s758_s28 + $0x58] sm:$0xff]  ;;  %v233_v25 = vld [vmem:[%s758_s28 + $0x20] sm:$0xff] }
  0x13   : > { %v275_v17 = vadd.f32 %v763_v2, %v252_v6  ;;  %v276_v18 = vadd.f32 %v763_v2, %v253_v7  ;;  %v262_v20 = vmul.f32 %v753_v1, %v239_v15  ;;  %v277_v22 = vadd.f32 %v763_v2, %v254_v13  ;;  %v234_v26 = vld [vmem:[%s758_s28 + $0x28] sm:$0xff]  ;;  %v241_v31 = vld [vmem:[%s758_s28 + $0x60] sm:$0xff]  ;;  %v235_v37 = vld [vmem:[%s758_s28 + $0x30] sm:$0xff] }
  0x14   : > { %v283_v19 = vadd.f32 %v763_v2, %v260_v9  ;;  %v284_v21 = vadd.f32 %v763_v2, %v261_v12  ;;  %v278_v23 = vadd.f32 %v763_v2, %v255_v14  ;;  %v263_v24 = vmul.f32 %v753_v1, %v240_v16  ;;  %v242_v36 = vld [vmem:[%s758_s28 + $0x68] sm:$0xff]  ;;  %v236_v42 = vld [vmem:[%s758_s28 + $0x38] sm:$0xff]  ;;  %v243_v51 = vld [vmem:[%s758_s28 + $0x70] sm:$0xff] }
  0x15   : > { %v291_v27 = vmax.f32 %v275_v17, 0.0  ;;  %v292_v28 = vmax.f32 %v276_v18, 0.0  ;;  %v285_v30 = vadd.f32 %v763_v2, %v262_v20  ;;  %v293_v33 = vmax.f32 %v277_v22, 0.0  ;;  %v244_v52 = vld [vmem:[%s758_s28 + $0x78] sm:$0xff]  ;;  %v824_v12 = vld [vmem:[%s887_s4] ss:$0 sm:$0xff] }
  0x16   : > { %v299_v29 = vmax.f32 %v283_v19, 0.0  ;;  %v300_v32 = vmax.f32 %v284_v21, 0.0  ;;  %v294_v34 = vmax.f32 %v278_v23, 0.0  ;;  %v286_v35 = vadd.f32 %v763_v2, %v263_v24 }
  0x17   : > { %v307_v38 = vpack.c.bf16 %v292_v28, %v291_v27  ;;  %v301_v39 = vmax.f32 %v285_v30, 0.0  ;;  %v256_v40 = vmul.f32 %v753_v1, %v233_v25  ;;  %v257_v41 = vmul.f32 %v753_v1, %v234_v26 }
  0x18   : > { %v311_v43 = vpack.c.bf16 %v300_v32, %v299_v29  ;;  %v308_v44 = vpack.c.bf16 %v294_v34, %v293_v33  ;;  %v302_v45 = vmax.f32 %v286_v35, 0.0  ;;  %v264_v46 = vmul.f32 %v753_v1, %v241_v31 }
  0x19   : > { %671 = vmatprep.mubr.msk.bf16.mxu0 %vm330_vm0, %v307_v38  ;;  %v279_v47 = vadd.f32 %v763_v2, %v256_v40  ;;  %v280_v48 = vadd.f32 %v763_v2, %v257_v41  ;;  %v265_v49 = vmul.f32 %v753_v1, %v242_v36  ;;  %v258_v50 = vmul.f32 %v753_v1, %v235_v37 }
  0x1a   : > { %679 = vmatprep.mubr.msk.bf16.mxu1 %vm330_vm0, %v311_v43  ;;  %672 = vmatmul.mubr.msk.bf16.vlgmr.msra.gmra.mrb[0].mxu0 %vm330_vm0, %v308_v44  ;;  %v312_v53 = vpack.c.bf16 %v302_v45, %v301_v39  ;;  %v287_v54 = vadd.f32 %v763_v2, %v264_v46  ;;  %v259_v55 = vmul.f32 %v753_v1, %v236_v42 }
  0x1b   : > { %v295_v56 = vmax.f32 %v279_v47, 0.0  ;;  %v296_v57 = vmax.f32 %v280_v48, 0.0  ;;  %v288_v58 = vadd.f32 %v763_v2, %v265_v49  ;;  %v281_v59 = vadd.f32 %v763_v2, %v258_v50 }
  0x1c   : > { %680 = vmatmul.mubr.msk.bf16.vlgmr.msra.gmra.mrb[0].mxu1 %vm330_vm0, %v312_v53  ;;  %v303_v60 = vmax.f32 %v287_v54, 0.0  ;;  %v282_v61 = vadd.f32 %v763_v2, %v259_v55  ;;  %v266_v62 = vmul.f32 %v753_v1, %v243_v51  ;;  %v267_v63 = vmul.f32 %v753_v1, %v244_v52 }
  0x1d   : > { %v309_v0 = vpack.c.bf16 %v296_v57, %v295_v56  ;;  %v304_v3 = vmax.f32 %v288_v58, 0.0  ;;  %v297_v4 = vmax.f32 %v281_v59, 0.0 }
  0x1e   : > { %v298_v5 = vmax.f32 %v282_v61, 0.0  ;;  %v289_v6 = vadd.f32 %v763_v2, %v266_v62  ;;  %v290_v7 = vadd.f32 %v763_v2, %v267_v63 }
  0x1f   : > { %675 = vmatprep.mubr.msk.bf16.mxu0 %vm330_vm0, %v309_v0  ;;  %v313_v8 = vpack.c.bf16 %v304_v3, %v303_v60 }
  0x20   : > { %v310_v9 = vpack.c.bf16 %v298_v5, %v297_v4  ;;  %v305_v10 = vmax.f32 %v289_v6, 0.0  ;;  %v306_v11 = vmax.f32 %v290_v7, 0.0 }
  0x21   : > { %683 = vmatprep.mubr.msk.bf16.mxu1 %vm330_vm0, %v313_v8 }
  0x22   : > { %676 = vmatmul.mubr.msk.bf16.gmra.mrb[4].mxu0 %vm330_vm0, %v310_v9  ;;  %v314_v1 = vpack.c.bf16 %v306_v11, %v305_v10 }
  0x24   : > { %684 = vmatmul.mubr.msk.bf16.gmra.mrb[4].mxu1 %vm330_vm0, %v314_v1 }
  0xed   : > { %v673_v13 = vpop.f32.mrb[0].mxu0 }
  0xee   : > { %v398_v2 = vadd.f32 %v673_v13, %v824_v12  ;;  %v389_v14 = vpop.f32.mrb[1].mxu0 }
  0xef   : > { %v681_v15 = vpop.f32.mrb[0].mxu1  ;;  %v390_v16 = vadd.f32 %v824_v12, %v389_v14  ;;  %v674_v17 = vpop.f32.mrb[2].mxu0 }
  0xf0   : > { %v454_v18 = vmax.f32 %v398_v2, 0.0  ;;  %v430_v19 = vadd.f32 %v681_v15, %v824_v12  ;;  %v421_v20 = vpop.f32.mrb[1].mxu1  ;;  %v401_v21 = vadd.f32 %v674_v17, %v824_v12  ;;  %v392_v22 = vpop.f32.mrb[3].mxu0 }
  0xf1   : > { %v452_v23 = vmax.f32 %v390_v16, 0.0  ;;  %v422_v24 = vadd.f32 %v824_v12, %v421_v20  ;;  %v682_v25 = vpop.f32.mrb[2].mxu1  ;;  %v393_v26 = vadd.f32 %v824_v12, %v392_v22 }
  0xf2   : > { %v646_v27 = vpack.c.bf16 %v454_v18, %v454_v18  ;;  %v462_v28 = vmax.f32 %v430_v19, 0.0  ;;  %v455_v29 = vmax.f32 %v401_v21, 0.0  ;;  %v433_v30 = vadd.f32 %v682_v25, %v824_v12  ;;  %v424_v31 = vpop.f32.mrb[3].mxu1 }
  0xf3   : > { %v644_v32 = vpack.c.bf16 %v452_v23, %v452_v23  ;;  %v460_v33 = vmax.f32 %v422_v24, 0.0  ;;  %v453_v34 = vmax.f32 %v393_v26, 0.0  ;;  %v425_v35 = vadd.f32 %v824_v12, %v424_v31 }
  0xf4   : > { %535 = vst.msk [vmem:[%s834_s11 + $0x8] sm:$0xf] %vm532_vm1, %v646_v27  ;;  %v654_v36 = vpack.c.bf16 %v462_v28, %v462_v28  ;;  %v647_v37 = vpack.c.bf16 %v455_v29, %v455_v29  ;;  %v463_v38 = vmax.f32 %v433_v30, 0.0 }
  0xf5   : > { %533 = vst.msk [vmem:[%s834_s11] sm:$0xf] %vm532_vm1, %v644_v32  ;;  %v652_v39 = vpack.c.bf16 %v460_v33, %v460_v33  ;;  %v645_v40 = vpack.c.bf16 %v453_v34, %v453_v34  ;;  %v461_v41 = vmax.f32 %v425_v35, 0.0  ;;  %v677_v42 = vpop.f32.mrb[4].mxu0 }
  0xf6   : > { %543 = vst.msk [vmem:[%s834_s11 + $0x28] sm:$0xf] %vm532_vm1, %v654_v36  ;;  %536 = vst.msk [vmem:[%s834_s11 + $0xc] sm:$0xf] %vm532_vm1, %v647_v37  ;;  %v655_v43 = vpack.c.bf16 %v463_v38, %v463_v38  ;;  %v414_v44 = vadd.f32 %v677_v42, %v824_v12  ;;  %v405_v45 = vpop.f32.mrb[5].mxu0 }
  0xf7   : > { %541 = vst.msk [vmem:[%s834_s11 + $0x20] sm:$0xf] %vm532_vm1, %v652_v39  ;;  %534 = vst.msk [vmem:[%s834_s11 + $0x4] sm:$0xf] %vm532_vm1, %v645_v40  ;;  %v653_v46 = vpack.c.bf16 %v461_v41, %v461_v41  ;;  %v685_v47 = vpop.f32.mrb[4].mxu1  ;;  %v406_v48 = vadd.f32 %v824_v12, %v405_v45  ;;  %v678_v49 = vpop.f32.mrb[6].mxu0 }
  0xf8   : > { %544 = vst.msk [vmem:[%s834_s11 + $0x2c] sm:$0xf] %vm532_vm1, %v655_v43  ;;  %v458_v50 = vmax.f32 %v414_v44, 0.0  ;;  %v446_v51 = vadd.f32 %v685_v47, %v824_v12  ;;  %v437_v52 = vpop.f32.mrb[5].mxu1  ;;  %v417_v53 = vadd.f32 %v678_v49, %v824_v12  ;;  %v408_v54 = vpop.f32.mrb[7].mxu0 }
  0xf9   : > { %542 = vst.msk [vmem:[%s834_s11 + $0x24] sm:$0xf] %vm532_vm1, %v653_v46  ;;  %v456_v55 = vmax.f32 %v406_v48, 0.0  ;;  %v438_v56 = vadd.f32 %v824_v12, %v437_v52  ;;  %v686_v57 = vpop.f32.mrb[6].mxu1  ;;  %v409_v58 = vadd.f32 %v824_v12, %v408_v54 }
  0xfa   : > { %v650_v59 = vpack.c.bf16 %v458_v50, %v458_v50  ;;  %v466_v60 = vmax.f32 %v446_v51, 0.0  ;;  %v459_v61 = vmax.f32 %v417_v53, 0.0  ;;  %v449_v62 = vadd.f32 %v686_v57, %v824_v12  ;;  %v440_v63 = vpop.f32.mrb[7].mxu1 }
  0xfb   : > { %v648_v0 = vpack.c.bf16 %v456_v55, %v456_v55  ;;  %v464_v3 = vmax.f32 %v438_v56, 0.0  ;;  %v457_v4 = vmax.f32 %v409_v58, 0.0  ;;  %v441_v5 = vadd.f32 %v824_v12, %v440_v63 }
  0xfc   : > { %539 = vst.msk [vmem:[%s834_s11 + $0x18] sm:$0xf] %vm532_vm1, %v650_v59  ;;  %v658_v6 = vpack.c.bf16 %v466_v60, %v466_v60  ;;  %v651_v7 = vpack.c.bf16 %v459_v61, %v459_v61  ;;  %v467_v8 = vmax.f32 %v449_v62, 0.0 }
  0xfd   : > { %537 = vst.msk [vmem:[%s834_s11 + $0x10] sm:$0xf] %vm532_vm1, %v648_v0  ;;  %v656_v9 = vpack.c.bf16 %v464_v3, %v464_v3  ;;  %v649_v10 = vpack.c.bf16 %v457_v4, %v457_v4  ;;  %v465_v11 = vmax.f32 %v441_v5, 0.0 }
  0xfe   : > { %547 = vst.msk [vmem:[%s834_s11 + $0x38] sm:$0xf] %vm532_vm1, %v658_v6  ;;  %540 = vst.msk [vmem:[%s834_s11 + $0x1c] sm:$0xf] %vm532_vm1, %v651_v7  ;;  %v659_v1 = vpack.c.bf16 %v467_v8, %v467_v8 }
  0xff   : > { %545 = vst.msk [vmem:[%s834_s11 + $0x30] sm:$0xf] %vm532_vm1, %v656_v9  ;;  %538 = vst.msk [vmem:[%s834_s11 + $0x14] sm:$0xf] %vm532_vm1, %v649_v10  ;;  %v657_v12 = vpack.c.bf16 %v465_v11, %v465_v11 }
 0x100   : > { %548 = vst.msk [vmem:[%s834_s11 + $0x3c] sm:$0xf] %vm532_vm1, %v659_v1 }
 0x101   : > { %546 = vst.msk [vmem:[%s834_s11 + $0x34] sm:$0xf] %vm532_vm1, %v657_v12 }
 0x102 PF: > { %s15_s18 = sadd.s32 1, %s704_s18  }
 0x103   : > { %p12_p4 = scmp.ge.s32.totalorder %s15_s18, 6  }
 0x105   :  { %14 = sbr.rel (!%p12_p4) target bundleno = 1 (0x1), region = 70 }

// kernel: densenet_seg_forward.11
= control target key start
LH: loop header
LB: loop body
LE: loop exit
PB: predicated region body
PF: predicated region fallthrough
CT: control target
= control target key end

     0   :  { %s709_s12 = smov 0   ;;  %s844_s0 = inlined_call_operand.vmem [shape: bf16[512,147], index: 0, kind: input, shape index: {}]   ;;  %s845_s1 = inlined_call_operand.vmem [shape: bf16[147,16], index: 1, kind: input, shape index: {}]   ;;  %s846_s2 = inlined_call_operand.vmem [shape: f32[1,16], index: 2, kind: input, shape index: {}]   ;;  %s847_s3 = inlined_call_operand.vmem [shape: f32[512,16], index: 3, kind: output, shape index: {}]  }
   0x1 LB: > { %s567_s13 = sadd.s32 4294967295, %s685_s12   ;;  %p571_p0 = scmp.ge.s32.totalorder %s685_s12, 1  ;;  %s685_s12 = sphi %s709_s12, %s13_s12  }
   0x2   : > { %p139_p1 = scmp.lt.s32.totalorder %s685_s12, 5 }
   0x4   : > { %p140_p2 = pnand %p571_p0, %p139_p1 }
   0x5   : > { %v645_v0 = vld [vmem:[%s845_s1] sm:$0xff] (!%p140_p2)   ;;  %v687_v1 = vmov (!%p140_p2), 0   ;;  %v646_v2 = vld [vmem:[%s845_s1 + $0x8] sm:$0xff] (!%p140_p2)   ;;  %v647_v3 = vld [vmem:[%s845_s1 + $0x10] sm:$0xff] (!%p140_p2)   ;;  %s572_s20 = sshll.u32 (!%p140_p2), %s567_s13, 4  ;;  %vm349_vm0 = vcmask (!%p140_p2), 154624  }
   0x6   : > { %143 = sbr.rel (%p140_p2) target bundleno = 289 (0x121), region = 32  ;;  %381 = vmatprep.subr.bf16.mxu0 (!%p140_p2), %v687_v1  ;;  %615 = vmatprep.subr.bf16.mxu1 (!%p140_p2), %v687_v1  ;;  %p165_p3 = scmp.lt.s32.totalorder (!%p140_p2), %s572_s20, 63  ;;  %v648_v4 = vld [vmem:[%s845_s1 + $0x18] sm:$0xff] (!%p140_p2)   ;;  %v649_v5 = vld [vmem:[%s845_s1 + $0x20] sm:$0xff] (!%p140_p2)   ;;  %v650_v8 = vld [vmem:[%s845_s1 + $0x28] sm:$0xff] (!%p140_p2)   ;;  %vm374_vm1 = vcmask (!%p140_p2), 1040384  }
   0x7   : > { %382 = vmatpush1.bf16.msra.mxu0 (!%p140_p2), %v645_v0  ;;  %625 = vmatpush1.bf16.msra.mxu1 (!%p140_p2), %v645_v0  ;;  %v651_v9 = vld [vmem:[%s845_s1 + $0x30] sm:$0xff] (!%p140_p2)   ;;  %v652_v10 = vld [vmem:[%s845_s1 + $0x38] sm:$0xff] (!%p140_p2)   ;;  %vm375_vm2 = vcmask (!%p140_p2), 1041408   ;;  %v688_v11 = vmov (!%p140_p2), 65535   ;;  %v653_v13 = vld [vmem:[%s845_s1 + $0x40] sm:$0xff] (!%p140_p2)   ;;  %vm494_vm3 = vcmask (!%p140_p2), 130048  }
   0x8   : > { %383 = vmatprep.subr.bf16.mxu0 (!%p140_p2), %v687_v1  ;;  %616 = vmatprep.subr.bf16.mxu1 (!%p140_p2), %v687_v1  ;;  %v376_v12 = vsel (!%p140_p2), %vm374_vm1, 4294967295, %v688_v11  ;;  %v654_v14 = vld [vmem:[%s845_s1 + $0x48] ss:$0 sps:$4 sm:$0x33] (!%p140_p2)   ;;  %v784_v31 = vld [vmem:[%s846_s2] ss:$0 sm:$0xff] (!%p140_p2) }
   0x9   : > { %v377_v15 = vsel (!%p140_p2), %vm375_vm2, %v376_v12, 0 }
   0xa   : > { %v379_v16 = vand.u32 (!%p140_p2), %v654_v14, %v377_v15 }
   0xb   : > { %384 = vmatpush1.bf16.msra.mxu0 (!%p140_p2), %v646_v2  ;;  %626 = vmatpush1.bf16.msra.mxu1 (!%p140_p2), %v646_v2 }
   0xc   : > { %385 = vmatprep.subr.bf16.mxu0 (!%p140_p2), %v687_v1  ;;  %617 = vmatprep.subr.bf16.mxu1 (!%p140_p2), %v687_v1 }
   0xd   : > { %s849_s20 = smov (!%p165_p3, %s572_s20), 63 }
   0xe   : > { %s614_s23 = sshll.u32 %s849_s20, 3 }
   0xf   : > { %386 = vmatpush1.bf16.msra.mxu0 %v647_v3  ;;  %627 = vmatpush1.bf16.msra.mxu1 %v647_v3  ;;  %s737_s26 = scalar_lea.vmem %s844_s0, %s614_s23  ;;  %s793_s17 = scalar_lea.vmem %s847_s3, %s614_s23 }
  0x10   : > { %387 = vmatprep.subr.bf16.mxu0 %v687_v1  ;;  %618 = vmatprep.subr.bf16.mxu1 %v687_v1  ;;  %v657_v6 = vld [vmem:[%s737_s26 + $0x4] ss:$8 sps:$4 sm:$0xff]   ;;  %v655_v17 = vld [vmem:[%s737_s26] ss:$8 sps:$4 sm:$0xff]   ;;  %v661_v19 = vld [vmem:[%s737_s26 + $0x14] ss:$8 sps:$4 sm:$0xff]  }
  0x11   : > { %v660_v7 = vld [vmem:[%s737_s26 + $0x44] ss:$8 sps:$4 sm:$0xff]   ;;  %604 = vmatprep.mubr.msk.bf16.mxu0 %vm349_vm0, %v657_v6  ;;  %v658_v18 = vld [vmem:[%s737_s26 + $0x40] ss:$8 sps:$4 sm:$0xff]   ;;  %v663_v20 = vld [vmem:[%s737_s26 + $0x54] ss:$8 sps:$4 sm:$0xff]  }
  0x12   : > { %608 = vmatprep.mubr.msk.bf16.mxu1 %vm349_vm0, %v660_v7  ;;  %v665_v21 = vld [vmem:[%s737_s26 + $0x10] ss:$8 sps:$4 sm:$0xff]   ;;  %v667_v23 = vld [vmem:[%s737_s26 + $0x24] ss:$8 sps:$4 sm:$0xff]   ;;  %v671_v25 = vld [vmem:[%s737_s26 + $0x20] ss:$8 sps:$4 sm:$0xff]  }
  0x13   : > { %388 = vmatpush1.bf16.msra.mxu0 %v648_v4  ;;  %628 = vmatpush1.bf16.msra.mxu1 %v648_v4  ;;  %v666_v22 = vld [vmem:[%s737_s26 + $0x50] ss:$8 sps:$4 sm:$0xff]   ;;  %v669_v24 = vld [vmem:[%s737_s26 + $0x64] ss:$8 sps:$4 sm:$0xff]   ;;  %v672_v26 = vld [vmem:[%s737_s26 + $0x60] ss:$8 sps:$4 sm:$0xff]  }
  0x14   : > { %389 = vmatprep.subr.bf16.mxu0 %v687_v1  ;;  %619 = vmatprep.subr.bf16.mxu1 %v687_v1  ;;  %v673_v27 = vld [vmem:[%s737_s26 + $0x34] ss:$8 sps:$4 sm:$0xff]   ;;  %v677_v29 = vld [vmem:[%s737_s26 + $0x30] ss:$8 sps:$4 sm:$0xff]  }
  0x15   : > { %v675_v28 = vld [vmem:[%s737_s26 + $0x74] ss:$8 sps:$4 sm:$0xff]   ;;  %v678_v30 = vld [vmem:[%s737_s26 + $0x70] ss:$8 sps:$4 sm:$0xff]  }
  0x17   : > { %390 = vmatpush1.bf16.msra.mxu0 %v649_v5  ;;  %629 = vmatpush1.bf16.msra.mxu1 %v649_v5 }
  0x18   : > { %391 = vmatprep.subr.bf16.mxu0 %v687_v1  ;;  %620 = vmatprep.subr.bf16.mxu1 %v687_v1 }
  0x1b   : > { %392 = vmatpush1.bf16.msra.mxu0 %v650_v8  ;;  %630 = vmatpush1.bf16.msra.mxu1 %v650_v8 }
  0x1c   : > { %393 = vmatprep.subr.bf16.mxu0 %v687_v1  ;;  %621 = vmatprep.subr.bf16.mxu1 %v687_v1 }
  0x1f   : > { %394 = vmatpush1.bf16.msra.mxu0 %v651_v9  ;;  %631 = vmatpush1.bf16.msra.mxu1 %v651_v9 }
  0x20   : > { %395 = vmatprep.subr.bf16.mxu0 %v687_v1  ;;  %622 = vmatprep.subr.bf16.mxu1 %v687_v1 }
  0x23   : > { %396 = vmatpush1.bf16.msra.mxu0 %v652_v10  ;;  %632 = vmatpush1.bf16.msra.mxu1 %v652_v10 }
  0x24   : > { %397 = vmatprep.subr.bf16.mxu0 %v687_v1  ;;  %623 = vmatprep.subr.bf16.mxu1 %v687_v1 }
  0x27   : > { %398 = vmatpush1.bf16.msra.mxu0 %v653_v13  ;;  %633 = vmatpush1.bf16.msra.mxu1 %v653_v13 }
  0x28   : > { %399 = vmatprep.subr.bf16.mxu0 %v687_v1  ;;  %624 = vmatprep.subr.bf16.mxu1 %v687_v1 }
  0x2b   : > { %400 = vmatpush1.bf16.msra.mxu0 %v379_v16  ;;  %634 = vmatpush1.bf16.msra.mxu1 %v379_v16 }
  0x2e   : > { %414 = vmatmul.mubr.bf16.vlgmr.msra.gmra.mrb[0].mxu0 %v655_v17  ;;  %446 = vmatmul.mubr.bf16.vlgmr.msra.gmra.mrb[0].mxu1 %v658_v18 }
  0x2f   : > { %605 = vmatprep.mubr.msk.bf16.mxu0 %vm349_vm0, %v661_v19  ;;  %609 = vmatprep.mubr.msk.bf16.mxu1 %vm349_vm0, %v663_v20 }
  0x36   : > { %422 = vmatmul.mubr.bf16.gmra.mrb[4].mxu0 %v665_v21  ;;  %454 = vmatmul.mubr.bf16.gmra.mrb[4].mxu1 %v666_v22 }
  0x37   : > { %606 = vmatprep.mubr.msk.bf16.mxu0 %vm349_vm0, %v667_v23  ;;  %610 = vmatprep.mubr.msk.bf16.mxu1 %vm349_vm0, %v669_v24 }
  0x3e   : > { %430 = vmatmul.mubr.bf16.gmra.mrb[8].mxu0 %v671_v25  ;;  %462 = vmatmul.mubr.bf16.gmra.mrb[8].mxu1 %v672_v26 }
  0x3f   : > { %607 = vmatprep.mubr.msk.bf16.mxu0 %vm349_vm0, %v673_v27  ;;  %611 = vmatprep.mubr.msk.bf16.mxu1 %vm349_vm0, %v675_v28 }
  0x46   : > { %438 = vmatmul.mubr.bf16.gmra.mrb[12].mxu0 %v677_v29  ;;  %470 = vmatmul.mubr.bf16.gmra.mrb[12].mxu1 %v678_v30 }
 0x101   : > { %v415_v32 = vpop.f32.mrb[0].mxu0  ;;  %v447_v33 = vpop.f32.mrb[0].mxu1 }
 0x102   : > { %v416_v34 = vadd.f32 %v784_v31, %v415_v32  ;;  %v448_v35 = vadd.f32 %v784_v31, %v447_v33  ;;  %v417_v36 = vpop.f32.mrb[1].mxu0  ;;  %v449_v37 = vpop.f32.mrb[1].mxu1 }
 0x103   : > { %v418_v38 = vpop.f32.mrb[2].mxu0  ;;  %v450_v39 = vpop.f32.mrb[2].mxu1 }
 0x104   : > { %v478_v40 = vmax.f32 %v416_v34, 0.0  ;;  %v486_v41 = vmax.f32 %v448_v35, 0.0  ;;  %v419_v42 = vadd.f32 %v784_v31, %v418_v38  ;;  %v451_v43 = vadd.f32 %v784_v31, %v450_v39  ;;  %v420_v44 = vpop.f32.mrb[3].mxu0  ;;  %v452_v45 = vpop.f32.mrb[3].mxu1 }
 0x106   : > { %495 = vst.msk [vmem:[%s793_s17] sm:$0xff] %vm494_vm3, %v478_v40  ;;  %503 = vst.msk [vmem:[%s793_s17 + $0x40] sm:$0xff] %vm494_vm3, %v486_v41  ;;  %v479_v46 = vmax.f32 %v419_v42, 0.0  ;;  %v487_v47 = vmax.f32 %v451_v43, 0.0 }
 0x108   : > { %496 = vst.msk [vmem:[%s793_s17 + $0x8] sm:$0xff] %vm494_vm3, %v479_v46  ;;  %504 = vst.msk [vmem:[%s793_s17 + $0x48] sm:$0xff] %vm494_vm3, %v487_v47 }
 0x109   : > { %v423_v48 = vpop.f32.mrb[4].mxu0  ;;  %v455_v49 = vpop.f32.mrb[4].mxu1 }
 0x10a   : > { %v424_v50 = vadd.f32 %v784_v31, %v423_v48  ;;  %v456_v51 = vadd.f32 %v784_v31, %v455_v49  ;;  %v425_v52 = vpop.f32.mrb[5].mxu0  ;;  %v457_v53 = vpop.f32.mrb[5].mxu1 }
 0x10b   : > { %v426_v54 = vpop.f32.mrb[6].mxu0  ;;  %v458_v55 = vpop.f32.mrb[6].mxu1 }
 0x10c   : > { %v480_v56 = vmax.f32 %v424_v50, 0.0  ;;  %v488_v57 = vmax.f32 %v456_v51, 0.0  ;;  %v427_v58 = vadd.f32 %v784_v31, %v426_v54  ;;  %v459_v59 = vadd.f32 %v784_v31, %v458_v55  ;;  %v428_v60 = vpop.f32.mrb[7].mxu0  ;;  %v460_v61 = vpop.f32.mrb[7].mxu1 }
 0x10e   : > { %497 = vst.msk [vmem:[%s793_s17 + $0x10] sm:$0xff] %vm494_vm3, %v480_v56  ;;  %505 = vst.msk [vmem:[%s793_s17 + $0x50] sm:$0xff] %vm494_vm3, %v488_v57  ;;  %v481_v62 = vmax.f32 %v427_v58, 0.0  ;;  %v489_v63 = vmax.f32 %v459_v59, 0.0 }
 0x110   : > { %498 = vst.msk [vmem:[%s793_s17 + $0x18] sm:$0xff] %vm494_vm3, %v481_v62  ;;  %506 = vst.msk [vmem:[%s793_s17 + $0x58] sm:$0xff] %vm494_vm3, %v489_v63 }
 0x111   : > { %v431_v0 = vpop.f32.mrb[8].mxu0  ;;  %v463_v1 = vpop.f32.mrb[8].mxu1 }
 0x112   : > { %v432_v2 = vadd.f32 %v784_v31, %v431_v0  ;;  %v464_v3 = vadd.f32 %v784_v31, %v463_v1  ;;  %v433_v4 = vpop.f32.mrb[9].mxu0  ;;  %v465_v5 = vpop.f32.mrb[9].mxu1 }
 0x113   : > { %v434_v6 = vpop.f32.mrb[10].mxu0  ;;  %v466_v7 = vpop.f32.mrb[10].mxu1 }
 0x114   : > { %v482_v8 = vmax.f32 %v432_v2, 0.0  ;;  %v490_v9 = vmax.f32 %v464_v3, 0.0  ;;  %v435_v10 = vadd.f32 %v784_v31, %v434_v6  ;;  %v467_v11 = vadd.f32 %v784_v31, %v466_v7  ;;  %v436_v12 = vpop.f32.mrb[11].mxu0  ;;  %v468_v13 = vpop.f32.mrb[11].mxu1 }
 0x116   : > { %499 = vst.msk [vmem:[%s793_s17 + $0x20] sm:$0xff] %vm494_vm3, %v482_v8  ;;  %507 = vst.msk [vmem:[%s793_s17 + $0x60] sm:$0xff] %vm494_vm3, %v490_v9  ;;  %v483_v14 = vmax.f32 %v435_v10, 0.0  ;;  %v491_v15 = vmax.f32 %v467_v11, 0.0 }
 0x118   : > { %500 = vst.msk [vmem:[%s793_s17 + $0x28] sm:$0xff] %vm494_vm3, %v483_v14  ;;  %508 = vst.msk [vmem:[%s793_s17 + $0x68] sm:$0xff] %vm494_vm3, %v491_v15 }
 0x119   : > { %v439_v16 = vpop.f32.mrb[12].mxu0  ;;  %v471_v17 = vpop.f32.mrb[12].mxu1 }
 0x11a   : > { %v440_v18 = vadd.f32 %v784_v31, %v439_v16  ;;  %v472_v19 = vadd.f32 %v784_v31, %v471_v17  ;;  %v441_v20 = vpop.f32.mrb[13].mxu0  ;;  %v473_v21 = vpop.f32.mrb[13].mxu1 }
 0x11b   : > { %v442_v22 = vpop.f32.mrb[14].mxu0  ;;  %v474_v23 = vpop.f32.mrb[14].mxu1 }
 0x11c   : > { %v484_v24 = vmax.f32 %v440_v18, 0.0  ;;  %v492_v25 = vmax.f32 %v472_v19, 0.0  ;;  %v443_v26 = vadd.f32 %v784_v31, %v442_v22  ;;  %v475_v27 = vadd.f32 %v784_v31, %v474_v23  ;;  %v444_v28 = vpop.f32.mrb[15].mxu0  ;;  %v476_v29 = vpop.f32.mrb[15].mxu1 }
 0x11e   : > { %501 = vst.msk [vmem:[%s793_s17 + $0x30] sm:$0xff] %vm494_vm3, %v484_v24  ;;  %509 = vst.msk [vmem:[%s793_s17 + $0x70] sm:$0xff] %vm494_vm3, %v492_v25  ;;  %v485_v30 = vmax.f32 %v443_v26, 0.0  ;;  %v493_v32 = vmax.f32 %v475_v27, 0.0 }
 0x120   : > { %502 = vst.msk [vmem:[%s793_s17 + $0x38] sm:$0xff] %vm494_vm3, %v485_v30  ;;  %510 = vst.msk [vmem:[%s793_s17 + $0x78] sm:$0xff] %vm494_vm3, %v493_v32 }
 0x121 PF: > { %s13_s12 = sadd.s32 1, %s685_s12  }
 0x122   : > { %p10_p4 = scmp.ge.s32.totalorder %s13_s12, 6  }
 0x124   :  { %12 = sbr.rel (!%p10_p4) target bundleno = 1 (0x1), region = 62 }

// kernel: densenet_seg_forward.13
= control target key start
LH: loop header
LB: loop body
LE: loop exit
PB: predicated region body
PF: predicated region fallthrough
CT: control target
= control target key end

     0   :  { %s992_s9 = smov 0   ;;  %s1144_s0 = inlined_call_operand.vmem [shape: bf16[512,288], index: 0, kind: input, shape index: {}]   ;;  %s1145_s1 = inlined_call_operand.vmem [shape: bf16[288,8], index: 1, kind: input, shape index: {}]   ;;  %s1146_s2 = inlined_call_operand.vmem [shape: f32[512,8], index: 2, kind: output, shape index: {}]  }
   0x1 LB: > { %s739_s10 = sadd.s32 4294967295, %s975_s9   ;;  %p743_p0 = scmp.ge.s32.totalorder %s975_s9, 1  ;;  %s975_s9 = sphi %s992_s9, %s12_s9  }
   0x2   : > { %p114_p1 = scmp.lt.s32.totalorder %s975_s9, 5 }
   0x4   : > { %p115_p2 = pnand %p743_p0, %p114_p1 }
   0x5   : > { %v919_v0 = vld [vmem:[%s1145_s1 + $0x40] sm:$0xff] (!%p115_p2)   ;;  %s744_s13 = sshll.u32 (!%p115_p2), %s739_s10, 4  ;;  %v921_v2 = vld [vmem:[%s1145_s1 + $0x48] sm:$0xff] (!%p115_p2)   ;;  %v923_v4 = vld [vmem:[%s1145_s1 + $0x50] sm:$0xff] (!%p115_p2)   ;;  %vm447_vm0 = vcmask (!%p115_p2), 261120   ;;  %vm666_vm1 = vcmask (!%p115_p2), 64512  }
   0x6   : > { %118 = sbr.rel (%p115_p2) target bundleno = 298 (0x12a), region = 28  ;;  %v920_v1 = vld [vmem:[%s1145_s1] sm:$0xff] (!%p115_p2)   ;;  %800 = vmatprep.subr.bf16.mxu0 (!%p115_p2), %v919_v0  ;;  %894 = vmatprep.subr.bf16.mxu1 (!%p115_p2), %v919_v0  ;;  %p138_p3 = scmp.lt.s32.totalorder (!%p115_p2), %s744_s13, 63  ;;  %v922_v3 = vld [vmem:[%s1145_s1 + $0x8] sm:$0xff] (!%p115_p2)   ;;  %v924_v5 = vld [vmem:[%s1145_s1 + $0x10] sm:$0xff] (!%p115_p2)  }
   0x7   : > { %801 = vmatpush3.bf16.msra.mxu0 (!%p115_p2), %v920_v1  ;;  %902 = vmatpush3.bf16.msra.mxu1 (!%p115_p2), %v920_v1  ;;  %v925_v6 = vld [vmem:[%s1145_s1 + $0x58] sm:$0xff] (!%p115_p2)   ;;  %v927_v8 = vld [vmem:[%s1145_s1 + $0x60] sm:$0xff] (!%p115_p2)   ;;  %v929_v10 = vld [vmem:[%s1145_s1 + $0x68] sm:$0xff] (!%p115_p2)  }
   0x8   : > { %802 = vmatprep.subr.bf16.mxu0 (!%p115_p2), %v921_v2  ;;  %895 = vmatprep.subr.bf16.mxu1 (!%p115_p2), %v921_v2  ;;  %v926_v7 = vld [vmem:[%s1145_s1 + $0x18] sm:$0xff] (!%p115_p2)   ;;  %v928_v9 = vld [vmem:[%s1145_s1 + $0x20] sm:$0xff] (!%p115_p2)   ;;  %v930_v13 = vld [vmem:[%s1145_s1 + $0x28] sm:$0xff] (!%p115_p2)  }
   0x9   : > { %v931_v14 = vld [vmem:[%s1145_s1 + $0x70] sm:$0xff] (!%p115_p2)   ;;  %v933_v16 = vld [vmem:[%s1145_s1 + $0x78] sm:$0xff] (!%p115_p2)   ;;  %v941_v19 = vld [vmem:[%s1145_s1 + $0x80] sm:$0xff] (!%p115_p2)  }
   0xa   : > { %v932_v15 = vld [vmem:[%s1145_s1 + $0x30] sm:$0xff] (!%p115_p2)   ;;  %v934_v17 = vld [vmem:[%s1145_s1 + $0x38] sm:$0xff] (!%p115_p2)   ;;  %v948_v23 = vld [vmem:[%s1145_s1 + $0x88] sm:$0xff] (!%p115_p2)  }
   0xb   : > { %803 = vmatpush3.bf16.msra.mxu0 (!%p115_p2), %v922_v3  ;;  %903 = vmatpush3.bf16.msra.mxu1 (!%p115_p2), %v922_v3 }
   0xc   : > { %804 = vmatprep.subr.bf16.mxu0 (!%p115_p2), %v923_v4  ;;  %896 = vmatprep.subr.bf16.mxu1 (!%p115_p2), %v923_v4 }
   0xd   : > { %s1148_s13 = smov (!%p138_p3, %s744_s13), 63 }
   0xe   : > { %s910_s26 = smul.u32 12, %s1148_s13 }
   0xf   : > { %805 = vmatpush3.bf16.msra.mxu0 %v924_v5  ;;  %904 = vmatpush3.bf16.msra.mxu1 %v924_v5 }
  0x10   : > { %806 = vmatprep.subr.bf16.mxu0 %v925_v6  ;;  %897 = vmatprep.subr.bf16.mxu1 %v925_v6  ;;  %s1033_s5 = scalar_lea.vmem %s1144_s0, %s910_s26  ;;  %s747_s26 = sshll.u32 %s1148_s13, 3 }
  0x11   : > { %v937_v11 = vld [vmem:[%s1033_s5 + $0x4] ss:$12 sps:$4 sm:$0xff]   ;;  %v940_v12 = vld [vmem:[%s1033_s5 + $0x94] ss:$12 sps:$4 sm:$0xff]   ;;  %v942_v21 = vld [vmem:[%s1033_s5 + $0x1c] ss:$12 sps:$4 sm:$0xff]   ;;  %s1104_s29 = scalar_lea.vmem %s1146_s2, %s747_s26 }
  0x12   : > { %504 = vmatprep.mubr.bf16.mxu0 %v937_v11  ;;  %552 = vmatprep.mubr.bf16.mxu1 %v940_v12  ;;  %v935_v18 = vld [vmem:[%s1033_s5] ss:$12 sps:$4 sm:$0xff]   ;;  %v938_v20 = vld [vmem:[%s1033_s5 + $0x90] ss:$12 sps:$4 sm:$0xff]   ;;  %v946_v24 = vld [vmem:[%s1033_s5 + $0x18] ss:$12 sps:$4 sm:$0xff]  }
  0x13   : > { %807 = vmatpush3.bf16.msra.mxu0 %v926_v7  ;;  %905 = vmatpush3.bf16.msra.mxu1 %v926_v7  ;;  %v944_v22 = vld [vmem:[%s1033_s5 + $0xac] ss:$12 sps:$4 sm:$0xff]   ;;  %v947_v25 = vld [vmem:[%s1033_s5 + $0xa8] ss:$12 sps:$4 sm:$0xff]   ;;  %v952_v28 = vld [vmem:[%s1033_s5 + $0x30] ss:$12 sps:$4 sm:$0xff]  }
  0x14   : > { %808 = vmatprep.subr.bf16.mxu0 %v927_v8  ;;  %898 = vmatprep.subr.bf16.mxu1 %v927_v8  ;;  %v949_v26 = vld [vmem:[%s1033_s5 + $0x34] ss:$12 sps:$4 sm:$0xff]   ;;  %v954_v30 = vld [vmem:[%s1033_s5 + $0x4c] ss:$12 sps:$4 sm:$0xff]   ;;  %v958_v33 = vld [vmem:[%s1033_s5 + $0x50] ss:$12 sps:$4 sm:$0xff]  }
  0x15   : > { %v951_v27 = vld [vmem:[%s1033_s5 + $0x8] ss:$12 sps:$4 sm:$0xff]   ;;  %v953_v29 = vld [vmem:[%s1033_s5 + $0x20] ss:$12 sps:$4 sm:$0xff]   ;;  %v956_v31 = vld [vmem:[%s1033_s5 + $0x38] ss:$12 sps:$4 sm:$0xff]  }
  0x16   : > { %v957_v32 = vld [vmem:[%s1033_s5 + $0x48] ss:$12 sps:$4 sm:$0xff]   ;;  %v959_v34 = vld [vmem:[%s1033_s5 + $0x64] ss:$12 sps:$4 sm:$0xff]   ;;  %v962_v36 = vld [vmem:[%s1033_s5 + $0x60] ss:$12 sps:$4 sm:$0xff]  }
  0x17   : > { %809 = vmatpush3.bf16.msra.mxu0 %v928_v9  ;;  %906 = vmatpush3.bf16.msra.mxu1 %v928_v9  ;;  %v961_v35 = vld [vmem:[%s1033_s5 + $0x68] ss:$12 sps:$4 sm:$0xff]   ;;  %v963_v37 = vld [vmem:[%s1033_s5 + $0x80] ss:$12 sps:$4 sm:$0xff]   ;;  %v966_v39 = vld [vmem:[%s1033_s5 + $0x98] ss:$12 sps:$4 sm:$0xff]  }
  0x18   : > { %810 = vmatprep.subr.bf16.mxu0 %v929_v10  ;;  %899 = vmatprep.subr.bf16.mxu1 %v929_v10  ;;  %v964_v38 = vld [vmem:[%s1033_s5 + $0x7c] ss:$12 sps:$4 sm:$0xff]   ;;  %v967_v40 = vld [vmem:[%s1033_s5 + $0x78] ss:$12 sps:$4 sm:$0xff]  }
  0x19   : > { %v968_v41 = vld [vmem:[%s1033_s5 + $0xb0] ss:$12 sps:$4 sm:$0xff]  }
  0x1b   : > { %811 = vmatpush3.bf16.msra.mxu0 %v930_v13  ;;  %907 = vmatpush3.bf16.msra.mxu1 %v930_v13 }
  0x1c   : > { %812 = vmatprep.subr.bf16.mxu0 %v931_v14  ;;  %900 = vmatprep.subr.bf16.mxu1 %v931_v14 }
  0x1f   : > { %813 = vmatpush3.bf16.msra.mxu0 %v932_v15  ;;  %908 = vmatpush3.bf16.msra.mxu1 %v932_v15 }
  0x20   : > { %814 = vmatprep.subr.bf16.mxu0 %v933_v16  ;;  %901 = vmatprep.subr.bf16.mxu1 %v933_v16 }
  0x23   : > { %815 = vmatpush3.bf16.msra.mxu0 %v934_v17  ;;  %909 = vmatpush3.bf16.msra.mxu1 %v934_v17 }
  0x24   : > { %874 = vmatprep.subr.bf16.mxu1 %v941_v19 }
  0x26   : > { %505 = vmatmul.mubr.bf16.vlgmr.msra.gmra.mrb[0].mxu0 %v935_v18  ;;  %553 = vmatmul.mubr.bf16.vlgmr.msra.gmra.mrb[0].mxu1 %v938_v20 }
  0x27   : > { %875 = vmatpush3.bf16.msra.mxu1 %v941_v19  ;;  %512 = vmatprep.mubr.bf16.mxu0 %v942_v21 }
  0x28   : > { %560 = vmatprep.mubr.bf16.mxu1 %v944_v22  ;;  %876 = vmatprep.subr.bf16.mxu1 %v948_v23 }
  0x2b   : > { %877 = vmatpush3.bf16.msra.mxu1 %v948_v23 }
  0x2e   : > { %513 = vmatmul.mubr.bf16.gmra.mrb[4].mxu0 %v946_v24  ;;  %561 = vmatmul.mubr.bf16.gmra.mrb[4].mxu1 %v947_v25 }
  0x2f   : > { %520 = vmatprep.mubr.bf16.mxu0 %v949_v26  ;;  %878 = vmatprep.mubr.msk.bf16.mxu1 %vm447_vm0, %v951_v27 }
  0x36   : > { %521 = vmatmul.mubr.bf16.gmra.mrb[8].mxu0 %v952_v28  ;;  %879 = vmatmul.mubr.msk.bf16.vlgmr.msra.gmra.mrb[8].mxu1 %vm447_vm0, %v953_v29 }
  0x37   : > { %528 = vmatprep.mubr.bf16.mxu0 %v954_v30  ;;  %882 = vmatprep.mubr.msk.bf16.mxu1 %vm447_vm0, %v956_v31 }
  0x3e   : > { %529 = vmatmul.mubr.bf16.gmra.mrb[12].mxu0 %v957_v32  ;;  %883 = vmatmul.mubr.msk.bf16.gmra.mrb[12].mxu1 %vm447_vm0, %v958_v33 }
  0x3f   : > { %536 = vmatprep.mubr.bf16.mxu0 %v959_v34  ;;  %886 = vmatprep.mubr.msk.bf16.mxu1 %vm447_vm0, %v961_v35 }
  0x46   : > { %537 = vmatmul.mubr.bf16.gmra.mrb[16].mxu0 %v962_v36  ;;  %887 = vmatmul.mubr.msk.bf16.gmra.mrb[16].mxu1 %vm447_vm0, %v963_v37 }
  0x47   : > { %544 = vmatprep.mubr.bf16.mxu0 %v964_v38  ;;  %890 = vmatprep.mubr.msk.bf16.mxu1 %vm447_vm0, %v966_v39 }
  0x4e   : > { %545 = vmatmul.mubr.bf16.gmra.mrb[20].mxu0 %v967_v40  ;;  %891 = vmatmul.mubr.msk.bf16.gmra.mrb[20].mxu1 %vm447_vm0, %v968_v41 }
  0xf9   : > { %v816_v42 = vpop.f32.mrb[0].mxu0  ;;  %v852_v43 = vpop.f32.mrb[0].mxu1 }
  0xfa   : > { %v817_v44 = vpop.f32.mrb[1].mxu0  ;;  %v853_v45 = vpop.f32.mrb[1].mxu1 }
  0xfb   : > { %v818_v46 = vadd.f32 %v817_v44, %v816_v42  ;;  %v1094_v47 = vadd.f32 %v853_v45, %v852_v43  ;;  %v819_v48 = vpop.f32.mrb[2].mxu0  ;;  %v855_v49 = vpop.f32.mrb[2].mxu1 }
  0xfc   : > { %v820_v50 = vpop.f32.mrb[3].mxu0  ;;  %v856_v51 = vpop.f32.mrb[3].mxu1 }
  0xfd   : > { %v821_v52 = vadd.f32 %v820_v50, %v819_v48  ;;  %v1096_v53 = vadd.f32 %v856_v51, %v855_v49 }
 0x101   : > { %v822_v54 = vpop.f32.mrb[4].mxu0  ;;  %v858_v55 = vpop.f32.mrb[4].mxu1 }
 0x102   : > { %v823_v56 = vpop.f32.mrb[5].mxu0  ;;  %v859_v57 = vpop.f32.mrb[5].mxu1 }
 0x103   : > { %v824_v58 = vadd.f32 %v823_v56, %v822_v54  ;;  %v860_v59 = vadd.f32 %v859_v57, %v858_v55  ;;  %v825_v60 = vpop.f32.mrb[6].mxu0  ;;  %v861_v61 = vpop.f32.mrb[6].mxu1 }
 0x104   : > { %v826_v62 = vpop.f32.mrb[7].mxu0  ;;  %v862_v63 = vpop.f32.mrb[7].mxu1 }
 0x105   : > { %v827_v0 = vadd.f32 %v826_v62, %v825_v60  ;;  %v1098_v1 = vadd.f32 %v862_v63, %v861_v61 }
 0x109   : > { %v828_v2 = vpop.f32.mrb[8].mxu0  ;;  %v880_v3 = vpop.f32.mrb[8].mxu1 }
 0x10a   : > { %v612_v4 = vadd.f32 %v880_v3, %v824_v58  ;;  %v829_v5 = vpop.f32.mrb[9].mxu0  ;;  %v603_v6 = vpop.f32.mrb[9].mxu1 }
 0x10b   : > { %v830_v7 = vadd.f32 %v829_v5, %v828_v2  ;;  %v604_v8 = vadd.f32 %v818_v46, %v603_v6  ;;  %v831_v9 = vpop.f32.mrb[10].mxu0  ;;  %v881_v10 = vpop.f32.mrb[10].mxu1 }
 0x10c   : > { %669 = vst.msk [vmem:[%s1104_s29 + $0x10] sm:$0xff] %vm666_vm1, %v612_v4  ;;  %v615_v11 = vadd.f32 %v881_v10, %v827_v0  ;;  %v832_v12 = vpop.f32.mrb[11].mxu0  ;;  %v606_v13 = vpop.f32.mrb[11].mxu1 }
 0x10d   : > { %667 = vst.msk [vmem:[%s1104_s29] sm:$0xff] %vm666_vm1, %v604_v8  ;;  %v833_v14 = vadd.f32 %v832_v12, %v831_v9  ;;  %v607_v15 = vadd.f32 %v821_v52, %v606_v13 }
 0x10e   : > { %670 = vst.msk [vmem:[%s1104_s29 + $0x18] sm:$0xff] %vm666_vm1, %v615_v11 }
 0x10f   : > { %668 = vst.msk [vmem:[%s1104_s29 + $0x8] sm:$0xff] %vm666_vm1, %v607_v15 }
 0x111   : > { %v834_v16 = vpop.f32.mrb[12].mxu0  ;;  %v884_v17 = vpop.f32.mrb[12].mxu1 }
 0x112   : > { %v835_v18 = vpop.f32.mrb[13].mxu0  ;;  %v619_v19 = vpop.f32.mrb[13].mxu1 }
 0x113   : > { %v836_v20 = vadd.f32 %v835_v18, %v834_v16  ;;  %v620_v21 = vadd.f32 %v830_v7, %v619_v19  ;;  %v837_v22 = vpop.f32.mrb[14].mxu0  ;;  %v885_v23 = vpop.f32.mrb[14].mxu1 }
 0x114   : > { %v838_v24 = vpop.f32.mrb[15].mxu0  ;;  %v622_v25 = vpop.f32.mrb[15].mxu1 }
 0x115   : > { %v628_v26 = vadd.f32 %v884_v17, %v836_v20  ;;  %671 = vst.msk [vmem:[%s1104_s29 + $0x20] sm:$0xff] %vm666_vm1, %v620_v21  ;;  %v839_v27 = vadd.f32 %v838_v24, %v837_v22  ;;  %v623_v28 = vadd.f32 %v833_v14, %v622_v25 }
 0x117   : > { %673 = vst.msk [vmem:[%s1104_s29 + $0x30] sm:$0xff] %vm666_vm1, %v628_v26  ;;  %v631_v29 = vadd.f32 %v885_v23, %v839_v27  ;;  %672 = vst.msk [vmem:[%s1104_s29 + $0x28] sm:$0xff] %vm666_vm1, %v623_v28 }
 0x119   : > { %674 = vst.msk [vmem:[%s1104_s29 + $0x38] sm:$0xff] %vm666_vm1, %v631_v29  ;;  %v840_v30 = vpop.f32.mrb[16].mxu0  ;;  %v888_v31 = vpop.f32.mrb[16].mxu1 }
 0x11a   : > { %v841_v32 = vpop.f32.mrb[17].mxu0  ;;  %v635_v33 = vpop.f32.mrb[17].mxu1 }
 0x11b   : > { %v842_v34 = vadd.f32 %v841_v32, %v840_v30  ;;  %v843_v35 = vpop.f32.mrb[18].mxu0  ;;  %v889_v36 = vpop.f32.mrb[18].mxu1 }
 0x11c   : > { %v844_v37 = vpop.f32.mrb[19].mxu0  ;;  %v638_v38 = vpop.f32.mrb[19].mxu1 }
 0x11d   : > { %v636_v39 = vadd.f32 %v842_v34, %v635_v33  ;;  %v845_v40 = vadd.f32 %v844_v37, %v843_v35 }
 0x11f   : > { %675 = vst.msk [vmem:[%s1104_s29 + $0x40] sm:$0xff] %vm666_vm1, %v636_v39  ;;  %v639_v41 = vadd.f32 %v845_v40, %v638_v38 }
 0x121   : > { %676 = vst.msk [vmem:[%s1104_s29 + $0x48] sm:$0xff] %vm666_vm1, %v639_v41  ;;  %v846_v42 = vpop.f32.mrb[20].mxu0  ;;  %v892_v43 = vpop.f32.mrb[20].mxu1 }
 0x122   : > { %v660_v44 = vadd.f32 %v892_v43, %v860_v59  ;;  %v847_v45 = vpop.f32.mrb[21].mxu0  ;;  %v651_v46 = vpop.f32.mrb[21].mxu1 }
 0x123   : > { %v848_v48 = vadd.f32 %v847_v45, %v846_v42  ;;  %v652_v49 = vadd.f32 %v1094_v47, %v651_v46  ;;  %v849_v50 = vpop.f32.mrb[22].mxu0  ;;  %v893_v51 = vpop.f32.mrb[22].mxu1 }
 0x124   : > { %681 = vst.msk [vmem:[%s1104_s29 + $0x70] sm:$0xff] %vm666_vm1, %v660_v44  ;;  %v663_v52 = vadd.f32 %v893_v51, %v1098_v1  ;;  %v850_v54 = vpop.f32.mrb[23].mxu0  ;;  %v654_v55 = vpop.f32.mrb[23].mxu1 }
 0x125   : > { %v644_v56 = vadd.f32 %v888_v31, %v848_v48  ;;  %679 = vst.msk [vmem:[%s1104_s29 + $0x60] sm:$0xff] %vm666_vm1, %v652_v49  ;;  %v851_v57 = vadd.f32 %v850_v54, %v849_v50  ;;  %v655_v58 = vadd.f32 %v1096_v53, %v654_v55 }
 0x126   : > { %682 = vst.msk [vmem:[%s1104_s29 + $0x78] sm:$0xff] %vm666_vm1, %v663_v52 }
 0x127   : > { %677 = vst.msk [vmem:[%s1104_s29 + $0x50] sm:$0xff] %vm666_vm1, %v644_v56  ;;  %v647_v59 = vadd.f32 %v889_v36, %v851_v57  ;;  %680 = vst.msk [vmem:[%s1104_s29 + $0x68] sm:$0xff] %vm666_vm1, %v655_v58 }
 0x129   : > { %678 = vst.msk [vmem:[%s1104_s29 + $0x58] sm:$0xff] %vm666_vm1, %v647_v59 }
 0x12a PF: > { %s12_s9 = sadd.s32 1, %s975_s9  }
 0x12b   : > { %p9_p4 = scmp.ge.s32.totalorder %s12_s9, 6  }
 0x12d   :  { %11 = sbr.rel (!%p9_p4) target bundleno = 1 (0x1), region = 58 }

// kernel: densenet_seg_forward.14
= control target key start
LH: loop header
LB: loop body
LE: loop exit
PB: predicated region body
PF: predicated region fallthrough
CT: control target
= control target key end

     0   :  { %s753_s18 = smov 0   ;;  %s903_s0 = inlined_call_operand.vmem [shape: f32[512,24], index: 0, kind: input, shape index: {}]   ;;  %s904_s1 = inlined_call_operand.vmem [shape: f32[1,24], index: 1, kind: input, shape index: {}]   ;;  %s905_s2 = inlined_call_operand.vmem [shape: f32[1,24], index: 2, kind: input, shape index: {}]   ;;  %s906_s3 = inlined_call_operand.vmem [shape: bf16[24,32], index: 3, kind: input, shape index: {}]   ;;  %s907_s4 = inlined_call_operand.vmem [shape: f32[1,32], index: 4, kind: input, shape index: {}]   ;;  %s908_s5 = inlined_call_operand.vmem [shape: bf16[512,32], index: 5, kind: output, shape index: {}]  }
   0x1 LB: > { %s613_s19 = sadd.s32 4294967295, %s721_s18   ;;  %p617_p0 = scmp.ge.s32.totalorder %s721_s18, 1  ;;  %s721_s18 = sphi %s753_s18, %s15_s18  }
   0x2   : > { %p188_p1 = scmp.lt.s32.totalorder %s721_s18, 5 }
   0x4   : > { %p189_p2 = pnand %p617_p0, %p188_p1 }
   0x5   : > { %v713_v0 = vld [vmem:[%s906_s3] sm:$0xff] (!%p189_p2)   ;;  %v714_v1 = vld [vmem:[%s906_s3 + $0x8] ss:$0 sps:$4 sm:$0xff] (!%p189_p2)   ;;  %vm359_vm0 = vcmask (!%p189_p2), 1043456   ;;  %s618_s24 = sshll.u32 (!%p189_p2), %s613_s19, 4  ;;  %vm334_vm1 = vcmask (!%p189_p2), 195584  }
   0x6   : > { %192 = sbr.rel (%p189_p2) target bundleno = 258 (0x102), region = 40  ;;  %679 = vmatprep.subr.bf16.mxu0 (!%p189_p2), %v713_v0  ;;  %699 = vmatprep.subr.bf16.mxu1 (!%p189_p2), %v713_v0  ;;  %p217_p3 = scmp.lt.s32.totalorder (!%p189_p2), %s618_s24, 63  ;;  %v361_v2 = vsel (!%p189_p2), %vm359_vm0, %v714_v1, 0  ;;  %v773_v3 = vld [vmem:[%s904_s1] ss:$0 sm:$0xff] (!%p189_p2)  ;;  %vm540_vm2 = vcmask (!%p189_p2), 257024  }
   0x7   : > { %680 = vmatpush3.bf16.msra.mxu0 (!%p189_p2), %v713_v0  ;;  %701 = vmatpush3.bf16.msra.mxu1 (!%p189_p2), %v713_v0  ;;  %v783_v4 = vld [vmem:[%s905_s2] ss:$0 sm:$0xff] (!%p189_p2) }
   0x8   : > { %703 = vmatprep.subr.msk.bf16.mxu0 (!%p189_p2), %vm359_vm0, %v714_v1  ;;  %704 = vmatprep.subr.msk.bf16.mxu1 (!%p189_p2), %vm359_vm0, %v714_v1 }
   0xb   : > { %682 = vmatpush3.bf16.msra.mxu0 (!%p189_p2), %v361_v2  ;;  %702 = vmatpush3.bf16.msra.mxu1 (!%p189_p2), %v361_v2 }
   0xd   : > { %s910_s24 = smov (!%p217_p3, %s618_s24), 63 }
   0xe   : > { %s619_s25 = sshll.u32 %s910_s24, 3  ;;  %s621_s10 = sshll.u32 %s910_s24, 2 }
   0xf   : > { %s778_s30 = scalar_lea.vmem %s903_s0, %s619_s25  ;;  %s854_s13 = scalar_lea.vmem %s908_s5, %s621_s10 }
  0x10   : > { %v229_v5 = vld [vmem:[%s778_s30] sm:$0xff]  ;;  %v230_v6 = vld [vmem:[%s778_s30 + $0x8] sm:$0xff]  ;;  %v231_v12 = vld [vmem:[%s778_s30 + $0x10] sm:$0xff] }
  0x11   : > { %v237_v7 = vld [vmem:[%s778_s30 + $0x40] sm:$0xff]  ;;  %v252_v8 = vmul.f32 %v773_v3, %v229_v5  ;;  %v253_v9 = vmul.f32 %v773_v3, %v230_v6  ;;  %v238_v10 = vld [vmem:[%s778_s30 + $0x48] sm:$0xff]  ;;  %v232_v13 = vld [vmem:[%s778_s30 + $0x18] sm:$0xff]  ;;  %v254_v15 = vmul.f32 %v773_v3, %v231_v12 }
  0x12   : > { %v260_v11 = vmul.f32 %v773_v3, %v237_v7  ;;  %v261_v14 = vmul.f32 %v773_v3, %v238_v10  ;;  %v255_v16 = vmul.f32 %v773_v3, %v232_v13  ;;  %v239_v17 = vld [vmem:[%s778_s30 + $0x50] sm:$0xff]  ;;  %v240_v18 = vld [vmem:[%s778_s30 + $0x58] sm:$0xff]  ;;  %v233_v27 = vld [vmem:[%s778_s30 + $0x20] sm:$0xff] }
  0x13   : > { %v275_v19 = vadd.f32 %v783_v4, %v252_v8  ;;  %v276_v20 = vadd.f32 %v783_v4, %v253_v9  ;;  %v262_v22 = vmul.f32 %v773_v3, %v239_v17  ;;  %v277_v24 = vadd.f32 %v783_v4, %v254_v15  ;;  %v234_v28 = vld [vmem:[%s778_s30 + $0x28] sm:$0xff]  ;;  %v241_v33 = vld [vmem:[%s778_s30 + $0x60] sm:$0xff]  ;;  %v235_v39 = vld [vmem:[%s778_s30 + $0x30] sm:$0xff] }
  0x14   : > { %v283_v21 = vadd.f32 %v783_v4, %v260_v11  ;;  %v284_v23 = vadd.f32 %v783_v4, %v261_v14  ;;  %v278_v25 = vadd.f32 %v783_v4, %v255_v16  ;;  %v263_v26 = vmul.f32 %v773_v3, %v240_v18  ;;  %v242_v38 = vld [vmem:[%s778_s30 + $0x68] sm:$0xff]  ;;  %v236_v44 = vld [vmem:[%s778_s30 + $0x38] sm:$0xff]  ;;  %v243_v53 = vld [vmem:[%s778_s30 + $0x70] sm:$0xff] }
  0x15   : > { %v291_v29 = vmax.f32 %v275_v19, 0.0  ;;  %v292_v30 = vmax.f32 %v276_v20, 0.0  ;;  %v285_v32 = vadd.f32 %v783_v4, %v262_v22  ;;  %v293_v35 = vmax.f32 %v277_v24, 0.0  ;;  %v244_v54 = vld [vmem:[%s778_s30 + $0x78] sm:$0xff]  ;;  %v844_v14 = vld [vmem:[%s907_s4] ss:$0 sm:$0xff] }
  0x16   : > { %v299_v31 = vmax.f32 %v283_v21, 0.0  ;;  %v300_v34 = vmax.f32 %v284_v23, 0.0  ;;  %v294_v36 = vmax.f32 %v278_v25, 0.0  ;;  %v286_v37 = vadd.f32 %v783_v4, %v263_v26 }
  0x17   : > { %v307_v40 = vpack.c.bf16 %v292_v30, %v291_v29  ;;  %v301_v41 = vmax.f32 %v285_v32, 0.0  ;;  %v256_v42 = vmul.f32 %v773_v3, %v233_v27  ;;  %v257_v43 = vmul.f32 %v773_v3, %v234_v28 }
  0x18   : > { %v311_v45 = vpack.c.bf16 %v300_v34, %v299_v31  ;;  %v308_v46 = vpack.c.bf16 %v294_v36, %v293_v35  ;;  %v302_v47 = vmax.f32 %v286_v37, 0.0  ;;  %v264_v48 = vmul.f32 %v773_v3, %v241_v33 }
  0x19   : > { %683 = vmatprep.mubr.msk.bf16.mxu0 %vm334_vm1, %v307_v40  ;;  %v279_v49 = vadd.f32 %v783_v4, %v256_v42  ;;  %v280_v50 = vadd.f32 %v783_v4, %v257_v43  ;;  %v265_v51 = vmul.f32 %v773_v3, %v242_v38  ;;  %v258_v52 = vmul.f32 %v773_v3, %v235_v39 }
  0x1a   : > { %691 = vmatprep.mubr.msk.bf16.mxu1 %vm334_vm1, %v311_v45  ;;  %684 = vmatmul.mubr.msk.bf16.vlgmr.msra.gmra.mrb[0].mxu0 %vm334_vm1, %v308_v46  ;;  %v312_v55 = vpack.c.bf16 %v302_v47, %v301_v41  ;;  %v287_v56 = vadd.f32 %v783_v4, %v264_v48  ;;  %v259_v57 = vmul.f32 %v773_v3, %v236_v44 }
  0x1b   : > { %v295_v58 = vmax.f32 %v279_v49, 0.0  ;;  %v296_v59 = vmax.f32 %v280_v50, 0.0  ;;  %v288_v60 = vadd.f32 %v783_v4, %v265_v51  ;;  %v281_v61 = vadd.f32 %v783_v4, %v258_v52 }
  0x1c   : > { %692 = vmatmul.mubr.msk.bf16.vlgmr.msra.gmra.mrb[0].mxu1 %vm334_vm1, %v312_v55  ;;  %v303_v62 = vmax.f32 %v287_v56, 0.0  ;;  %v282_v63 = vadd.f32 %v783_v4, %v259_v57  ;;  %v266_v0 = vmul.f32 %v773_v3, %v243_v53  ;;  %v267_v1 = vmul.f32 %v773_v3, %v244_v54 }
  0x1d   : > { %v309_v2 = vpack.c.bf16 %v296_v59, %v295_v58  ;;  %v304_v5 = vmax.f32 %v288_v60, 0.0  ;;  %v297_v6 = vmax.f32 %v281_v61, 0.0 }
  0x1e   : > { %v298_v7 = vmax.f32 %v282_v63, 0.0  ;;  %v289_v8 = vadd.f32 %v783_v4, %v266_v0  ;;  %v290_v9 = vadd.f32 %v783_v4, %v267_v1 }
  0x1f   : > { %687 = vmatprep.mubr.msk.bf16.mxu0 %vm334_vm1, %v309_v2  ;;  %v313_v10 = vpack.c.bf16 %v304_v5, %v303_v62 }
  0x20   : > { %v310_v11 = vpack.c.bf16 %v298_v7, %v297_v6  ;;  %v305_v12 = vmax.f32 %v289_v8, 0.0  ;;  %v306_v13 = vmax.f32 %v290_v9, 0.0 }
  0x21   : > { %695 = vmatprep.mubr.msk.bf16.mxu1 %vm334_vm1, %v313_v10 }
  0x22   : > { %688 = vmatmul.mubr.msk.bf16.gmra.mrb[4].mxu0 %vm334_vm1, %v310_v11  ;;  %v314_v3 = vpack.c.bf16 %v306_v13, %v305_v12 }
  0x24   : > { %696 = vmatmul.mubr.msk.bf16.gmra.mrb[4].mxu1 %vm334_vm1, %v314_v3 }
  0xed   : > { %v685_v15 = vpop.f32.mrb[0].mxu0 }
  0xee   : > { %v406_v4 = vadd.f32 %v685_v15, %v844_v14  ;;  %v397_v16 = vpop.f32.mrb[1].mxu0 }
  0xef   : > { %v693_v17 = vpop.f32.mrb[0].mxu1  ;;  %v398_v18 = vadd.f32 %v844_v14, %v397_v16  ;;  %v686_v19 = vpop.f32.mrb[2].mxu0 }
  0xf0   : > { %v462_v20 = vmax.f32 %v406_v4, 0.0  ;;  %v438_v21 = vadd.f32 %v693_v17, %v844_v14  ;;  %v429_v22 = vpop.f32.mrb[1].mxu1  ;;  %v409_v23 = vadd.f32 %v686_v19, %v844_v14  ;;  %v400_v24 = vpop.f32.mrb[3].mxu0 }
  0xf1   : > { %v460_v25 = vmax.f32 %v398_v18, 0.0  ;;  %v430_v26 = vadd.f32 %v844_v14, %v429_v22  ;;  %v694_v27 = vpop.f32.mrb[2].mxu1  ;;  %v401_v28 = vadd.f32 %v844_v14, %v400_v24 }
  0xf2   : > { %v655_v29 = vpack.c.bf16 %v462_v20, %v462_v20  ;;  %v470_v30 = vmax.f32 %v438_v21, 0.0  ;;  %v463_v31 = vmax.f32 %v409_v23, 0.0  ;;  %v441_v32 = vadd.f32 %v694_v27, %v844_v14  ;;  %v432_v33 = vpop.f32.mrb[3].mxu1 }
  0xf3   : > { %v653_v34 = vpack.c.bf16 %v460_v25, %v460_v25  ;;  %v468_v35 = vmax.f32 %v430_v26, 0.0  ;;  %v461_v36 = vmax.f32 %v401_v28, 0.0  ;;  %v433_v37 = vadd.f32 %v844_v14, %v432_v33 }
  0xf4   : > { %543 = vst.msk [vmem:[%s854_s13 + $0x8] sm:$0xf] %vm540_vm2, %v655_v29  ;;  %v663_v38 = vpack.c.bf16 %v470_v30, %v470_v30  ;;  %v656_v39 = vpack.c.bf16 %v463_v31, %v463_v31  ;;  %v471_v40 = vmax.f32 %v441_v32, 0.0 }
  0xf5   : > { %541 = vst.msk [vmem:[%s854_s13] sm:$0xf] %vm540_vm2, %v653_v34  ;;  %v661_v41 = vpack.c.bf16 %v468_v35, %v468_v35  ;;  %v654_v42 = vpack.c.bf16 %v461_v36, %v461_v36  ;;  %v469_v43 = vmax.f32 %v433_v37, 0.0  ;;  %v689_v44 = vpop.f32.mrb[4].mxu0 }
  0xf6   : > { %551 = vst.msk [vmem:[%s854_s13 + $0x28] sm:$0xf] %vm540_vm2, %v663_v38  ;;  %544 = vst.msk [vmem:[%s854_s13 + $0xc] sm:$0xf] %vm540_vm2, %v656_v39  ;;  %v664_v45 = vpack.c.bf16 %v471_v40, %v471_v40  ;;  %v422_v46 = vadd.f32 %v689_v44, %v844_v14  ;;  %v413_v47 = vpop.f32.mrb[5].mxu0 }
  0xf7   : > { %549 = vst.msk [vmem:[%s854_s13 + $0x20] sm:$0xf] %vm540_vm2, %v661_v41  ;;  %542 = vst.msk [vmem:[%s854_s13 + $0x4] sm:$0xf] %vm540_vm2, %v654_v42  ;;  %v662_v48 = vpack.c.bf16 %v469_v43, %v469_v43  ;;  %v697_v49 = vpop.f32.mrb[4].mxu1  ;;  %v414_v50 = vadd.f32 %v844_v14, %v413_v47  ;;  %v690_v51 = vpop.f32.mrb[6].mxu0 }
  0xf8   : > { %552 = vst.msk [vmem:[%s854_s13 + $0x2c] sm:$0xf] %vm540_vm2, %v664_v45  ;;  %v466_v52 = vmax.f32 %v422_v46, 0.0  ;;  %v454_v53 = vadd.f32 %v697_v49, %v844_v14  ;;  %v445_v54 = vpop.f32.mrb[5].mxu1  ;;  %v425_v55 = vadd.f32 %v690_v51, %v844_v14  ;;  %v416_v56 = vpop.f32.mrb[7].mxu0 }
  0xf9   : > { %550 = vst.msk [vmem:[%s854_s13 + $0x24] sm:$0xf] %vm540_vm2, %v662_v48  ;;  %v464_v57 = vmax.f32 %v414_v50, 0.0  ;;  %v446_v58 = vadd.f32 %v844_v14, %v445_v54  ;;  %v698_v59 = vpop.f32.mrb[6].mxu1  ;;  %v417_v60 = vadd.f32 %v844_v14, %v416_v56 }
  0xfa   : > { %v659_v61 = vpack.c.bf16 %v466_v52, %v466_v52  ;;  %v474_v62 = vmax.f32 %v454_v53, 0.0  ;;  %v467_v63 = vmax.f32 %v425_v55, 0.0  ;;  %v457_v0 = vadd.f32 %v698_v59, %v844_v14  ;;  %v448_v1 = vpop.f32.mrb[7].mxu1 }
  0xfb   : > { %v657_v2 = vpack.c.bf16 %v464_v57, %v464_v57  ;;  %v472_v5 = vmax.f32 %v446_v58, 0.0  ;;  %v465_v6 = vmax.f32 %v417_v60, 0.0  ;;  %v449_v7 = vadd.f32 %v844_v14, %v448_v1 }
  0xfc   : > { %547 = vst.msk [vmem:[%s854_s13 + $0x18] sm:$0xf] %vm540_vm2, %v659_v61  ;;  %v667_v8 = vpack.c.bf16 %v474_v62, %v474_v62  ;;  %v660_v9 = vpack.c.bf16 %v467_v63, %v467_v63  ;;  %v475_v10 = vmax.f32 %v457_v0, 0.0 }
  0xfd   : > { %545 = vst.msk [vmem:[%s854_s13 + $0x10] sm:$0xf] %vm540_vm2, %v657_v2  ;;  %v665_v11 = vpack.c.bf16 %v472_v5, %v472_v5  ;;  %v658_v12 = vpack.c.bf16 %v465_v6, %v465_v6  ;;  %v473_v13 = vmax.f32 %v449_v7, 0.0 }
  0xfe   : > { %555 = vst.msk [vmem:[%s854_s13 + $0x38] sm:$0xf] %vm540_vm2, %v667_v8  ;;  %548 = vst.msk [vmem:[%s854_s13 + $0x1c] sm:$0xf] %vm540_vm2, %v660_v9  ;;  %v668_v3 = vpack.c.bf16 %v475_v10, %v475_v10 }
  0xff   : > { %553 = vst.msk [vmem:[%s854_s13 + $0x30] sm:$0xf] %vm540_vm2, %v665_v11  ;;  %546 = vst.msk [vmem:[%s854_s13 + $0x14] sm:$0xf] %vm540_vm2, %v658_v12  ;;  %v666_v14 = vpack.c.bf16 %v473_v13, %v473_v13 }
 0x100   : > { %556 = vst.msk [vmem:[%s854_s13 + $0x3c] sm:$0xf] %vm540_vm2, %v668_v3 }
 0x101   : > { %554 = vst.msk [vmem:[%s854_s13 + $0x34] sm:$0xf] %vm540_vm2, %v666_v14 }
 0x102 PF: > { %s15_s18 = sadd.s32 1, %s721_s18  }
 0x103   : > { %p12_p4 = scmp.ge.s32.totalorder %s15_s18, 6  }
 0x105   :  { %14 = sbr.rel (!%p12_p4) target bundleno = 1 (0x1), region = 70 }

// kernel: densenet_seg_forward.16
= control target key start
LH: loop header
LB: loop body
LE: loop exit
PB: predicated region body
PF: predicated region fallthrough
CT: control target
= control target key end

     0   :  { %vm733_vm0 = vcmask 261120   ;;  %vm855_vm1 = vcmask 130048   ;;  %s1666_s0 = inlined_call_operand.vmem [shape: f32[512,32], index: 0, kind: input, shape index: {}]   ;;  %s1667_s1 = inlined_call_operand.vmem [shape: f32[1,32], index: 1, kind: input, shape index: {}]   ;;  %s1668_s2 = inlined_call_operand.vmem [shape: f32[1,32], index: 2, kind: input, shape index: {}]   ;;  %s1669_s3 = inlined_call_operand.vmem [shape: bf16[128,512], index: 3, kind: input, shape index: {}]   ;;  %s1670_s4 = inlined_call_operand.vmem [shape: bf16[32,16], index: 4, kind: input, shape index: {}]   ;;  %s1671_s5 = inlined_call_operand.vmem [shape: f32[128,16], index: 5, kind: output, shape index: {}]  }
   0x1   :  { %v37_v0 = vld [vmem:[%s1666_s0 + $0x80] sm:$0xff]  ;;  %v38_v1 = vld [vmem:[%s1666_s0 + $0x88] sm:$0xff]  ;;  %v39_v22 = vld [vmem:[%s1666_s0 + $0x90] sm:$0xff] }
   0x2   :  { %v1171_v2 = vld [vmem:[%s1667_s1] ss:$0 sm:$0xff]  ;;  %v70_v7 = vld [vmem:[%s1666_s0 + $0x188] sm:$0xff]  ;;  %v40_v27 = vld [vmem:[%s1666_s0 + $0x98] sm:$0xff] }
   0x3   :  { %v108_v3 = vmul.f32 %v1171_v2, %v37_v0  ;;  %v109_v4 = vmul.f32 %v1171_v2, %v38_v1  ;;  %v1178_v5 = vld [vmem:[%s1668_s2] ss:$0 sm:$0xff]  ;;  %v141_v9 = vmul.f32 %v1171_v2, %v70_v7  ;;  %v22_v11 = vld [vmem:[%s1666_s0 + $0x8] sm:$0xff]  ;;  %v71_v32 = vld [vmem:[%s1666_s0 + $0x190] sm:$0xff]  ;;  %v110_v37 = vmul.f32 %v1171_v2, %v39_v22 }
   0x4   :  { %v69_v6 = vld [vmem:[%s1666_s0 + $0x180] sm:$0xff]  ;;  %v93_v16 = vmul.f32 %v1171_v2, %v22_v11  ;;  %v54_v17 = vld [vmem:[%s1666_s0 + $0x108] sm:$0xff]  ;;  %v72_v33 = vld [vmem:[%s1666_s0 + $0x198] sm:$0xff]  ;;  %v111_v43 = vmul.f32 %v1171_v2, %v40_v27  ;;  %v142_v47 = vmul.f32 %v1171_v2, %v71_v32 }
   0x5   :  { %v140_v8 = vmul.f32 %v1171_v2, %v69_v6  ;;  %v21_v10 = vld [vmem:[%s1666_s0] sm:$0xff]  ;;  %v179_v13 = vadd.f32 %v1178_v5, %v108_v3  ;;  %v180_v14 = vadd.f32 %v1178_v5, %v109_v4  ;;  %v212_v19 = vadd.f32 %v1178_v5, %v141_v9  ;;  %v23_v38 = vld [vmem:[%s1666_s0 + $0x10] sm:$0xff]  ;;  %v24_v39 = vld [vmem:[%s1666_s0 + $0x18] sm:$0xff] }
   0x6   :  { %v53_v12 = vld [vmem:[%s1666_s0 + $0x100] sm:$0xff]  ;;  %v92_v15 = vmul.f32 %v1171_v2, %v21_v10  ;;  %v125_v21 = vmul.f32 %v1171_v2, %v54_v17  ;;  %v164_v26 = vadd.f32 %v1178_v5, %v93_v16  ;;  %v55_v44 = vld [vmem:[%s1666_s0 + $0x110] sm:$0xff]  ;;  %v181_v46 = vadd.f32 %v1178_v5, %v110_v37  ;;  %v56_v49 = vld [vmem:[%s1666_s0 + $0x118] sm:$0xff] }
   0x7   :  { %v211_v18 = vadd.f32 %v1178_v5, %v140_v8  ;;  %v124_v20 = vmul.f32 %v1171_v2, %v53_v12  ;;  %v243_v23 = vmax.f32 %v179_v13, 0.0  ;;  %v244_v24 = vmax.f32 %v180_v14, 0.0  ;;  %v41_v54 = vld [vmem:[%s1666_s0 + $0xa0] sm:$0xff]  ;;  %v42_v63 = vld [vmem:[%s1666_s0 + $0xa8] sm:$0xff]  ;;  %v44_v37 = vld [vmem:[%s1666_s0 + $0xb8] sm:$0xff] }
   0x8   :  { %v163_v25 = vadd.f32 %v1178_v5, %v92_v15  ;;  %v276_v29 = vmax.f32 %v212_v19, 0.0  ;;  %v196_v31 = vadd.f32 %v1178_v5, %v125_v21  ;;  %v228_v36 = vmax.f32 %v164_v26, 0.0  ;;  %v73_v6 = vld [vmem:[%s1666_s0 + $0x1a0] sm:$0xff]  ;;  %v74_v7 = vld [vmem:[%s1666_s0 + $0x1a8] sm:$0xff] }
   0x9   :  { %v275_v28 = vmax.f32 %v211_v18, 0.0  ;;  %v195_v30 = vadd.f32 %v1178_v5, %v124_v20  ;;  %v331_v34 = vpack.c.bf16 %v244_v24, %v243_v23  ;;  %v143_v48 = vmul.f32 %v1171_v2, %v72_v33  ;;  %v25_v12 = vld [vmem:[%s1666_s0 + $0x20] sm:$0xff]  ;;  %v26_v13 = vld [vmem:[%s1666_s0 + $0x28] sm:$0xff] }
   0xa   :  { %v227_v35 = vmax.f32 %v163_v25, 0.0  ;;  %v260_v42 = vmax.f32 %v196_v31, 0.0  ;;  %v182_v51 = vadd.f32 %v1178_v5, %v111_v43  ;;  %v94_v52 = vmul.f32 %v1171_v2, %v23_v38  ;;  %v57_v18 = vld [vmem:[%s1666_s0 + $0x120] sm:$0xff]  ;;  %v58_v23 = vld [vmem:[%s1666_s0 + $0x128] sm:$0xff]  ;;  %v76_v43 = vld [vmem:[%s1666_s0 + $0x1b8] sm:$0xff] }
   0xb   :  { %v347_v40 = vpack.c.bf16 %v276_v29, %v275_v28  ;;  %v259_v41 = vmax.f32 %v195_v30, 0.0  ;;  %920 = vmatprep.subr.bf16.mxu0 %v331_v34  ;;  %v95_v53 = vmul.f32 %v1171_v2, %v24_v39  ;;  %v245_v55 = vmax.f32 %v181_v46, 0.0  ;;  %v43_v28 = vld [vmem:[%s1666_s0 + $0xb0] sm:$0xff] }
   0xc   :  { %v323_v45 = vpack.c.bf16 %v228_v36, %v227_v35  ;;  %v213_v56 = vadd.f32 %v1178_v5, %v142_v47  ;;  %v214_v57 = vadd.f32 %v1178_v5, %v143_v48  ;;  %v126_v58 = vmul.f32 %v1171_v2, %v55_v44  ;;  %v27_v48 = vld [vmem:[%s1666_s0 + $0x30] sm:$0xff] }
   0xd   :  { %984 = vmatprep.subr.bf16.mxu1 %v347_v40  ;;  %v339_v50 = vpack.c.bf16 %v260_v42, %v259_v41  ;;  %v246_v59 = vmax.f32 %v182_v51, 0.0  ;;  %v165_v60 = vadd.f32 %v1178_v5, %v94_v52  ;;  %v166_v61 = vadd.f32 %v1178_v5, %v95_v53  ;;  %v75_v42 = vld [vmem:[%s1666_s0 + $0x1b0] sm:$0xff] }
   0xe   :  { %921 = vmatpush3.bf16.msra.mxu0 %v323_v45  ;;  %v127_v62 = vmul.f32 %v1171_v2, %v56_v49  ;;  %v277_v0 = vmax.f32 %v213_v56, 0.0  ;;  %v278_v1 = vmax.f32 %v214_v57, 0.0  ;;  %v197_v3 = vadd.f32 %v1178_v5, %v126_v58  ;;  %v28_v49 = vld [vmem:[%s1666_s0 + $0x38] sm:$0xff] }
   0xf   :  { %985 = vmatpush3.bf16.msra.mxu1 %v339_v50  ;;  %v112_v4 = vmul.f32 %v1171_v2, %v41_v54  ;;  %v332_v8 = vpack.c.bf16 %v246_v59, %v245_v55  ;;  %v229_v9 = vmax.f32 %v165_v60, 0.0  ;;  %v230_v10 = vmax.f32 %v166_v61, 0.0  ;;  %v59_v50 = vld [vmem:[%s1666_s0 + $0x130] sm:$0xff]  ;;  %v60_v55 = vld [vmem:[%s1666_s0 + $0x138] sm:$0xff] }
  0x10   :  { %v198_v11 = vadd.f32 %v1178_v5, %v127_v62  ;;  %v348_v14 = vpack.c.bf16 %v278_v1, %v277_v0  ;;  %v261_v15 = vmax.f32 %v197_v3, 0.0  ;;  %v113_v16 = vmul.f32 %v1171_v2, %v42_v63  ;;  %v1084_v60 = vld [vmem:[%s1669_s3 + $0x4] ss:$16 sps:$4 sm:$0xff]   ;;  %v1087_v3 = vld [vmem:[%s1669_s3 + $0xc] ss:$16 sps:$4 sm:$0xff]  }
  0x11   :  { %v183_v17 = vadd.f32 %v1178_v5, %v112_v4  ;;  %922 = vmatprep.subr.bf16.mxu0 %v332_v8  ;;  %v324_v19 = vpack.c.bf16 %v230_v10, %v229_v9  ;;  %v144_v21 = vmul.f32 %v1171_v2, %v73_v6  ;;  %v145_v22 = vmul.f32 %v1171_v2, %v74_v7  ;;  %v45_v1 = vld [vmem:[%s1666_s0 + $0xc0] sm:$0xff]  ;;  %v46_v9 = vld [vmem:[%s1666_s0 + $0xc8] sm:$0xff] }
  0x12   :  { %v262_v20 = vmax.f32 %v198_v11, 0.0  ;;  %986 = vmatprep.subr.bf16.mxu1 %v348_v14  ;;  %v184_v24 = vadd.f32 %v1178_v5, %v113_v16  ;;  %v96_v26 = vmul.f32 %v1171_v2, %v25_v12  ;;  %v97_v27 = vmul.f32 %v1171_v2, %v26_v13  ;;  %v77_v14 = vld [vmem:[%s1666_s0 + $0x1c0] sm:$0xff]  ;;  %547 = vmatprep.mubr.bf16.mxu0 %v1084_v60  ;;  %v31_v60 = vld [vmem:[%s1666_s0 + $0x50] sm:$0xff] }
  0x13   :  { %v247_v25 = vmax.f32 %v183_v17, 0.0  ;;  %923 = vmatpush3.bf16.msra.mxu0 %v324_v19  ;;  %v215_v30 = vadd.f32 %v1178_v5, %v144_v21  ;;  %v216_v31 = vadd.f32 %v1178_v5, %v145_v22  ;;  %v128_v32 = vmul.f32 %v1171_v2, %v57_v18  ;;  %644 = vmatprep.mubr.bf16.mxu1 %v1087_v3  ;;  %v63_v3 = vld [vmem:[%s1666_s0 + $0x150] sm:$0xff] }
  0x14   :  { %v340_v29 = vpack.c.bf16 %v262_v20, %v261_v15  ;;  %v248_v33 = vmax.f32 %v184_v24, 0.0  ;;  %v167_v34 = vadd.f32 %v1178_v5, %v96_v26  ;;  %v168_v35 = vadd.f32 %v1178_v5, %v97_v27  ;;  %v78_v15 = vld [vmem:[%s1666_s0 + $0x1c8] sm:$0xff]  ;;  %v29_v20 = vld [vmem:[%s1666_s0 + $0x40] sm:$0xff] }
  0x15   :  { %v129_v36 = vmul.f32 %v1171_v2, %v58_v23  ;;  %v279_v38 = vmax.f32 %v215_v30, 0.0  ;;  %v280_v39 = vmax.f32 %v216_v31, 0.0  ;;  %v199_v40 = vadd.f32 %v1178_v5, %v128_v32  ;;  %v61_v30 = vld [vmem:[%s1666_s0 + $0x140] sm:$0xff] }
  0x16   :  { %987 = vmatpush3.bf16.msra.mxu1 %v340_v29  ;;  %v114_v41 = vmul.f32 %v1171_v2, %v43_v28  ;;  %v333_v44 = vpack.c.bf16 %v248_v33, %v247_v25  ;;  %v231_v45 = vmax.f32 %v167_v34, 0.0  ;;  %v232_v46 = vmax.f32 %v168_v35, 0.0  ;;  %v30_v25 = vld [vmem:[%s1666_s0 + $0x48] sm:$0xff] }
  0x17   :  { %v200_v47 = vadd.f32 %v1178_v5, %v129_v36  ;;  %v349_v51 = vpack.c.bf16 %v280_v39, %v279_v38  ;;  %v263_v52 = vmax.f32 %v199_v40, 0.0  ;;  %v115_v53 = vmul.f32 %v1171_v2, %v44_v37  ;;  %v62_v35 = vld [vmem:[%s1666_s0 + $0x148] sm:$0xff]  ;;  %v47_v40 = vld [vmem:[%s1666_s0 + $0xd0] sm:$0xff] }
  0x18   :  { %v185_v54 = vadd.f32 %v1178_v5, %v114_v41  ;;  %924 = vmatprep.subr.bf16.mxu0 %v333_v44  ;;  %v325_v56 = vpack.c.bf16 %v232_v46, %v231_v45  ;;  %v146_v58 = vmul.f32 %v1171_v2, %v75_v42  ;;  %v147_v59 = vmul.f32 %v1171_v2, %v76_v43  ;;  %v48_v45 = vld [vmem:[%s1666_s0 + $0xd8] sm:$0xff] }
  0x19   :  { %v264_v57 = vmax.f32 %v200_v47, 0.0  ;;  %988 = vmatprep.subr.bf16.mxu1 %v349_v51  ;;  %v186_v61 = vadd.f32 %v1178_v5, %v115_v53  ;;  %v98_v63 = vmul.f32 %v1171_v2, %v27_v48  ;;  %v99_v0 = vmul.f32 %v1171_v2, %v28_v49 }
  0x1a   :  { %v249_v62 = vmax.f32 %v185_v54, 0.0  ;;  %925 = vmatpush3.bf16.msra.mxu0 %v325_v56  ;;  %v217_v6 = vadd.f32 %v1178_v5, %v146_v58  ;;  %v218_v7 = vadd.f32 %v1178_v5, %v147_v59  ;;  %v130_v8 = vmul.f32 %v1171_v2, %v59_v50  ;;  %v79_v50 = vld [vmem:[%s1666_s0 + $0x1d0] sm:$0xff] }
  0x1b   :  { %v341_v4 = vpack.c.bf16 %v264_v57, %v263_v52  ;;  %v250_v10 = vmax.f32 %v186_v61, 0.0  ;;  %v169_v11 = vadd.f32 %v1178_v5, %v98_v63  ;;  %v170_v12 = vadd.f32 %v1178_v5, %v99_v0  ;;  %v32_v61 = vld [vmem:[%s1666_s0 + $0x58] sm:$0xff] }
  0x1c   :  { %v131_v13 = vmul.f32 %v1171_v2, %v60_v55  ;;  %v281_v16 = vmax.f32 %v217_v6, 0.0  ;;  %v282_v17 = vmax.f32 %v218_v7, 0.0  ;;  %v201_v18 = vadd.f32 %v1178_v5, %v130_v8  ;;  %v80_v55 = vld [vmem:[%s1666_s0 + $0x1d8] sm:$0xff] }
  0x1d   :  { %989 = vmatpush3.bf16.msra.mxu1 %v341_v4  ;;  %v116_v19 = vmul.f32 %v1171_v2, %v45_v1  ;;  %v334_v21 = vpack.c.bf16 %v250_v10, %v249_v62  ;;  %v233_v22 = vmax.f32 %v169_v11, 0.0  ;;  %v234_v23 = vmax.f32 %v170_v12, 0.0 }
  0x1e   :  { %v202_v24 = vadd.f32 %v1178_v5, %v131_v13  ;;  %v350_v26 = vpack.c.bf16 %v282_v17, %v281_v16  ;;  %v265_v27 = vmax.f32 %v201_v18, 0.0  ;;  %v117_v28 = vmul.f32 %v1171_v2, %v46_v9  ;;  %v64_v9 = vld [vmem:[%s1666_s0 + $0x158] sm:$0xff] }
  0x1f   :  { %v187_v29 = vadd.f32 %v1178_v5, %v116_v19  ;;  %926 = vmatprep.subr.bf16.mxu0 %v334_v21  ;;  %v326_v31 = vpack.c.bf16 %v234_v23, %v233_v22  ;;  %v148_v33 = vmul.f32 %v1171_v2, %v77_v14  ;;  %v149_v34 = vmul.f32 %v1171_v2, %v78_v15  ;;  %v49_v14 = vld [vmem:[%s1666_s0 + $0xe0] sm:$0xff]  ;;  %v50_v23 = vld [vmem:[%s1666_s0 + $0xe8] sm:$0xff] }
  0x20   :  { %v266_v32 = vmax.f32 %v202_v24, 0.0  ;;  %990 = vmatprep.subr.bf16.mxu1 %v350_v26  ;;  %v188_v36 = vadd.f32 %v1178_v5, %v117_v28  ;;  %v100_v38 = vmul.f32 %v1171_v2, %v29_v20  ;;  %v101_v39 = vmul.f32 %v1171_v2, %v30_v25  ;;  %v81_v24 = vld [vmem:[%s1666_s0 + $0x1e0] sm:$0xff] }
  0x21   :  { %v251_v37 = vmax.f32 %v187_v29, 0.0  ;;  %927 = vmatpush3.bf16.msra.mxu0 %v326_v31  ;;  %v219_v42 = vadd.f32 %v1178_v5, %v148_v33  ;;  %v220_v43 = vadd.f32 %v1178_v5, %v149_v34  ;;  %v132_v44 = vmul.f32 %v1171_v2, %v61_v30  ;;  %v82_v29 = vld [vmem:[%s1666_s0 + $0x1e8] sm:$0xff]  ;;  %v33_v34 = vld [vmem:[%s1666_s0 + $0x60] sm:$0xff] }
  0x22   :  { %v342_v41 = vpack.c.bf16 %v266_v32, %v265_v27  ;;  %v252_v46 = vmax.f32 %v188_v36, 0.0  ;;  %v171_v47 = vadd.f32 %v1178_v5, %v100_v38  ;;  %v172_v48 = vadd.f32 %v1178_v5, %v101_v39 }
  0x23   :  { %v133_v49 = vmul.f32 %v1171_v2, %v62_v35  ;;  %v283_v51 = vmax.f32 %v219_v42, 0.0  ;;  %v284_v52 = vmax.f32 %v220_v43, 0.0  ;;  %v203_v53 = vadd.f32 %v1178_v5, %v132_v44  ;;  %v34_v35 = vld [vmem:[%s1666_s0 + $0x68] sm:$0xff] }
  0x24   :  { %991 = vmatpush3.bf16.msra.mxu1 %v342_v41  ;;  %v118_v54 = vmul.f32 %v1171_v2, %v47_v40  ;;  %v335_v56 = vpack.c.bf16 %v252_v46, %v251_v37  ;;  %v235_v57 = vmax.f32 %v171_v47, 0.0  ;;  %v236_v58 = vmax.f32 %v172_v48, 0.0  ;;  %v65_v40 = vld [vmem:[%s1666_s0 + $0x160] sm:$0xff] }
  0x25   :  { %v204_v59 = vadd.f32 %v1178_v5, %v133_v49  ;;  %v351_v62 = vpack.c.bf16 %v284_v52, %v283_v51  ;;  %v267_v63 = vmax.f32 %v203_v53, 0.0  ;;  %v119_v0 = vmul.f32 %v1171_v2, %v48_v45  ;;  %v66_v45 = vld [vmem:[%s1666_s0 + $0x168] sm:$0xff] }
  0x26   :  { %v189_v1 = vadd.f32 %v1178_v5, %v118_v54  ;;  %928 = vmatprep.subr.bf16.mxu0 %v335_v56  ;;  %v327_v4 = vpack.c.bf16 %v236_v58, %v235_v57  ;;  %v150_v7 = vmul.f32 %v1171_v2, %v79_v50  ;;  %v151_v8 = vmul.f32 %v1171_v2, %v80_v55  ;;  %v51_v50 = vld [vmem:[%s1666_s0 + $0xf0] sm:$0xff] }
  0x27   :  { %v268_v6 = vmax.f32 %v204_v59, 0.0  ;;  %992 = vmatprep.subr.bf16.mxu1 %v351_v62  ;;  %v190_v10 = vadd.f32 %v1178_v5, %v119_v0  ;;  %v102_v12 = vmul.f32 %v1171_v2, %v31_v60  ;;  %v103_v13 = vmul.f32 %v1171_v2, %v32_v61  ;;  %v52_v59 = vld [vmem:[%s1666_s0 + $0xf8] sm:$0xff]  ;;  %v83_v0 = vld [vmem:[%s1666_s0 + $0x1f0] sm:$0xff] }
  0x28   :  { %v253_v11 = vmax.f32 %v189_v1, 0.0  ;;  %929 = vmatpush3.bf16.msra.mxu0 %v327_v4  ;;  %v221_v16 = vadd.f32 %v1178_v5, %v150_v7  ;;  %v222_v17 = vadd.f32 %v1178_v5, %v151_v8  ;;  %v134_v18 = vmul.f32 %v1171_v2, %v63_v3  ;;  %v84_v1 = vld [vmem:[%s1666_s0 + $0x1f8] sm:$0xff]  ;;  %v35_v8 = vld [vmem:[%s1666_s0 + $0x70] sm:$0xff] }
  0x29   :  { %v343_v15 = vpack.c.bf16 %v268_v6, %v267_v63  ;;  %v254_v19 = vmax.f32 %v190_v10, 0.0  ;;  %v173_v20 = vadd.f32 %v1178_v5, %v102_v12  ;;  %v174_v21 = vadd.f32 %v1178_v5, %v103_v13 }
  0x2a   :  { %v135_v22 = vmul.f32 %v1171_v2, %v64_v9  ;;  %v285_v25 = vmax.f32 %v221_v16, 0.0  ;;  %v286_v26 = vmax.f32 %v222_v17, 0.0  ;;  %v205_v27 = vadd.f32 %v1178_v5, %v134_v18  ;;  %v36_v9 = vld [vmem:[%s1666_s0 + $0x78] sm:$0xff] }
  0x2b   :  { %993 = vmatpush3.bf16.msra.mxu1 %v343_v15  ;;  %v120_v28 = vmul.f32 %v1171_v2, %v49_v14  ;;  %v336_v30 = vpack.c.bf16 %v254_v19, %v253_v11  ;;  %v237_v31 = vmax.f32 %v173_v20, 0.0  ;;  %v238_v32 = vmax.f32 %v174_v21, 0.0  ;;  %v67_v14 = vld [vmem:[%s1666_s0 + $0x170] sm:$0xff]  ;;  %v68_v19 = vld [vmem:[%s1666_s0 + $0x178] sm:$0xff] }
  0x2c   :  { %v206_v33 = vadd.f32 %v1178_v5, %v135_v22  ;;  %v352_v36 = vpack.c.bf16 %v286_v26, %v285_v25  ;;  %v269_v37 = vmax.f32 %v205_v27, 0.0  ;;  %v121_v38 = vmul.f32 %v1171_v2, %v50_v23 }
  0x2d   :  { %v191_v39 = vadd.f32 %v1178_v5, %v120_v28  ;;  %930 = vmatprep.subr.bf16.mxu0 %v336_v30  ;;  %v328_v41 = vpack.c.bf16 %v238_v32, %v237_v31  ;;  %v152_v43 = vmul.f32 %v1171_v2, %v81_v24  ;;  %v153_v44 = vmul.f32 %v1171_v2, %v82_v29 }
  0x2e   :  { %v270_v42 = vmax.f32 %v206_v33, 0.0  ;;  %994 = vmatprep.subr.bf16.mxu1 %v352_v36  ;;  %v192_v46 = vadd.f32 %v1178_v5, %v121_v38  ;;  %v104_v48 = vmul.f32 %v1171_v2, %v33_v34  ;;  %v105_v49 = vmul.f32 %v1171_v2, %v34_v35 }
  0x2f   :  { %v255_v47 = vmax.f32 %v191_v39, 0.0  ;;  %931 = vmatpush3.bf16.msra.mxu0 %v328_v41  ;;  %v223_v52 = vadd.f32 %v1178_v5, %v152_v43  ;;  %v224_v53 = vadd.f32 %v1178_v5, %v153_v44  ;;  %v136_v54 = vmul.f32 %v1171_v2, %v65_v40  ;;  %v1130_v41 = vld [vmem:[%s1670_s4] sm:$0xff]  }
  0x30   :  { %v344_v51 = vpack.c.bf16 %v270_v42, %v269_v37  ;;  %v256_v55 = vmax.f32 %v192_v46, 0.0  ;;  %v175_v56 = vadd.f32 %v1178_v5, %v104_v48  ;;  %v176_v57 = vadd.f32 %v1178_v5, %v105_v49  ;;  %v1090_v46 = vld [vmem:[%s1669_s3 + $0x2c] ss:$16 sps:$4 sm:$0xff]   ;;  %v1094_v48 = vld [vmem:[%s1669_s3 + $0x44] ss:$16 sps:$4 sm:$0xff]  }
  0x31   :  { %v137_v58 = vmul.f32 %v1171_v2, %v66_v45  ;;  %v287_v60 = vmax.f32 %v223_v52, 0.0  ;;  %v288_v61 = vmax.f32 %v224_v53, 0.0  ;;  %v207_v62 = vadd.f32 %v1178_v5, %v136_v54  ;;  %v1085_v45 = vld [vmem:[%s1669_s3 + $0x8] ss:$16 sps:$4 sm:$0xff]   ;;  %v1100_v52 = vld [vmem:[%s1669_s3 + $0x64] ss:$16 sps:$4 sm:$0xff]  }
  0x32   :  { %995 = vmatpush3.bf16.msra.mxu1 %v344_v51  ;;  %v122_v63 = vmul.f32 %v1171_v2, %v51_v50  ;;  %v337_v3 = vpack.c.bf16 %v256_v55, %v255_v47  ;;  %v239_v4 = vmax.f32 %v175_v56, 0.0  ;;  %v240_v6 = vmax.f32 %v176_v57, 0.0  ;;  %v1092_v47 = vld [vmem:[%s1669_s3 + $0x20] ss:$16 sps:$4 sm:$0xff]   ;;  %v1093_v49 = vld [vmem:[%s1669_s3 + $0x28] ss:$16 sps:$4 sm:$0xff]  }
  0x33   :  { %v208_v7 = vadd.f32 %v1178_v5, %v137_v58  ;;  %v353_v10 = vpack.c.bf16 %v288_v61, %v287_v60  ;;  %v271_v11 = vmax.f32 %v207_v62, 0.0  ;;  %v123_v12 = vmul.f32 %v1171_v2, %v52_v59  ;;  %v1096_v50 = vld [vmem:[%s1669_s3 + $0x4c] ss:$16 sps:$4 sm:$0xff]   ;;  %v1098_v51 = vld [vmem:[%s1669_s3 + $0x40] ss:$16 sps:$4 sm:$0xff]  }
  0x34   :  { %v193_v13 = vadd.f32 %v1178_v5, %v122_v63  ;;  %932 = vmatprep.subr.bf16.mxu0 %v337_v3  ;;  %v329_v15 = vpack.c.bf16 %v240_v6, %v239_v4  ;;  %v154_v17 = vmul.f32 %v1171_v2, %v83_v0  ;;  %v155_v18 = vmul.f32 %v1171_v2, %v84_v1  ;;  %v1099_v53 = vld [vmem:[%s1669_s3 + $0x48] ss:$16 sps:$4 sm:$0xff]   ;;  %v1102_v54 = vld [vmem:[%s1669_s3 + $0x6c] ss:$16 sps:$4 sm:$0xff]   ;;  %v1104_v55 = vld [vmem:[%s1669_s3 + $0x60] ss:$16 sps:$4 sm:$0xff]  }
  0x35   :  { %v272_v16 = vmax.f32 %v208_v7, 0.0  ;;  %996 = vmatprep.subr.bf16.mxu1 %v353_v10  ;;  %v194_v20 = vadd.f32 %v1178_v5, %v123_v12  ;;  %v106_v22 = vmul.f32 %v1171_v2, %v35_v8  ;;  %v107_v23 = vmul.f32 %v1171_v2, %v36_v9  ;;  %v1106_v56 = vld [vmem:[%s1669_s3 + $0x84] ss:$16 sps:$4 sm:$0xff]   ;;  %v1105_v57 = vld [vmem:[%s1669_s3 + $0x68] ss:$16 sps:$4 sm:$0xff]  }
  0x36   :  { %v257_v21 = vmax.f32 %v193_v13, 0.0  ;;  %933 = vmatpush3.bf16.msra.mxu0 %v329_v15  ;;  %v225_v25 = vadd.f32 %v1178_v5, %v154_v17  ;;  %v226_v26 = vadd.f32 %v1178_v5, %v155_v18  ;;  %v138_v27 = vmul.f32 %v1171_v2, %v67_v14  ;;  %v1108_v58 = vld [vmem:[%s1669_s3 + $0x8c] ss:$16 sps:$4 sm:$0xff]   ;;  %v1110_v59 = vld [vmem:[%s1669_s3 + $0x80] ss:$16 sps:$4 sm:$0xff]  }
  0x37   :  { %v345_v24 = vpack.c.bf16 %v272_v16, %v271_v11  ;;  %v258_v28 = vmax.f32 %v194_v20, 0.0  ;;  %v177_v29 = vadd.f32 %v1178_v5, %v106_v22  ;;  %v178_v30 = vadd.f32 %v1178_v5, %v107_v23  ;;  %v1112_v60 = vld [vmem:[%s1669_s3 + $0xa4] ss:$16 sps:$4 sm:$0xff]   ;;  %v1111_v61 = vld [vmem:[%s1669_s3 + $0x88] ss:$16 sps:$4 sm:$0xff]  }
  0x38   :  { %v139_v31 = vmul.f32 %v1171_v2, %v68_v19  ;;  %v289_v32 = vmax.f32 %v225_v25, 0.0  ;;  %v290_v33 = vmax.f32 %v226_v26, 0.0  ;;  %v209_v34 = vadd.f32 %v1178_v5, %v138_v27  ;;  %v1082_v2 = vld [vmem:[%s1669_s3] ss:$16 sps:$4 sm:$0xff]   ;;  %v1114_v62 = vld [vmem:[%s1669_s3 + $0xac] ss:$16 sps:$4 sm:$0xff]  }
  0x39   :  { %997 = vmatpush3.bf16.msra.mxu1 %v345_v24  ;;  %v338_v35 = vpack.c.bf16 %v258_v28, %v257_v21  ;;  %v241_v36 = vmax.f32 %v177_v29, 0.0  ;;  %v242_v37 = vmax.f32 %v178_v30, 0.0  ;;  %v1116_v63 = vld [vmem:[%s1669_s3 + $0xa0] ss:$16 sps:$4 sm:$0xff]   ;;  %v1118_v0 = vld [vmem:[%s1669_s3 + $0xc4] ss:$16 sps:$4 sm:$0xff]  }
  0x3a   :  { %v210_v38 = vadd.f32 %v1178_v5, %v139_v31  ;;  %v354_v39 = vpack.c.bf16 %v290_v33, %v289_v32  ;;  %v273_v40 = vmax.f32 %v209_v34, 0.0  ;;  %v1088_v5 = vld [vmem:[%s1669_s3 + $0x24] ss:$16 sps:$4 sm:$0xff]   ;;  %v1117_v1 = vld [vmem:[%s1669_s3 + $0xa8] ss:$16 sps:$4 sm:$0xff]  }
  0x3b   :  { %934 = vmatprep.subr.bf16.mxu0 %v338_v35  ;;  %v330_v42 = vpack.c.bf16 %v242_v37, %v241_v36  ;;  %v1120_v3 = vld [vmem:[%s1669_s3 + $0xcc] ss:$16 sps:$4 sm:$0xff]   ;;  %v1122_v4 = vld [vmem:[%s1669_s3 + $0xc0] ss:$16 sps:$4 sm:$0xff]   ;;  %v1124_v6 = vld [vmem:[%s1669_s3 + $0xe4] ss:$16 sps:$4 sm:$0xff]  }
  0x3c   :  { %v274_v43 = vmax.f32 %v210_v38, 0.0  ;;  %998 = vmatprep.subr.bf16.mxu1 %v354_v39  ;;  %v1123_v7 = vld [vmem:[%s1669_s3 + $0xc8] ss:$16 sps:$4 sm:$0xff]   ;;  %v1126_v8 = vld [vmem:[%s1669_s3 + $0xec] ss:$16 sps:$4 sm:$0xff]  }
  0x3d   :  { %935 = vmatpush3.bf16.msra.mxu0 %v330_v42  ;;  %v1128_v9 = vld [vmem:[%s1669_s3 + $0xe0] ss:$16 sps:$4 sm:$0xff]   ;;  %v1129_v10 = vld [vmem:[%s1669_s3 + $0xe8] ss:$16 sps:$4 sm:$0xff]  }
  0x3e   :  { %v346_v44 = vpack.c.bf16 %v274_v43, %v273_v40  ;;  %1058 = vmatprep.subr.bf16.mxu0 %v1130_v41  ;;  %v1131_v11 = vld [vmem:[%s1670_s4 + $0x8] sm:$0xff]  }
  0x40   :  { %999 = vmatpush3.bf16.msra.mxu1 %v346_v44  ;;  %548 = vmatmul.mubr.bf16.vlgmr.msra.gmra.mrb[0].mxu0 %v1082_v2 }
  0x41   :  { %1078 = vmatprep.subr.bf16.mxu1 %v1130_v41  ;;  %555 = vmatprep.mubr.bf16.mxu0 %v1088_v5 }
  0x42   :  { %1059 = vmatpush3.bf16.msra.mxu0 %v1130_v41 }
  0x43   :  { %645 = vmatmul.mubr.bf16.vlgmr.msra.gmra.mrb[0].mxu1 %v1085_v45  ;;  %1060 = vmatprep.subr.bf16.mxu0 %v1131_v11 }
  0x44   :  { %652 = vmatprep.mubr.bf16.mxu1 %v1090_v46  ;;  %1080 = vmatpush3.bf16.msra.mxu1 %v1130_v41 }
  0x45   :  { %1079 = vmatprep.subr.bf16.mxu1 %v1131_v11 }
  0x46   :  { %1061 = vmatpush3.bf16.msra.mxu0 %v1131_v11 }
  0x48   :  { %556 = vmatmul.mubr.bf16.gmra.mrb[4].mxu0 %v1092_v47  ;;  %1081 = vmatpush3.bf16.msra.mxu1 %v1131_v11 }
  0x49   :  { %563 = vmatprep.mubr.bf16.mxu0 %v1094_v48 }
  0x4b   :  { %653 = vmatmul.mubr.bf16.gmra.mrb[4].mxu1 %v1093_v49 }
  0x4c   :  { %660 = vmatprep.mubr.bf16.mxu1 %v1096_v50 }
  0x50   :  { %564 = vmatmul.mubr.bf16.gmra.mrb[8].mxu0 %v1098_v51 }
  0x51   :  { %571 = vmatprep.mubr.bf16.mxu0 %v1100_v52 }
  0x53   :  { %661 = vmatmul.mubr.bf16.gmra.mrb[8].mxu1 %v1099_v53 }
  0x54   :  { %668 = vmatprep.mubr.bf16.mxu1 %v1102_v54 }
  0x58   :  { %572 = vmatmul.mubr.bf16.gmra.mrb[12].mxu0 %v1104_v55 }
  0x59   :  { %579 = vmatprep.mubr.bf16.mxu0 %v1106_v56 }
  0x5b   :  { %669 = vmatmul.mubr.bf16.gmra.mrb[12].mxu1 %v1105_v57 }
  0x5c   :  { %676 = vmatprep.mubr.bf16.mxu1 %v1108_v58 }
  0x60   :  { %580 = vmatmul.mubr.bf16.gmra.mrb[16].mxu0 %v1110_v59 }
  0x61   :  { %587 = vmatprep.mubr.bf16.mxu0 %v1112_v60 }
  0x63   :  { %677 = vmatmul.mubr.bf16.gmra.mrb[16].mxu1 %v1111_v61 }
  0x64   :  { %684 = vmatprep.mubr.bf16.mxu1 %v1114_v62 }
  0x68   :  { %588 = vmatmul.mubr.bf16.gmra.mrb[20].mxu0 %v1116_v63 }
  0x69   :  { %595 = vmatprep.mubr.bf16.mxu0 %v1118_v0 }
  0x6b   :  { %685 = vmatmul.mubr.bf16.gmra.mrb[20].mxu1 %v1117_v1 }
  0x6c   :  { %692 = vmatprep.mubr.bf16.mxu1 %v1120_v3 }
  0x70   :  { %596 = vmatmul.mubr.bf16.gmra.mrb[24].mxu0 %v1122_v4 }
  0x71   :  { %603 = vmatprep.mubr.bf16.mxu0 %v1124_v6 }
  0x73   :  { %693 = vmatmul.mubr.bf16.gmra.mrb[24].mxu1 %v1123_v7 }
  0x74   :  { %700 = vmatprep.mubr.bf16.mxu1 %v1126_v8 }
  0x78   :  { %604 = vmatmul.mubr.bf16.gmra.mrb[28].mxu0 %v1128_v9 }
  0x7b   :  { %701 = vmatmul.mubr.bf16.gmra.mrb[28].mxu1 %v1129_v10 }
 0x113   :  { %v936_v12 = vpop.f32.mrb[0].mxu0 }
 0x114   :  { %v937_v13 = vpop.f32.mrb[1].mxu0 }
 0x115   :  { %v938_v15 = vadd.f32 %v937_v13, %v936_v12  ;;  %v939_v16 = vpop.f32.mrb[2].mxu0 }
 0x116   :  { %v1000_v14 = vpop.f32.mrb[0].mxu1  ;;  %v940_v18 = vpop.f32.mrb[3].mxu0 }
 0x117   :  { %v1001_v17 = vpop.f32.mrb[1].mxu1  ;;  %v941_v21 = vadd.f32 %v940_v18, %v939_v16 }
 0x118   :  { %v1002_v19 = vadd.f32 %v1001_v17, %v1000_v14  ;;  %v1003_v20 = vpop.f32.mrb[2].mxu1 }
 0x119   :  { %v1004_v22 = vpop.f32.mrb[3].mxu1 }
 0x11a   :  { %v647_v23 = vadd.f32 %v1002_v19, %v938_v15  ;;  %v1005_v24 = vadd.f32 %v1004_v22, %v1003_v20 }
 0x11b   :  { %v942_v26 = vpop.f32.mrb[4].mxu0 }
 0x11c   :  { %v650_v25 = vadd.f32 %v1005_v24, %v941_v21  ;;  %v943_v27 = vpop.f32.mrb[5].mxu0 }
 0x11d   :  { %v944_v30 = vadd.f32 %v943_v27, %v942_v26  ;;  %v945_v31 = vpop.f32.mrb[6].mxu0 }
 0x11e   :  { %v709_v28 = vpack.c.bf16 %v650_v25, %v647_v23  ;;  %v1006_v29 = vpop.f32.mrb[4].mxu1  ;;  %v946_v33 = vpop.f32.mrb[7].mxu0 }
 0x11f   :  { %v1007_v32 = vpop.f32.mrb[5].mxu1  ;;  %v947_v36 = vadd.f32 %v946_v33, %v945_v31 }
 0x120   :  { %v1008_v34 = vadd.f32 %v1007_v32, %v1006_v29  ;;  %v1009_v35 = vpop.f32.mrb[6].mxu1  ;;  %1062 = vmatprep.mubr.msk.bf16.mxu0 %vm733_vm0, %v709_v28 }
 0x121   :  { %v1010_v37 = vpop.f32.mrb[7].mxu1 }
 0x122   :  { %v655_v38 = vadd.f32 %v1008_v34, %v944_v30  ;;  %v1011_v39 = vadd.f32 %v1010_v37, %v1009_v35 }
 0x123   :  { %v948_v41 = vpop.f32.mrb[8].mxu0 }
 0x124   :  { %v658_v40 = vadd.f32 %v1011_v39, %v947_v36  ;;  %v949_v42 = vpop.f32.mrb[9].mxu0 }
 0x125   :  { %v950_v44 = vadd.f32 %v949_v42, %v948_v41  ;;  %v951_v5 = vpop.f32.mrb[10].mxu0 }
 0x126   :  { %v710_v43 = vpack.c.bf16 %v658_v40, %v655_v38  ;;  %v1012_v2 = vpop.f32.mrb[8].mxu1  ;;  %v952_v46 = vpop.f32.mrb[11].mxu0 }
 0x127   :  { %v1013_v45 = vpop.f32.mrb[9].mxu1  ;;  %v953_v49 = vadd.f32 %v952_v46, %v951_v5 }
 0x128   :  { %v1014_v47 = vadd.f32 %v1013_v45, %v1012_v2  ;;  %v1015_v48 = vpop.f32.mrb[10].mxu1  ;;  %1063 = vmatmul.mubr.msk.bf16.vlgmr.msra.gmra.mrb[32].mxu0 %vm733_vm0, %v710_v43 }
 0x129   :  { %v1016_v50 = vpop.f32.mrb[11].mxu1 }
 0x12a   :  { %v663_v51 = vadd.f32 %v1014_v47, %v950_v44  ;;  %v1017_v52 = vadd.f32 %v1016_v50, %v1015_v48 }
 0x12b   :  { %v954_v54 = vpop.f32.mrb[12].mxu0 }
 0x12c   :  { %v666_v53 = vadd.f32 %v1017_v52, %v953_v49  ;;  %v955_v55 = vpop.f32.mrb[13].mxu0 }
 0x12d   :  { %v956_v58 = vadd.f32 %v955_v55, %v954_v54  ;;  %v957_v59 = vpop.f32.mrb[14].mxu0 }
 0x12e   :  { %v711_v56 = vpack.c.bf16 %v666_v53, %v663_v51  ;;  %v1018_v57 = vpop.f32.mrb[12].mxu1  ;;  %v958_v61 = vpop.f32.mrb[15].mxu0 }
 0x12f   :  { %v1019_v60 = vpop.f32.mrb[13].mxu1  ;;  %v959_v0 = vadd.f32 %v958_v61, %v957_v59 }
 0x130   :  { %v1020_v62 = vadd.f32 %v1019_v60, %v1018_v57  ;;  %v1021_v63 = vpop.f32.mrb[14].mxu1  ;;  %1066 = vmatprep.mubr.msk.bf16.mxu0 %vm733_vm0, %v711_v56 }
 0x131   :  { %v1022_v1 = vpop.f32.mrb[15].mxu1 }
 0x132   :  { %v671_v3 = vadd.f32 %v1020_v62, %v956_v58  ;;  %v1023_v4 = vadd.f32 %v1022_v1, %v1021_v63 }
 0x133   :  { %v960_v7 = vpop.f32.mrb[16].mxu0 }
 0x134   :  { %v674_v6 = vadd.f32 %v1023_v4, %v959_v0  ;;  %v961_v8 = vpop.f32.mrb[17].mxu0 }
 0x135   :  { %v962_v11 = vadd.f32 %v961_v8, %v960_v7  ;;  %v963_v12 = vpop.f32.mrb[18].mxu0 }
 0x136   :  { %v712_v9 = vpack.c.bf16 %v674_v6, %v671_v3  ;;  %v1024_v10 = vpop.f32.mrb[16].mxu1  ;;  %v964_v14 = vpop.f32.mrb[19].mxu0 }
 0x137   :  { %v1025_v13 = vpop.f32.mrb[17].mxu1  ;;  %v965_v17 = vadd.f32 %v964_v14, %v963_v12 }
 0x138   :  { %v1026_v15 = vadd.f32 %v1025_v13, %v1024_v10  ;;  %v1027_v16 = vpop.f32.mrb[18].mxu1  ;;  %1067 = vmatmul.mubr.msk.bf16.gmra.mrb[36].mxu0 %vm733_vm0, %v712_v9 }
 0x139   :  { %v1028_v18 = vpop.f32.mrb[19].mxu1 }
 0x13a   :  { %v679_v19 = vadd.f32 %v1026_v15, %v962_v11  ;;  %v1029_v20 = vadd.f32 %v1028_v18, %v1027_v16 }
 0x13b   :  { %v966_v22 = vpop.f32.mrb[20].mxu0 }
 0x13c   :  { %v682_v21 = vadd.f32 %v1029_v20, %v965_v17  ;;  %v967_v23 = vpop.f32.mrb[21].mxu0 }
 0x13d   :  { %v968_v26 = vadd.f32 %v967_v23, %v966_v22  ;;  %v969_v27 = vpop.f32.mrb[22].mxu0 }
 0x13e   :  { %v713_v24 = vpack.c.bf16 %v682_v21, %v679_v19  ;;  %v1030_v25 = vpop.f32.mrb[20].mxu1  ;;  %v970_v29 = vpop.f32.mrb[23].mxu0 }
 0x13f   :  { %v1031_v28 = vpop.f32.mrb[21].mxu1  ;;  %v971_v32 = vadd.f32 %v970_v29, %v969_v27 }
 0x140   :  { %v1032_v30 = vadd.f32 %v1031_v28, %v1030_v25  ;;  %v1033_v31 = vpop.f32.mrb[22].mxu1  ;;  %1070 = vmatprep.mubr.msk.bf16.mxu1 %vm733_vm0, %v713_v24 }
 0x141   :  { %v1034_v33 = vpop.f32.mrb[23].mxu1 }
 0x142   :  { %v687_v34 = vadd.f32 %v1032_v30, %v968_v26  ;;  %v1035_v35 = vadd.f32 %v1034_v33, %v1033_v31 }
 0x143   :  { %v972_v37 = vpop.f32.mrb[24].mxu0 }
 0x144   :  { %v690_v36 = vadd.f32 %v1035_v35, %v971_v32  ;;  %v973_v38 = vpop.f32.mrb[25].mxu0 }
 0x145   :  { %v974_v41 = vadd.f32 %v973_v38, %v972_v37  ;;  %v975_v42 = vpop.f32.mrb[26].mxu0 }
 0x146   :  { %v714_v39 = vpack.c.bf16 %v690_v36, %v687_v34  ;;  %v1036_v40 = vpop.f32.mrb[24].mxu1  ;;  %v976_v2 = vpop.f32.mrb[27].mxu0 }
 0x147   :  { %v1037_v43 = vpop.f32.mrb[25].mxu1  ;;  %v977_v45 = vadd.f32 %v976_v2, %v975_v42 }
 0x148   :  { %v1038_v44 = vadd.f32 %v1037_v43, %v1036_v40  ;;  %v1039_v5 = vpop.f32.mrb[26].mxu1  ;;  %1071 = vmatmul.mubr.msk.bf16.vlgmr.msra.gmra.mrb[32].mxu1 %vm733_vm0, %v714_v39 }
 0x149   :  { %v1040_v46 = vpop.f32.mrb[27].mxu1 }
 0x14a   :  { %v695_v47 = vadd.f32 %v1038_v44, %v974_v41  ;;  %v1041_v48 = vadd.f32 %v1040_v46, %v1039_v5 }
 0x14b   :  { %v978_v50 = vpop.f32.mrb[28].mxu0 }
 0x14c   :  { %v698_v49 = vadd.f32 %v1041_v48, %v977_v45  ;;  %v979_v51 = vpop.f32.mrb[29].mxu0 }
 0x14d   :  { %v980_v54 = vadd.f32 %v979_v51, %v978_v50  ;;  %v981_v55 = vpop.f32.mrb[30].mxu0 }
 0x14e   :  { %v715_v52 = vpack.c.bf16 %v698_v49, %v695_v47  ;;  %v1042_v53 = vpop.f32.mrb[28].mxu1  ;;  %v982_v57 = vpop.f32.mrb[31].mxu0 }
 0x14f   :  { %v1043_v56 = vpop.f32.mrb[29].mxu1  ;;  %v983_v60 = vadd.f32 %v982_v57, %v981_v55 }
 0x150   :  { %v1044_v58 = vadd.f32 %v1043_v56, %v1042_v53  ;;  %v1045_v59 = vpop.f32.mrb[30].mxu1  ;;  %1074 = vmatprep.mubr.msk.bf16.mxu1 %vm733_vm0, %v715_v52 }
 0x151   :  { %v1046_v61 = vpop.f32.mrb[31].mxu1 }
 0x152   :  { %v703_v62 = vadd.f32 %v1044_v58, %v980_v54  ;;  %v1047_v63 = vadd.f32 %v1046_v61, %v1045_v59 }
 0x154   :  { %v706_v0 = vadd.f32 %v1047_v63, %v983_v60 }
 0x156   :  { %v716_v1 = vpack.c.bf16 %v706_v0, %v703_v62 }
 0x158   :  { %1075 = vmatmul.mubr.msk.bf16.gmra.mrb[36].mxu1 %vm733_vm0, %v716_v1 }
 0x1fb   :  { %v1064_v3 = vpop.f32.mrb[32].mxu0 }
 0x1fc   :  { %858 = vst.msk [vmem:[%s1671_s5 + $0x10] sm:$0xff] %vm855_vm1, %v1064_v3  ;;  %v792_v4 = vpop.f32.mrb[33].mxu0 }
 0x1fd   :  { %856 = vst.msk [vmem:[%s1671_s5] sm:$0xff] %vm855_vm1, %v792_v4  ;;  %v1065_v6 = vpop.f32.mrb[34].mxu0 }
 0x1fe   :  { %859 = vst.msk [vmem:[%s1671_s5 + $0x18] sm:$0xff] %vm855_vm1, %v1065_v6  ;;  %v795_v7 = vpop.f32.mrb[35].mxu0 }
 0x1ff   :  { %857 = vst.msk [vmem:[%s1671_s5 + $0x8] sm:$0xff] %vm855_vm1, %v795_v7 }
 0x20b   :  { %v1068_v8 = vpop.f32.mrb[36].mxu0 }
 0x20c   :  { %862 = vst.msk [vmem:[%s1671_s5 + $0x30] sm:$0xff] %vm855_vm1, %v1068_v8  ;;  %v808_v9 = vpop.f32.mrb[37].mxu0 }
 0x20d   :  { %860 = vst.msk [vmem:[%s1671_s5 + $0x20] sm:$0xff] %vm855_vm1, %v808_v9  ;;  %v1069_v10 = vpop.f32.mrb[38].mxu0 }
 0x20e   :  { %863 = vst.msk [vmem:[%s1671_s5 + $0x38] sm:$0xff] %vm855_vm1, %v1069_v10  ;;  %v811_v11 = vpop.f32.mrb[39].mxu0 }
 0x20f   :  { %861 = vst.msk [vmem:[%s1671_s5 + $0x28] sm:$0xff] %vm855_vm1, %v811_v11 }
 0x21b   :  { %v1072_v12 = vpop.f32.mrb[32].mxu1 }
 0x21c   :  { %866 = vst.msk [vmem:[%s1671_s5 + $0x50] sm:$0xff] %vm855_vm1, %v1072_v12  ;;  %v824_v13 = vpop.f32.mrb[33].mxu1 }
 0x21d   :  { %864 = vst.msk [vmem:[%s1671_s5 + $0x40] sm:$0xff] %vm855_vm1, %v824_v13  ;;  %v1073_v14 = vpop.f32.mrb[34].mxu1 }
 0x21e   :  { %867 = vst.msk [vmem:[%s1671_s5 + $0x58] sm:$0xff] %vm855_vm1, %v1073_v14  ;;  %v827_v15 = vpop.f32.mrb[35].mxu1 }
 0x21f   :  { %865 = vst.msk [vmem:[%s1671_s5 + $0x48] sm:$0xff] %vm855_vm1, %v827_v15 }
 0x22b   :  { %v1076_v16 = vpop.f32.mrb[36].mxu1 }
 0x22c   :  { %870 = vst.msk [vmem:[%s1671_s5 + $0x70] sm:$0xff] %vm855_vm1, %v1076_v16  ;;  %v840_v17 = vpop.f32.mrb[37].mxu1 }
 0x22d   :  { %868 = vst.msk [vmem:[%s1671_s5 + $0x60] sm:$0xff] %vm855_vm1, %v840_v17  ;;  %v1077_v18 = vpop.f32.mrb[38].mxu1 }
 0x22e   :  { %871 = vst.msk [vmem:[%s1671_s5 + $0x78] sm:$0xff] %vm855_vm1, %v1077_v18  ;;  %v843_v19 = vpop.f32.mrb[39].mxu1 }
 0x22f   :  { %869 = vst.msk [vmem:[%s1671_s5 + $0x68] sm:$0xff] %vm855_vm1, %v843_v19 }

// kernel: densenet_seg_forward.17
= control target key start
LH: loop header
LB: loop body
LE: loop exit
PB: predicated region body
PF: predicated region fallthrough
CT: control target
= control target key end

     0   :  { %s576_s18 = smov 0   ;;  %s621_s0 = inlined_call_operand.vmem [shape: f32[128,16], index: 0, kind: input, shape index: {}]   ;;  %s622_s1 = inlined_call_operand.vmem [shape: f32[1,16], index: 1, kind: input, shape index: {}]   ;;  %s623_s2 = inlined_call_operand.vmem [shape: f32[1,16], index: 2, kind: input, shape index: {}]   ;;  %s624_s3 = inlined_call_operand.vmem [shape: bf16[16,32], index: 3, kind: input, shape index: {}]   ;;  %s625_s4 = inlined_call_operand.vmem [shape: f32[1,32], index: 4, kind: input, shape index: {}]   ;;  %s626_s5 = inlined_call_operand.vmem [shape: bf16[128,32], index: 5, kind: output, shape index: {}]  }
   0x1 LB: > { %s477_s19 = sadd.s32 4294967295, %s544_s18   ;;  %p481_p0 = scmp.ge.s32.totalorder %s544_s18, 1  ;;  %s544_s18 = sphi %s576_s18, %s15_s18  }
   0x2   : > { %p188_p1 = scmp.lt.s32.totalorder %s544_s18, 3 }
   0x4   : > { %p189_p2 = pnand %p481_p0, %p188_p1 }
   0x5   : > { %v537_v0 = vld [vmem:[%s624_s3] sm:$0xff] (!%p189_p2)   ;;  %s482_s22 = sshll.u32 (!%p189_p2), %s477_s19, 3  ;;  %vm294_vm0 = vcmask (!%p189_p2), 130048   ;;  %vm412_vm1 = vcmask (!%p189_p2), 257024  }
   0x6   : > { %192 = sbr.rel (%p189_p2) target bundleno = 250 (0xfa), region = 40  ;;  %p217_p3 = scmp.lt.s32.totalorder (!%p189_p2), %s482_s22, 15  ;;  %517 = vmatprep.subr.bf16.mxu0 (!%p189_p2), %v537_v0  ;;  %527 = vmatprep.subr.bf16.mxu1 (!%p189_p2), %v537_v0  ;;  %v486_v1 = vld [vmem:[%s622_s1] ss:$0 sm:$0xff] (!%p189_p2) }
   0x7   : > { %518 = vmatpush3.bf16.msra.mxu0 (!%p189_p2), %v537_v0  ;;  %528 = vmatpush3.bf16.msra.mxu1 (!%p189_p2), %v537_v0  ;;  %v487_v2 = vld [vmem:[%s623_s2] ss:$0 sm:$0xff] (!%p189_p2) }
   0x8   : > { %v488_v39 = vld [vmem:[%s625_s4] ss:$0 sm:$0xff] (!%p189_p2) }
   0xd   : > { %s628_s22 = smov (!%p217_p3, %s482_s22), 15 }
   0xe   : > { %s483_s23 = sshll.u32 %s628_s22, 3  ;;  %s485_s8 = sshll.u32 %s628_s22, 2 }
   0xf   : > { %s220_s28 = scalar_lea.vmem %s621_s0, %s483_s23  ;;  %s226_s11 = scalar_lea.vmem %s626_s5, %s485_s8 }
  0x10   : > { %v229_v3 = vld [vmem:[%s220_s28] sm:$0xff]  ;;  %v230_v4 = vld [vmem:[%s220_s28 + $0x8] sm:$0xff]  ;;  %v231_v10 = vld [vmem:[%s220_s28 + $0x10] sm:$0xff] }
  0x11   : > { %v233_v5 = vld [vmem:[%s220_s28 + $0x20] sm:$0xff]  ;;  %v244_v6 = vmul.f32 %v486_v1, %v229_v3  ;;  %v245_v7 = vmul.f32 %v486_v1, %v230_v4  ;;  %v234_v8 = vld [vmem:[%s220_s28 + $0x28] sm:$0xff]  ;;  %v232_v11 = vld [vmem:[%s220_s28 + $0x18] sm:$0xff]  ;;  %v246_v13 = vmul.f32 %v486_v1, %v231_v10 }
  0x12   : > { %v248_v9 = vmul.f32 %v486_v1, %v233_v5  ;;  %v249_v12 = vmul.f32 %v486_v1, %v234_v8  ;;  %v247_v14 = vmul.f32 %v486_v1, %v232_v11  ;;  %v235_v15 = vld [vmem:[%s220_s28 + $0x30] sm:$0xff]  ;;  %v236_v16 = vld [vmem:[%s220_s28 + $0x38] sm:$0xff] }
  0x13   : > { %v259_v17 = vadd.f32 %v487_v2, %v244_v6  ;;  %v260_v18 = vadd.f32 %v487_v2, %v245_v7  ;;  %v250_v20 = vmul.f32 %v486_v1, %v235_v15  ;;  %v261_v22 = vadd.f32 %v487_v2, %v246_v13 }
  0x14   : > { %v263_v19 = vadd.f32 %v487_v2, %v248_v9  ;;  %v264_v21 = vadd.f32 %v487_v2, %v249_v12  ;;  %v262_v23 = vadd.f32 %v487_v2, %v247_v14  ;;  %v251_v24 = vmul.f32 %v486_v1, %v236_v16 }
  0x15   : > { %v267_v25 = vmax.f32 %v259_v17, 0.0  ;;  %v268_v26 = vmax.f32 %v260_v18, 0.0  ;;  %v265_v28 = vadd.f32 %v487_v2, %v250_v20  ;;  %v269_v30 = vmax.f32 %v261_v22, 0.0 }
  0x16   : > { %v271_v27 = vmax.f32 %v263_v19, 0.0  ;;  %v272_v29 = vmax.f32 %v264_v21, 0.0  ;;  %v270_v31 = vmax.f32 %v262_v23, 0.0  ;;  %v266_v32 = vadd.f32 %v487_v2, %v251_v24 }
  0x17   : > { %v275_v33 = vpack.c.bf16 %v268_v26, %v267_v25  ;;  %v273_v34 = vmax.f32 %v265_v28, 0.0 }
  0x18   : > { %v277_v35 = vpack.c.bf16 %v272_v29, %v271_v27  ;;  %v276_v36 = vpack.c.bf16 %v270_v31, %v269_v30  ;;  %v274_v37 = vmax.f32 %v266_v32, 0.0 }
  0x19   : > { %519 = vmatprep.mubr.msk.bf16.mxu0 %vm294_vm0, %v275_v33 }
  0x1a   : > { %523 = vmatprep.mubr.msk.bf16.mxu1 %vm294_vm0, %v277_v35  ;;  %520 = vmatmul.mubr.msk.bf16.vlgmr.msra.gmra.mrb[0].mxu0 %vm294_vm0, %v276_v36  ;;  %v278_v38 = vpack.c.bf16 %v274_v37, %v273_v34 }
  0x1c   : > { %524 = vmatmul.mubr.msk.bf16.vlgmr.msra.gmra.mrb[0].mxu1 %vm294_vm0, %v278_v38 }
  0xed   : > { %v521_v40 = vpop.f32.mrb[0].mxu0 }
  0xee   : > { %v350_v41 = vadd.f32 %v521_v40, %v488_v39  ;;  %v341_v42 = vpop.f32.mrb[1].mxu0 }
  0xef   : > { %v525_v43 = vpop.f32.mrb[0].mxu1  ;;  %v342_v44 = vadd.f32 %v488_v39, %v341_v42  ;;  %v522_v45 = vpop.f32.mrb[2].mxu0 }
  0xf0   : > { %v374_v46 = vmax.f32 %v350_v41, 0.0  ;;  %v366_v47 = vadd.f32 %v525_v43, %v488_v39  ;;  %v357_v48 = vpop.f32.mrb[1].mxu1  ;;  %v353_v49 = vadd.f32 %v522_v45, %v488_v39  ;;  %v344_v50 = vpop.f32.mrb[3].mxu0 }
  0xf1   : > { %v372_v51 = vmax.f32 %v342_v44, 0.0  ;;  %v358_v52 = vadd.f32 %v488_v39, %v357_v48  ;;  %v526_v53 = vpop.f32.mrb[2].mxu1  ;;  %v345_v54 = vadd.f32 %v488_v39, %v344_v50 }
  0xf2   : > { %v506_v55 = vpack.c.bf16 %v374_v46, %v374_v46  ;;  %v378_v56 = vmax.f32 %v366_v47, 0.0  ;;  %v375_v57 = vmax.f32 %v353_v49, 0.0  ;;  %v369_v58 = vadd.f32 %v526_v53, %v488_v39  ;;  %v360_v59 = vpop.f32.mrb[3].mxu1 }
  0xf3   : > { %v504_v60 = vpack.c.bf16 %v372_v51, %v372_v51  ;;  %v376_v61 = vmax.f32 %v358_v52, 0.0  ;;  %v373_v62 = vmax.f32 %v345_v54, 0.0  ;;  %v361_v63 = vadd.f32 %v488_v39, %v360_v59 }
  0xf4   : > { %415 = vst.msk [vmem:[%s226_s11 + $0x8] sm:$0xf] %vm412_vm1, %v506_v55  ;;  %v510_v0 = vpack.c.bf16 %v378_v56, %v378_v56  ;;  %v507_v1 = vpack.c.bf16 %v375_v57, %v375_v57  ;;  %v379_v2 = vmax.f32 %v369_v58, 0.0 }
  0xf5   : > { %413 = vst.msk [vmem:[%s226_s11] sm:$0xf] %vm412_vm1, %v504_v60  ;;  %v508_v3 = vpack.c.bf16 %v376_v61, %v376_v61  ;;  %v505_v4 = vpack.c.bf16 %v373_v62, %v373_v62  ;;  %v377_v5 = vmax.f32 %v361_v63, 0.0 }
  0xf6   : > { %419 = vst.msk [vmem:[%s226_s11 + $0x18] sm:$0xf] %vm412_vm1, %v510_v0  ;;  %416 = vst.msk [vmem:[%s226_s11 + $0xc] sm:$0xf] %vm412_vm1, %v507_v1  ;;  %v511_v6 = vpack.c.bf16 %v379_v2, %v379_v2 }
  0xf7   : > { %417 = vst.msk [vmem:[%s226_s11 + $0x10] sm:$0xf] %vm412_vm1, %v508_v3  ;;  %414 = vst.msk [vmem:[%s226_s11 + $0x4] sm:$0xf] %vm412_vm1, %v505_v4  ;;  %v509_v7 = vpack.c.bf16 %v377_v5, %v377_v5 }
  0xf8   : > { %420 = vst.msk [vmem:[%s226_s11 + $0x1c] sm:$0xf] %vm412_vm1, %v511_v6 }
  0xf9   : > { %418 = vst.msk [vmem:[%s226_s11 + $0x14] sm:$0xf] %vm412_vm1, %v509_v7 }
  0xfa PF: > { %s15_s18 = sadd.s32 1, %s544_s18  }
  0xfb   : > { %p12_p4 = scmp.ge.s32.totalorder %s15_s18, 4  }
  0xfd   :  { %14 = sbr.rel (!%p12_p4) target bundleno = 1 (0x1), region = 70 }

// kernel: densenet_seg_forward.18
= control target key start
LH: loop header
LB: loop body
LE: loop exit
PB: predicated region body
PF: predicated region fallthrough
CT: control target
= control target key end

     0   :  { %s764_s9 = smov 0   ;;  %s875_s0 = inlined_call_operand.vmem [shape: bf16[128,288], index: 0, kind: input, shape index: {}]   ;;  %s876_s1 = inlined_call_operand.vmem [shape: bf16[288,8], index: 1, kind: input, shape index: {}]   ;;  %s877_s2 = inlined_call_operand.vmem [shape: f32[128,8], index: 2, kind: output, shape index: {}]  }
   0x1 LB: > { %s579_s10 = sadd.s32 4294967295, %s747_s9   ;;  %p583_p0 = scmp.ge.s32.totalorder %s747_s9, 1  ;;  %s747_s9 = sphi %s764_s9, %s12_s9  }
   0x2   : > { %p114_p1 = scmp.lt.s32.totalorder %s747_s9, 3 }
   0x4   : > { %p115_p2 = pnand %p583_p0, %p114_p1 }
   0x5   : > { %v707_v0 = vld [vmem:[%s876_s1 + $0x40] sm:$0xff] (!%p115_p2)   ;;  %s584_s13 = sshll.u32 (!%p115_p2), %s579_s10, 3  ;;  %v709_v2 = vld [vmem:[%s876_s1 + $0x48] sm:$0xff] (!%p115_p2)   ;;  %v711_v4 = vld [vmem:[%s876_s1 + $0x50] sm:$0xff] (!%p115_p2)   ;;  %vm371_vm0 = vcmask (!%p115_p2), 261120   ;;  %vm514_vm1 = vcmask (!%p115_p2), 64512  }
   0x6   : > { %118 = sbr.rel (%p115_p2) target bundleno = 274 (0x112), region = 28  ;;  %v708_v1 = vld [vmem:[%s876_s1] sm:$0xff] (!%p115_p2)   ;;  %624 = vmatprep.subr.bf16.mxu0 (!%p115_p2), %v707_v0  ;;  %682 = vmatprep.subr.bf16.mxu1 (!%p115_p2), %v707_v0  ;;  %p138_p3 = scmp.lt.s32.totalorder (!%p115_p2), %s584_s13, 15  ;;  %v710_v3 = vld [vmem:[%s876_s1 + $0x8] sm:$0xff] (!%p115_p2)   ;;  %v712_v5 = vld [vmem:[%s876_s1 + $0x10] sm:$0xff] (!%p115_p2)  }
   0x7   : > { %625 = vmatpush3.bf16.msra.mxu0 (!%p115_p2), %v708_v1  ;;  %690 = vmatpush3.bf16.msra.mxu1 (!%p115_p2), %v708_v1  ;;  %v713_v6 = vld [vmem:[%s876_s1 + $0x58] sm:$0xff] (!%p115_p2)   ;;  %v715_v8 = vld [vmem:[%s876_s1 + $0x60] sm:$0xff] (!%p115_p2)   ;;  %v717_v10 = vld [vmem:[%s876_s1 + $0x68] sm:$0xff] (!%p115_p2)  }
   0x8   : > { %626 = vmatprep.subr.bf16.mxu0 (!%p115_p2), %v709_v2  ;;  %683 = vmatprep.subr.bf16.mxu1 (!%p115_p2), %v709_v2  ;;  %v714_v7 = vld [vmem:[%s876_s1 + $0x18] sm:$0xff] (!%p115_p2)   ;;  %v716_v9 = vld [vmem:[%s876_s1 + $0x20] sm:$0xff] (!%p115_p2)   ;;  %v718_v13 = vld [vmem:[%s876_s1 + $0x28] sm:$0xff] (!%p115_p2)  }
   0x9   : > { %v719_v14 = vld [vmem:[%s876_s1 + $0x70] sm:$0xff] (!%p115_p2)   ;;  %v721_v16 = vld [vmem:[%s876_s1 + $0x78] sm:$0xff] (!%p115_p2)   ;;  %v729_v18 = vld [vmem:[%s876_s1 + $0x80] sm:$0xff] (!%p115_p2)  }
   0xa   : > { %v720_v15 = vld [vmem:[%s876_s1 + $0x30] sm:$0xff] (!%p115_p2)   ;;  %v722_v17 = vld [vmem:[%s876_s1 + $0x38] sm:$0xff] (!%p115_p2)   ;;  %v730_v22 = vld [vmem:[%s876_s1 + $0x88] sm:$0xff] (!%p115_p2)  }
   0xb   : > { %627 = vmatpush3.bf16.msra.mxu0 (!%p115_p2), %v710_v3  ;;  %691 = vmatpush3.bf16.msra.mxu1 (!%p115_p2), %v710_v3 }
   0xc   : > { %628 = vmatprep.subr.bf16.mxu0 (!%p115_p2), %v711_v4  ;;  %684 = vmatprep.subr.bf16.mxu1 (!%p115_p2), %v711_v4 }
   0xd   : > { %s879_s13 = smov (!%p138_p3, %s584_s13), 15 }
   0xe   : > { %s698_s26 = smul.u32 12, %s879_s13 }
   0xf   : > { %629 = vmatpush3.bf16.msra.mxu0 %v712_v5  ;;  %692 = vmatpush3.bf16.msra.mxu1 %v712_v5 }
  0x10   : > { %630 = vmatprep.subr.bf16.mxu0 %v713_v6  ;;  %685 = vmatprep.subr.bf16.mxu1 %v713_v6  ;;  %s805_s5 = scalar_lea.vmem %s875_s0, %s698_s26  ;;  %s587_s26 = sshll.u32 %s879_s13, 3 }
  0x11   : > { %v725_v11 = vld [vmem:[%s805_s5 + $0x4] ss:$12 sps:$4 sm:$0xff]   ;;  %v728_v12 = vld [vmem:[%s805_s5 + $0x4c] ss:$12 sps:$4 sm:$0xff]   ;;  %v726_v20 = vld [vmem:[%s805_s5 + $0x48] ss:$12 sps:$4 sm:$0xff]   ;;  %s854_s29 = scalar_lea.vmem %s877_s2, %s587_s26 }
  0x12   : > { %416 = vmatprep.mubr.bf16.mxu0 %v725_v11  ;;  %440 = vmatprep.mubr.bf16.mxu1 %v728_v12  ;;  %v723_v19 = vld [vmem:[%s805_s5] ss:$12 sps:$4 sm:$0xff]   ;;  %v731_v21 = vld [vmem:[%s805_s5 + $0x1c] ss:$12 sps:$4 sm:$0xff]   ;;  %v734_v24 = vld [vmem:[%s805_s5 + $0x18] ss:$12 sps:$4 sm:$0xff]  }
  0x13   : > { %631 = vmatpush3.bf16.msra.mxu0 %v714_v7  ;;  %693 = vmatpush3.bf16.msra.mxu1 %v714_v7  ;;  %v733_v23 = vld [vmem:[%s805_s5 + $0x8] ss:$12 sps:$4 sm:$0xff]   ;;  %v735_v25 = vld [vmem:[%s805_s5 + $0x20] ss:$12 sps:$4 sm:$0xff]   ;;  %v738_v27 = vld [vmem:[%s805_s5 + $0x38] ss:$12 sps:$4 sm:$0xff]  }
  0x14   : > { %632 = vmatprep.subr.bf16.mxu0 %v715_v8  ;;  %686 = vmatprep.subr.bf16.mxu1 %v715_v8  ;;  %v736_v26 = vld [vmem:[%s805_s5 + $0x34] ss:$12 sps:$4 sm:$0xff]   ;;  %v739_v28 = vld [vmem:[%s805_s5 + $0x30] ss:$12 sps:$4 sm:$0xff]  }
  0x15   : > { %v740_v29 = vld [vmem:[%s805_s5 + $0x50] ss:$12 sps:$4 sm:$0xff]  }
  0x17   : > { %633 = vmatpush3.bf16.msra.mxu0 %v716_v9  ;;  %694 = vmatpush3.bf16.msra.mxu1 %v716_v9 }
  0x18   : > { %634 = vmatprep.subr.bf16.mxu0 %v717_v10  ;;  %687 = vmatprep.subr.bf16.mxu1 %v717_v10 }
  0x1b   : > { %635 = vmatpush3.bf16.msra.mxu0 %v718_v13  ;;  %695 = vmatpush3.bf16.msra.mxu1 %v718_v13 }
  0x1c   : > { %636 = vmatprep.subr.bf16.mxu0 %v719_v14  ;;  %688 = vmatprep.subr.bf16.mxu1 %v719_v14 }
  0x1f   : > { %637 = vmatpush3.bf16.msra.mxu0 %v720_v15  ;;  %696 = vmatpush3.bf16.msra.mxu1 %v720_v15 }
  0x20   : > { %638 = vmatprep.subr.bf16.mxu0 %v721_v16  ;;  %689 = vmatprep.subr.bf16.mxu1 %v721_v16 }
  0x23   : > { %639 = vmatpush3.bf16.msra.mxu0 %v722_v17  ;;  %697 = vmatpush3.bf16.msra.mxu1 %v722_v17 }
  0x24   : > { %670 = vmatprep.subr.bf16.mxu1 %v729_v18 }
  0x26   : > { %417 = vmatmul.mubr.bf16.vlgmr.msra.gmra.mrb[0].mxu0 %v723_v19  ;;  %441 = vmatmul.mubr.bf16.vlgmr.msra.gmra.mrb[0].mxu1 %v726_v20 }
  0x27   : > { %671 = vmatpush3.bf16.msra.mxu1 %v729_v18  ;;  %424 = vmatprep.mubr.bf16.mxu0 %v731_v21 }
  0x28   : > { %672 = vmatprep.subr.bf16.mxu1 %v730_v22  ;;  %674 = vmatprep.mubr.msk.bf16.mxu1 %vm371_vm0, %v733_v23 }
  0x2b   : > { %673 = vmatpush3.bf16.msra.mxu1 %v730_v22 }
  0x2e   : > { %425 = vmatmul.mubr.bf16.gmra.mrb[4].mxu0 %v734_v24  ;;  %675 = vmatmul.mubr.msk.bf16.vlgmr.msra.gmra.mrb[4].mxu1 %vm371_vm0, %v735_v25 }
  0x2f   : > { %432 = vmatprep.mubr.bf16.mxu0 %v736_v26  ;;  %678 = vmatprep.mubr.msk.bf16.mxu1 %vm371_vm0, %v738_v27 }
  0x36   : > { %433 = vmatmul.mubr.bf16.gmra.mrb[8].mxu0 %v739_v28  ;;  %679 = vmatmul.mubr.msk.bf16.gmra.mrb[8].mxu1 %vm371_vm0, %v740_v29 }
  0xf9   : > { %v640_v30 = vpop.f32.mrb[0].mxu0  ;;  %v658_v31 = vpop.f32.mrb[0].mxu1 }
  0xfa   : > { %v641_v32 = vpop.f32.mrb[1].mxu0  ;;  %v659_v33 = vpop.f32.mrb[1].mxu1 }
  0xfb   : > { %v642_v34 = vadd.f32 %v641_v32, %v640_v30  ;;  %v660_v35 = vadd.f32 %v659_v33, %v658_v31  ;;  %v643_v36 = vpop.f32.mrb[2].mxu0  ;;  %v661_v37 = vpop.f32.mrb[2].mxu1 }
  0xfc   : > { %v644_v38 = vpop.f32.mrb[3].mxu0  ;;  %v662_v39 = vpop.f32.mrb[3].mxu1 }
  0xfd   : > { %v645_v40 = vadd.f32 %v644_v38, %v643_v36  ;;  %v663_v41 = vadd.f32 %v662_v39, %v661_v37 }
 0x101   : > { %v646_v42 = vpop.f32.mrb[4].mxu0  ;;  %v676_v43 = vpop.f32.mrb[4].mxu1 }
 0x102   : > { %v647_v44 = vpop.f32.mrb[5].mxu0  ;;  %v483_v45 = vpop.f32.mrb[5].mxu1 }
 0x103   : > { %v648_v46 = vadd.f32 %v647_v44, %v646_v42  ;;  %v484_v47 = vadd.f32 %v642_v34, %v483_v45  ;;  %v649_v48 = vpop.f32.mrb[6].mxu0  ;;  %v677_v49 = vpop.f32.mrb[6].mxu1 }
 0x104   : > { %v650_v50 = vpop.f32.mrb[7].mxu0  ;;  %v486_v51 = vpop.f32.mrb[7].mxu1 }
 0x105   : > { %v492_v52 = vadd.f32 %v676_v43, %v648_v46  ;;  %515 = vst.msk [vmem:[%s854_s29] sm:$0xff] %vm514_vm1, %v484_v47  ;;  %v651_v53 = vadd.f32 %v650_v50, %v649_v48  ;;  %v487_v54 = vadd.f32 %v645_v40, %v486_v51 }
 0x107   : > { %517 = vst.msk [vmem:[%s854_s29 + $0x10] sm:$0xff] %vm514_vm1, %v492_v52  ;;  %v495_v55 = vadd.f32 %v677_v49, %v651_v53  ;;  %516 = vst.msk [vmem:[%s854_s29 + $0x8] sm:$0xff] %vm514_vm1, %v487_v54 }
 0x109   : > { %518 = vst.msk [vmem:[%s854_s29 + $0x18] sm:$0xff] %vm514_vm1, %v495_v55  ;;  %v652_v56 = vpop.f32.mrb[8].mxu0  ;;  %v680_v57 = vpop.f32.mrb[8].mxu1 }
 0x10a   : > { %v508_v58 = vadd.f32 %v680_v57, %v660_v35  ;;  %v653_v59 = vpop.f32.mrb[9].mxu0  ;;  %v499_v60 = vpop.f32.mrb[9].mxu1 }
 0x10b   : > { %v654_v61 = vadd.f32 %v653_v59, %v652_v56  ;;  %v655_v62 = vpop.f32.mrb[10].mxu0  ;;  %v681_v63 = vpop.f32.mrb[10].mxu1 }
 0x10c   : > { %521 = vst.msk [vmem:[%s854_s29 + $0x30] sm:$0xff] %vm514_vm1, %v508_v58  ;;  %v511_v0 = vadd.f32 %v681_v63, %v663_v41  ;;  %v656_v1 = vpop.f32.mrb[11].mxu0  ;;  %v502_v2 = vpop.f32.mrb[11].mxu1 }
 0x10d   : > { %v500_v3 = vadd.f32 %v654_v61, %v499_v60  ;;  %v657_v4 = vadd.f32 %v656_v1, %v655_v62 }
 0x10e   : > { %522 = vst.msk [vmem:[%s854_s29 + $0x38] sm:$0xff] %vm514_vm1, %v511_v0 }
 0x10f   : > { %519 = vst.msk [vmem:[%s854_s29 + $0x20] sm:$0xff] %vm514_vm1, %v500_v3  ;;  %v503_v5 = vadd.f32 %v657_v4, %v502_v2 }
 0x111   : > { %520 = vst.msk [vmem:[%s854_s29 + $0x28] sm:$0xff] %vm514_vm1, %v503_v5 }
 0x112 PF: > { %s12_s9 = sadd.s32 1, %s747_s9  }
 0x113   : > { %p9_p4 = scmp.ge.s32.totalorder %s12_s9, 4  }
 0x115   :  { %11 = sbr.rel (!%p9_p4) target bundleno = 1 (0x1), region = 58 }

// kernel: densenet_seg_forward.19
= control target key start
LH: loop header
LB: loop body
LE: loop exit
PB: predicated region body
PF: predicated region fallthrough
CT: control target
= control target key end

     0   :  { %s593_s18 = smov 0   ;;  %s641_s0 = inlined_call_operand.vmem [shape: f32[128,24], index: 0, kind: input, shape index: {}]   ;;  %s642_s1 = inlined_call_operand.vmem [shape: f32[1,24], index: 1, kind: input, shape index: {}]   ;;  %s643_s2 = inlined_call_operand.vmem [shape: f32[1,24], index: 2, kind: input, shape index: {}]   ;;  %s644_s3 = inlined_call_operand.vmem [shape: bf16[24,32], index: 3, kind: input, shape index: {}]   ;;  %s645_s4 = inlined_call_operand.vmem [shape: f32[1,32], index: 4, kind: input, shape index: {}]   ;;  %s646_s5 = inlined_call_operand.vmem [shape: bf16[128,32], index: 5, kind: output, shape index: {}]  }
   0x1 LB: > { %s485_s19 = sadd.s32 4294967295, %s561_s18   ;;  %p489_p0 = scmp.ge.s32.totalorder %s561_s18, 1  ;;  %s561_s18 = sphi %s593_s18, %s15_s18  }
   0x2   : > { %p188_p1 = scmp.lt.s32.totalorder %s561_s18, 3 }
   0x4   : > { %p189_p2 = pnand %p489_p0, %p188_p1 }
   0x5   : > { %v553_v0 = vld [vmem:[%s644_s3] sm:$0xff] (!%p189_p2)   ;;  %v554_v1 = vld [vmem:[%s644_s3 + $0x8] ss:$0 sps:$4 sm:$0xff] (!%p189_p2)   ;;  %vm311_vm0 = vcmask (!%p189_p2), 1043456   ;;  %s490_s24 = sshll.u32 (!%p189_p2), %s485_s19, 3  ;;  %vm298_vm1 = vcmask (!%p189_p2), 195584  }
   0x6   : > { %192 = sbr.rel (%p189_p2) target bundleno = 250 (0xfa), region = 40  ;;  %527 = vmatprep.subr.bf16.mxu0 (!%p189_p2), %v553_v0  ;;  %539 = vmatprep.subr.bf16.mxu1 (!%p189_p2), %v553_v0  ;;  %p217_p3 = scmp.lt.s32.totalorder (!%p189_p2), %s490_s24, 15  ;;  %v313_v2 = vsel (!%p189_p2), %vm311_vm0, %v554_v1, 0  ;;  %v494_v3 = vld [vmem:[%s642_s1] ss:$0 sm:$0xff] (!%p189_p2)  ;;  %vm420_vm2 = vcmask (!%p189_p2), 257024  }
   0x7   : > { %528 = vmatpush3.bf16.msra.mxu0 (!%p189_p2), %v553_v0  ;;  %541 = vmatpush3.bf16.msra.mxu1 (!%p189_p2), %v553_v0  ;;  %v495_v4 = vld [vmem:[%s643_s2] ss:$0 sm:$0xff] (!%p189_p2) }
   0x8   : > { %543 = vmatprep.subr.msk.bf16.mxu0 (!%p189_p2), %vm311_vm0, %v554_v1  ;;  %544 = vmatprep.subr.msk.bf16.mxu1 (!%p189_p2), %vm311_vm0, %v554_v1  ;;  %v496_v41 = vld [vmem:[%s645_s4] ss:$0 sm:$0xff] (!%p189_p2) }
   0xb   : > { %530 = vmatpush3.bf16.msra.mxu0 (!%p189_p2), %v313_v2  ;;  %542 = vmatpush3.bf16.msra.mxu1 (!%p189_p2), %v313_v2 }
   0xd   : > { %s648_s24 = smov (!%p217_p3, %s490_s24), 15 }
   0xe   : > { %s491_s25 = sshll.u32 %s648_s24, 3  ;;  %s493_s10 = sshll.u32 %s648_s24, 2 }
   0xf   : > { %s220_s30 = scalar_lea.vmem %s641_s0, %s491_s25  ;;  %s226_s13 = scalar_lea.vmem %s646_s5, %s493_s10 }
  0x10   : > { %v229_v5 = vld [vmem:[%s220_s30] sm:$0xff]  ;;  %v230_v6 = vld [vmem:[%s220_s30 + $0x8] sm:$0xff]  ;;  %v231_v12 = vld [vmem:[%s220_s30 + $0x10] sm:$0xff] }
  0x11   : > { %v233_v7 = vld [vmem:[%s220_s30 + $0x20] sm:$0xff]  ;;  %v244_v8 = vmul.f32 %v494_v3, %v229_v5  ;;  %v245_v9 = vmul.f32 %v494_v3, %v230_v6  ;;  %v234_v10 = vld [vmem:[%s220_s30 + $0x28] sm:$0xff]  ;;  %v232_v13 = vld [vmem:[%s220_s30 + $0x18] sm:$0xff]  ;;  %v246_v15 = vmul.f32 %v494_v3, %v231_v12 }
  0x12   : > { %v248_v11 = vmul.f32 %v494_v3, %v233_v7  ;;  %v249_v14 = vmul.f32 %v494_v3, %v234_v10  ;;  %v247_v16 = vmul.f32 %v494_v3, %v232_v13  ;;  %v235_v17 = vld [vmem:[%s220_s30 + $0x30] sm:$0xff]  ;;  %v236_v18 = vld [vmem:[%s220_s30 + $0x38] sm:$0xff] }
  0x13   : > { %v259_v19 = vadd.f32 %v495_v4, %v244_v8  ;;  %v260_v20 = vadd.f32 %v495_v4, %v245_v9  ;;  %v250_v22 = vmul.f32 %v494_v3, %v235_v17  ;;  %v261_v24 = vadd.f32 %v495_v4, %v246_v15 }
  0x14   : > { %v263_v21 = vadd.f32 %v495_v4, %v248_v11  ;;  %v264_v23 = vadd.f32 %v495_v4, %v249_v14  ;;  %v262_v25 = vadd.f32 %v495_v4, %v247_v16  ;;  %v251_v26 = vmul.f32 %v494_v3, %v236_v18 }
  0x15   : > { %v267_v27 = vmax.f32 %v259_v19, 0.0  ;;  %v268_v28 = vmax.f32 %v260_v20, 0.0  ;;  %v265_v30 = vadd.f32 %v495_v4, %v250_v22  ;;  %v269_v32 = vmax.f32 %v261_v24, 0.0 }
  0x16   : > { %v271_v29 = vmax.f32 %v263_v21, 0.0  ;;  %v272_v31 = vmax.f32 %v264_v23, 0.0  ;;  %v270_v33 = vmax.f32 %v262_v25, 0.0  ;;  %v266_v34 = vadd.f32 %v495_v4, %v251_v26 }
  0x17   : > { %v275_v35 = vpack.c.bf16 %v268_v28, %v267_v27  ;;  %v273_v36 = vmax.f32 %v265_v30, 0.0 }
  0x18   : > { %v277_v37 = vpack.c.bf16 %v272_v31, %v271_v29  ;;  %v276_v38 = vpack.c.bf16 %v270_v33, %v269_v32  ;;  %v274_v39 = vmax.f32 %v266_v34, 0.0 }
  0x19   : > { %531 = vmatprep.mubr.msk.bf16.mxu0 %vm298_vm1, %v275_v35 }
  0x1a   : > { %535 = vmatprep.mubr.msk.bf16.mxu1 %vm298_vm1, %v277_v37  ;;  %532 = vmatmul.mubr.msk.bf16.vlgmr.msra.gmra.mrb[0].mxu0 %vm298_vm1, %v276_v38  ;;  %v278_v40 = vpack.c.bf16 %v274_v39, %v273_v36 }
  0x1c   : > { %536 = vmatmul.mubr.msk.bf16.vlgmr.msra.gmra.mrb[0].mxu1 %vm298_vm1, %v278_v40 }
  0xed   : > { %v533_v42 = vpop.f32.mrb[0].mxu0 }
  0xee   : > { %v358_v43 = vadd.f32 %v533_v42, %v496_v41  ;;  %v349_v44 = vpop.f32.mrb[1].mxu0 }
  0xef   : > { %v537_v45 = vpop.f32.mrb[0].mxu1  ;;  %v350_v46 = vadd.f32 %v496_v41, %v349_v44  ;;  %v534_v47 = vpop.f32.mrb[2].mxu0 }
  0xf0   : > { %v382_v48 = vmax.f32 %v358_v43, 0.0  ;;  %v374_v49 = vadd.f32 %v537_v45, %v496_v41  ;;  %v365_v50 = vpop.f32.mrb[1].mxu1  ;;  %v361_v51 = vadd.f32 %v534_v47, %v496_v41  ;;  %v352_v52 = vpop.f32.mrb[3].mxu0 }
  0xf1   : > { %v380_v53 = vmax.f32 %v350_v46, 0.0  ;;  %v366_v54 = vadd.f32 %v496_v41, %v365_v50  ;;  %v538_v55 = vpop.f32.mrb[2].mxu1  ;;  %v353_v56 = vadd.f32 %v496_v41, %v352_v52 }
  0xf2   : > { %v515_v57 = vpack.c.bf16 %v382_v48, %v382_v48  ;;  %v386_v58 = vmax.f32 %v374_v49, 0.0  ;;  %v383_v59 = vmax.f32 %v361_v51, 0.0  ;;  %v377_v60 = vadd.f32 %v538_v55, %v496_v41  ;;  %v368_v61 = vpop.f32.mrb[3].mxu1 }
  0xf3   : > { %v513_v62 = vpack.c.bf16 %v380_v53, %v380_v53  ;;  %v384_v63 = vmax.f32 %v366_v54, 0.0  ;;  %v381_v0 = vmax.f32 %v353_v56, 0.0  ;;  %v369_v1 = vadd.f32 %v496_v41, %v368_v61 }
  0xf4   : > { %423 = vst.msk [vmem:[%s226_s13 + $0x8] sm:$0xf] %vm420_vm2, %v515_v57  ;;  %v519_v2 = vpack.c.bf16 %v386_v58, %v386_v58  ;;  %v516_v3 = vpack.c.bf16 %v383_v59, %v383_v59  ;;  %v387_v4 = vmax.f32 %v377_v60, 0.0 }
  0xf5   : > { %421 = vst.msk [vmem:[%s226_s13] sm:$0xf] %vm420_vm2, %v513_v62  ;;  %v517_v5 = vpack.c.bf16 %v384_v63, %v384_v63  ;;  %v514_v6 = vpack.c.bf16 %v381_v0, %v381_v0  ;;  %v385_v7 = vmax.f32 %v369_v1, 0.0 }
  0xf6   : > { %427 = vst.msk [vmem:[%s226_s13 + $0x18] sm:$0xf] %vm420_vm2, %v519_v2  ;;  %424 = vst.msk [vmem:[%s226_s13 + $0xc] sm:$0xf] %vm420_vm2, %v516_v3  ;;  %v520_v8 = vpack.c.bf16 %v387_v4, %v387_v4 }
  0xf7   : > { %425 = vst.msk [vmem:[%s226_s13 + $0x10] sm:$0xf] %vm420_vm2, %v517_v5  ;;  %422 = vst.msk [vmem:[%s226_s13 + $0x4] sm:$0xf] %vm420_vm2, %v514_v6  ;;  %v518_v9 = vpack.c.bf16 %v385_v7, %v385_v7 }
  0xf8   : > { %428 = vst.msk [vmem:[%s226_s13 + $0x1c] sm:$0xf] %vm420_vm2, %v520_v8 }
  0xf9   : > { %426 = vst.msk [vmem:[%s226_s13 + $0x14] sm:$0xf] %vm420_vm2, %v518_v9 }
  0xfa PF: > { %s15_s18 = sadd.s32 1, %s561_s18  }
  0xfb   : > { %p12_p4 = scmp.ge.s32.totalorder %s15_s18, 4  }
  0xfd   :  { %14 = sbr.rel (!%p12_p4) target bundleno = 1 (0x1), region = 70 }

// kernel: squeeze.1
= control target key start
LH: loop header
LB: loop body
LE: loop exit
PB: predicated region body
PF: predicated region fallthrough
CT: control target
= control target key end

     0   :  { %s207_s0 = inlined_call_operand.vmem [shape: f32[128], index: 0, kind: input, shape index: {}]   ;;  %s208_s1 = inlined_call_operand.hbm [shape: f32[2,1,8,8], index: 1, kind: output, shape index: {}]  }
   0x1   :  { %v5_v0 = vld [vmem:[%s207_s0] sm:$0x1] }
   0x2   :  { %6 = vst [vmem:[#allocation2] sm:$0x1] %v5_v0 }
   0x3   :  { %2 = vsyncpa [#allocation1], 0  ;;  %s150_s0 = smov 120   ;;  %s151_s8 = smov 104   ;;  %vm8_vm0 = vcmask 64512  }
   0x4   :  { %s152_s9 = smov 112   ;;  %s153_s10 = smov 96  }
   0x5   :  { %s154_s11 = smov 88   ;;  %s155_s12 = smov 80  }
   0x6   :  { %s156_s13 = smov 72   ;;  %s157_s14 = smov 64  }
   0x7   :  { %s158_s15 = smov 56   ;;  %s159_s16 = smov 48  }
   0x8   :  { %s160_s17 = smov 40   ;;  %s161_s18 = smov 32  }
   0x9   :  { %v10_v1 = vld [vmem:[#allocation2] sm:$0x1]   ;;  %s162_s19 = smov 24   ;;  %s163_s20 = smov 16  }
   0xa   :  { %v22_v2 = vld [vmem:[#allocation2] sm:$0x1]   ;;  %11 = vrot.lane.b32.xlu0 %v10_v1, %s150_s0  ;;  %s164_s21 = smov 8   ;;  %s165_s22 = smov [#allocation0]  }
   0xb   :  { %23 = vrot.lane.b32.xlu1 %v22_v2, %s151_s8  ;;  %v16_v3 = vld [vmem:[#allocation2] sm:$0x1]   ;;  %s104_s23 = sshll.u32 %s165_s22, 4  ;;  %s105_s23 = int_to_ptr.vmem [resolvable:$true] %s104_s23 }
   0xc   :  { %v28_v4 = vld [vmem:[#allocation2] sm:$0x1]   ;;  %s126_s24 = scalar_lea.vmem %s105_s23, 256  ;;  %p131_p1 = scmp.lt.s32.totalorder %s105_s23, %s105_s23 }
   0xd   :  { %v34_v5 = vld [vmem:[#allocation2] sm:$0x1]   ;;  %p127_p0 = scmp.ne.s32.totalorder %s105_s23, %s126_s24  ;;  %p132_p2 = scmp.lt.s32.totalorder %s126_s24, %s126_s24 }
   0xe   :  { %17 = vrot.lane.b32.xlu0 %v16_v3, %s152_s9  ;;  %v40_v6 = vld [vmem:[#allocation2] sm:$0x1]  }
   0xf   :  { %29 = vrot.lane.b32.xlu1 %v28_v4, %s153_s10  ;;  %v46_v7 = vld [vmem:[#allocation2] sm:$0x1]   ;;  %p133_p3 = por %p132_p2, %p131_p1 }
  0x10   :  { %v52_v8 = vld [vmem:[#allocation2] sm:$0x1]  }
  0x11   :  { %v58_v9 = vld [vmem:[#allocation2] sm:$0x1]   ;;  %p134_p4 = pnand %p133_p3, %p127_p0 }
  0x12   :  { %35 = vrot.lane.b32.xlu0 %v34_v5, %s154_s11  ;;  %v64_v10 = vld [vmem:[#allocation2] sm:$0x1]  }
  0x13   :  { %41 = vrot.lane.b32.xlu1 %v40_v6, %s155_s12  ;;  %v7_v11 = vld [vmem:[#allocation2] sm:$0x1]  }
  0x14   :  { %9 = vst.msk [vmem:[#allocation0] sm:$0x1] %vm8_vm0, %v7_v11   ;;  %v70_v12 = vld [vmem:[#allocation2] sm:$0x1]  }
  0x15   :  { %v76_v13 = vld [vmem:[#allocation2] sm:$0x1]  }
  0x16   :  { %47 = vrot.lane.b32.xlu0 %v46_v7, %s156_s13  ;;  %v82_v14 = vld [vmem:[#allocation2] sm:$0x1]  }
  0x17   :  { %53 = vrot.lane.b32.xlu1 %v52_v8, %s157_s14  ;;  %v88_v15 = vld [vmem:[#allocation2] sm:$0x1]  }
  0x18   :  { %v94_v16 = vld [vmem:[#allocation2] sm:$0x1]  }
  0x1a   :  { %59 = vrot.lane.b32.xlu0 %v58_v9, %s158_s15 }
  0x1b   :  { %65 = vrot.lane.b32.xlu1 %v64_v10, %s159_s16 }
  0x1e   :  { %71 = vrot.lane.b32.xlu0 %v70_v12, %s160_s17 }
  0x1f   :  { %77 = vrot.lane.b32.xlu1 %v76_v13, %s161_s18 }
  0x22   :  { %83 = vrot.lane.b32.xlu0 %v82_v14, %s162_s19 }
  0x23   :  { %89 = vrot.lane.b32.xlu1 %v88_v15, %s163_s20 }
  0x26   :  { %95 = vrot.lane.b32.xlu0 %v94_v16, %s164_s21 }
  0x7c   :  { %v12_v17 = vpop.permute.xlu0 %11  }
  0x7d   :  { %v24_v18 = vpop.permute.xlu1 %23   ;;  %15 = vst.msk [vmem:[#allocation0 + $0x1] sm:$0x1] %vm8_vm0, %v12_v17  }
  0x7e   :  { %27 = vst.msk [vmem:[#allocation0 + $0x3] sm:$0x1] %vm8_vm0, %v24_v18  }
  0x80   :  { %v18_v19 = vpop.permute.xlu0 %17  }
  0x81   :  { %v30_v20 = vpop.permute.xlu1 %29   ;;  %21 = vst.msk [vmem:[#allocation0 + $0x2] sm:$0x1] %vm8_vm0, %v18_v19  }
  0x82   :  { %33 = vst.msk [vmem:[#allocation0 + $0x4] sm:$0x1] %vm8_vm0, %v30_v20  }
  0x84   :  { %v36_v21 = vpop.permute.xlu0 %35  }
  0x85   :  { %v42_v22 = vpop.permute.xlu1 %41   ;;  %39 = vst.msk [vmem:[#allocation0 + $0x5] sm:$0x1] %vm8_vm0, %v36_v21  }
  0x86   :  { %45 = vst.msk [vmem:[#allocation0 + $0x6] sm:$0x1] %vm8_vm0, %v42_v22  }
  0x88   :  { %v48_v23 = vpop.permute.xlu0 %47  }
  0x89   :  { %v54_v24 = vpop.permute.xlu1 %53   ;;  %51 = vst.msk [vmem:[#allocation0 + $0x7] sm:$0x1] %vm8_vm0, %v48_v23  }
  0x8a   :  { %57 = vst.msk [vmem:[#allocation0 + $0x8] sm:$0x1] %vm8_vm0, %v54_v24  }
  0x8c   :  { %v60_v25 = vpop.permute.xlu0 %59  }
  0x8d   :  { %v66_v26 = vpop.permute.xlu1 %65   ;;  %63 = vst.msk [vmem:[#allocation0 + $0x9] sm:$0x1] %vm8_vm0, %v60_v25  }
  0x8e   :  { %69 = vst.msk [vmem:[#allocation0 + $0xa] sm:$0x1] %vm8_vm0, %v66_v26  }
  0x90   :  { %v72_v27 = vpop.permute.xlu0 %71  }
  0x91   :  { %v78_v28 = vpop.permute.xlu1 %77   ;;  %75 = vst.msk [vmem:[#allocation0 + $0xb] sm:$0x1] %vm8_vm0, %v72_v27  }
  0x92   :  { %81 = vst.msk [vmem:[#allocation0 + $0xc] sm:$0x1] %vm8_vm0, %v78_v28  }
  0x94   :  { %v84_v29 = vpop.permute.xlu0 %83  }
  0x95   :  { %v90_v30 = vpop.permute.xlu1 %89   ;;  %87 = vst.msk [vmem:[#allocation0 + $0xd] sm:$0x1] %vm8_vm0, %v84_v29  }
  0x96   :  { %93 = vst.msk [vmem:[#allocation0 + $0xe] sm:$0x1] %vm8_vm0, %v90_v30  }
  0x98   :  { %v96_v31 = vpop.permute.xlu0 %95  }
  0x99   :  { %99 = vst.msk [vmem:[#allocation0 + $0xf] sm:$0x1] %vm8_vm0, %v96_v31  }
  0x9a   :  { %137 = shalt.err (!%p134_p4)
}
  0x9b   :  { %s138_s27 = scalar_lea.hbm %s208_s1, 256 }
  0x9c   :  { %p139_p5 = scmp.ne.s32.totalorder %s208_s1, %s138_s27  ;;  %p142_p6 = scmp.lt.u32.totalorder %s138_s27, %s208_s1 }
  0x9e   :  { %p144_p7 = pnand %p142_p6, %p139_p5 }
  0xa0   :  { %147 = shalt.err (!%p144_p7)
}
  0xa1   :  { %107 = dma.vmem_to_hbm [thread:$0]  %s105_s23, 256, %s208_s1, [#allocation1]  }
  0xa2   :  { %148 = dma.done.wait [#allocation1], 256  }
  0xa3   :  { %149 = vsyncadd [#allocation1], 4294967040 }
  0xa4   :  { %109 = vsyncpa [#allocation1], 1 }

// kernel: densenet_seg_forward.21
= control target key start
LH: loop header
LB: loop body
LE: loop exit
PB: predicated region body
PF: predicated region fallthrough
CT: control target
= control target key end

     0   :  { %v333_v0 = vmov 0.0|0.0   ;;  %vm334_vm0 = vmmov 0   ;;  %v335_v4 = vmov 0.0   ;;  %vm96_vm1 = vcmask 261120   ;;  %s488_s0 = inlined_call_operand.vmem [shape: f32[128,32], index: 0, kind: input, shape index: {}]   ;;  %s489_s1 = inlined_call_operand.vmem [shape: f32[1,32], index: 1, kind: input, shape index: {}]   ;;  %s490_s2 = inlined_call_operand.vmem [shape: f32[1,32], index: 2, kind: input, shape index: {}]   ;;  %s491_s3 = inlined_call_operand.vmem [shape: f32[8,32], index: 3, kind: input, shape index: {}]   ;;  %s492_s4 = inlined_call_operand.vmem [shape: f32[8,128], index: 4, kind: output, shape index: {}]  }
   0x1   :  { %296 = vmatprep.subr.bf16.mxu0 %v333_v0  ;;  %v17_v1 = vld [vmem:[%s488_s0] sm:$0xff]  ;;  %v18_v2 = vld [vmem:[%s488_s0 + $0x8] sm:$0xff]  ;;  %293 = vmatprep.mubr.msk.f32.mxu0 %vm334_vm0, %v335_v4  ;;  %v19_v8 = vld [vmem:[%s488_s0 + $0x10] sm:$0xff] }
   0x2   :  { %v371_v3 = vld [vmem:[%s489_s1] ss:$0 sm:$0xff]  ;;  %v20_v9 = vld [vmem:[%s488_s0 + $0x18] sm:$0xff]  ;;  %vm394_vm2 = vmpackc.low %vm96_vm1, %vm96_vm1 }
   0x3   :  { %v40_v5 = vmul.f32 %v371_v3, %v17_v1  ;;  %v41_v6 = vmul.f32 %v371_v3, %v18_v2  ;;  %v378_v7 = vld [vmem:[%s490_s2] ss:$0 sm:$0xff]  ;;  %v42_v10 = vmul.f32 %v371_v3, %v19_v8  ;;  %v43_v13 = vmul.f32 %v371_v3, %v20_v9  ;;  %v22_v20 = vld [vmem:[%s488_s0 + $0x28] sm:$0xff]  ;;  %v23_v29 = vld [vmem:[%s488_s0 + $0x30] sm:$0xff] }
   0x4   :  { %v21_v19 = vld [vmem:[%s488_s0 + $0x20] sm:$0xff]  ;;  %v45_v25 = vmul.f32 %v371_v3, %v22_v20  ;;  %v24_v30 = vld [vmem:[%s488_s0 + $0x38] sm:$0xff]  ;;  %v46_v33 = vmul.f32 %v371_v3, %v23_v29  ;;  %v26_v39 = vld [vmem:[%s488_s0 + $0x48] sm:$0xff] }
   0x5   :  { %v63_v11 = vadd.f32 %v378_v7, %v40_v5  ;;  %v64_v12 = vadd.f32 %v378_v7, %v41_v6  ;;  %v65_v16 = vadd.f32 %v378_v7, %v42_v10  ;;  %v66_v17 = vadd.f32 %v378_v7, %v43_v13  ;;  %v25_v38 = vld [vmem:[%s488_s0 + $0x40] sm:$0xff]  ;;  %v27_v47 = vld [vmem:[%s488_s0 + $0x50] sm:$0xff]  ;;  %v28_v48 = vld [vmem:[%s488_s0 + $0x58] sm:$0xff] }
   0x6   :  { %v44_v24 = vmul.f32 %v371_v3, %v21_v19  ;;  %v68_v28 = vadd.f32 %v378_v7, %v45_v25  ;;  %v47_v34 = vmul.f32 %v371_v3, %v24_v30  ;;  %v69_v36 = vadd.f32 %v378_v7, %v46_v33  ;;  %v29_v56 = vld [vmem:[%s488_s0 + $0x60] sm:$0xff]  ;;  %v30_v57 = vld [vmem:[%s488_s0 + $0x68] sm:$0xff]  ;;  %v31_v2 = vld [vmem:[%s488_s0 + $0x70] sm:$0xff] }
   0x7   :  { %v79_v14 = vmax.f32 %v63_v11, 0.0  ;;  %v80_v15 = vmax.f32 %v64_v12, 0.0  ;;  %v81_v22 = vmax.f32 %v65_v16, 0.0  ;;  %v82_v23 = vmax.f32 %v66_v17, 0.0  ;;  %v32_v4 = vld [vmem:[%s488_s0 + $0x78] sm:$0xff] }
   0x8   :  { %v67_v27 = vadd.f32 %v378_v7, %v44_v24  ;;  %v84_v32 = vmax.f32 %v68_v28, 0.0  ;;  %v70_v37 = vadd.f32 %v378_v7, %v47_v34  ;;  %v85_v40 = vmax.f32 %v69_v36, 0.0 }
   0x9   :  { %v297_v21 = vpack.c.bf16 %v80_v15, %v79_v14  ;;  %v301_v26 = vpack.c.bf16 %v82_v23, %v81_v22  ;;  %v48_v42 = vmul.f32 %v371_v3, %v25_v38  ;;  %v49_v43 = vmul.f32 %v371_v3, %v26_v39 }
   0xa   :  { %v83_v31 = vmax.f32 %v67_v27, 0.0  ;;  %v86_v41 = vmax.f32 %v70_v37, 0.0  ;;  %v50_v51 = vmul.f32 %v371_v3, %v27_v47  ;;  %v51_v52 = vmul.f32 %v371_v3, %v28_v48 }
   0xb   :  { %299 = vmatpush3.bf16.xpose.msk.msra.mxu0 %vm394_vm2, %v297_v21  ;;  %v71_v45 = vadd.f32 %v378_v7, %v48_v42  ;;  %v72_v46 = vadd.f32 %v378_v7, %v49_v43  ;;  %v52_v60 = vmul.f32 %v371_v3, %v29_v56  ;;  %v53_v61 = vmul.f32 %v371_v3, %v30_v57 }
   0xc   :  { %300 = vmatprep.subr.bf16.mxu0 %v333_v0  ;;  %v305_v35 = vpack.c.bf16 %v84_v32, %v83_v31  ;;  %v309_v44 = vpack.c.bf16 %v86_v41, %v85_v40  ;;  %v73_v54 = vadd.f32 %v378_v7, %v50_v51  ;;  %v74_v55 = vadd.f32 %v378_v7, %v51_v52 }
   0xd   :  { %v87_v49 = vmax.f32 %v71_v45, 0.0  ;;  %v88_v50 = vmax.f32 %v72_v46, 0.0  ;;  %v75_v63 = vadd.f32 %v378_v7, %v52_v60  ;;  %v76_v1 = vadd.f32 %v378_v7, %v53_v61 }
   0xe   :  { %v89_v58 = vmax.f32 %v73_v54, 0.0  ;;  %v90_v59 = vmax.f32 %v74_v55, 0.0  ;;  %v54_v8 = vmul.f32 %v371_v3, %v31_v2  ;;  %v55_v9 = vmul.f32 %v371_v3, %v32_v4  ;;  %v95_v3 = vld [vmem:[%s491_s3] sm:$0xff] }
   0xf   :  { %v313_v53 = vpack.c.bf16 %v88_v50, %v87_v49  ;;  %v91_v5 = vmax.f32 %v75_v63, 0.0  ;;  %v92_v6 = vmax.f32 %v76_v1, 0.0 }
  0x10   :  { %v317_v62 = vpack.c.bf16 %v90_v59, %v89_v58  ;;  %v77_v11 = vadd.f32 %v378_v7, %v54_v8  ;;  %v78_v12 = vadd.f32 %v378_v7, %v55_v9 }
  0x11   :  { %v321_v10 = vpack.c.bf16 %v92_v6, %v91_v5 }
  0x12   :  { %v93_v13 = vmax.f32 %v77_v11, 0.0  ;;  %v94_v14 = vmax.f32 %v78_v12, 0.0 }
  0x13   :  { %303 = vmatpush3.bf16.xpose.msk.msra.mxu0 %vm394_vm2, %v301_v26 }
  0x14   :  { %304 = vmatprep.subr.bf16.mxu0 %v333_v0  ;;  %v325_v15 = vpack.c.bf16 %v94_v14, %v93_v13 }
  0x1b   :  { %307 = vmatpush3.bf16.xpose.msk.msra.mxu0 %vm394_vm2, %v305_v35 }
  0x1c   :  { %308 = vmatprep.subr.bf16.mxu0 %v333_v0 }
  0x23   :  { %311 = vmatpush3.bf16.xpose.msk.msra.mxu0 %vm394_vm2, %v309_v44 }
  0x24   :  { %312 = vmatprep.subr.bf16.mxu0 %v333_v0 }
  0x2b   :  { %315 = vmatpush3.bf16.xpose.msk.msra.mxu0 %vm394_vm2, %v313_v53 }
  0x2c   :  { %316 = vmatprep.subr.bf16.mxu0 %v333_v0 }
  0x33   :  { %319 = vmatpush3.bf16.xpose.msk.msra.mxu0 %vm394_vm2, %v317_v62 }
  0x34   :  { %320 = vmatprep.subr.bf16.mxu0 %v333_v0 }
  0x3b   :  { %323 = vmatpush3.bf16.xpose.msk.msra.mxu0 %vm394_vm2, %v321_v10 }
  0x3c   :  { %324 = vmatprep.subr.bf16.mxu0 %v333_v0 }
  0x43   :  { %327 = vmatpush3.bf16.xpose.msk.msra.mxu0 %vm394_vm2, %v325_v15 }
  0x4a   :  { %294 = vmatmul.mubr.msk.f32.vlgmr.msra.gmra.mrb[0].mxu0 %vm96_vm1, %v95_v3 }
 0x11d   :  { %v214_v16 = vpop.f32.mrb[0].mxu0 }
 0x11e   :  { %v218_v17 = vmax.f32 %v214_v16, 0.0  ;;  %v295_v7 = vpop.f32.mrb[1].mxu0 }
 0x120   :  { %331 = vtanh.f32 %v218_v17 }
 0x12a   :  { %v332_v19 = vpop.eup %331 }
 0x12b   :  { %220 = vst [vmem:[%s492_s4] sm:$0xff] %v332_v19 }

</bundles_post_ra>
